<compile_context>
chip_gen: v6e
topology: v6e:2x2x1
jax: 0.10.0
libtpu: 0.0.40
codegen_flags: <defaults>
</compile_context>

<pallas_src>
import jax
import jax.numpy as jnp
from jax.experimental import pallas as pl
from jax.experimental.pallas import tpu as pltpu


# ----------------------------------------------------------------------------
# small helpers
# ----------------------------------------------------------------------------
def _round_up(x, m):
    return (x + m - 1) // m * m


def _default_vmem_limit_bytes():
    # Generation-aware scoped-VMEM budget (~60% of physical, capped):
    # v5e/v6e 128 MiB -> ~76 MiB, v7x 64 MiB -> ~38 MiB.  Safe fallback 48 MiB.
    try:
        cap = pltpu.get_tpu_info().vmem_capacity_bytes
        return min(int(cap * 0.6), 100 * 1024 * 1024)
    except Exception:  # pragma: no cover - info query unavailable
        return 48 * 1024 * 1024


def _choose_tiles(h, target):
    """(tile_h, padded_H).  Multi-tile needs tile_h >= 5 (max dilation) so the
    3-piece halo DMA never crosses the image boundary; if H has no divisor in
    [5, target] we pad H to a multiple of `target` and mask padded rows."""
    target = max(8, int(target))
    if h <= target:
        return h, h
    for t in range(target, 4, -1):
        if h % t == 0:
            return t, h
    hp = _round_up(h, target)
    return target, hp


def _pad_channels(x_nhwc, cp):
    c = x_nhwc.shape[-1]
    if c == cp:
        return x_nhwc
    return jnp.pad(x_nhwc, ((0, 0), (0, 0), (0, 0), (0, cp - c)))


def _pad_bias(b, cp):
    c = b.shape[0]
    if c != cp:
        b = jnp.pad(b, (0, cp - c))
    return b.reshape(1, cp).astype(jnp.float32)


def _fold_w3x3(w_hwio, cp):
    """(3,3,Cin,Cout) -> (9, cp, cp), tap-major (kh*3 + kw)."""
    kh, kw, cin, cout = w_hwio.shape
    if cin != cp or cout != cp:
        w_hwio = jnp.pad(w_hwio, ((0, 0), (0, 0), (0, cp - cin), (0, cp - cout)))
    return w_hwio.reshape(kh * kw, cp, cp)


def _fold_w1x1(w_hwio, c, cp):
    """(1,1,4*c,Cout) -> (4, cp, cp): per-group channel padding so the
    [x | x1 | x2 | x3] group boundaries land on cp multiples."""
    cout = w_hwio.shape[-1]
    wg = w_hwio.reshape(4, c, cout)
    if c != cp or cout != cp:
        wg = jnp.pad(wg, ((0, 0), (0, cp - c), (0, cp - cout)))
    return wg


# ----------------------------------------------------------------------------
# in-kernel building blocks
# ----------------------------------------------------------------------------
def _make_halo_dma(x_hbm, xbuf, sem, n, *, tile_h, p, wl, W, Hp, n_t):
    """3-piece (center / top-halo / bottom-halo) HBM->VMEM copy of one H tile
    of the *unpadded* map into a halo buffer slot.  All sizes are static; halo
    pieces are only issued/waited when they are fully inside the image."""

    def pieces(t_idx, slot):
        h0 = t_idx * tile_h
        center = pltpu.make_async_copy(
            x_hbm.at[n, pl.ds(pl.multiple_of(h0, tile_h), tile_h)],
            xbuf.at[slot, pl.ds(p, tile_h), pl.ds(wl, W)],
            sem.at[slot, 0])
        top = pltpu.make_async_copy(
            x_hbm.at[n, pl.ds(jnp.maximum(h0 - p, 0), p)],
            xbuf.at[slot, pl.ds(0, p), pl.ds(wl, W)],
            sem.at[slot, 1])
        bot = pltpu.make_async_copy(
            x_hbm.at[n, pl.ds(jnp.minimum(h0 + tile_h, max(Hp - p, 0)), p)],
            xbuf.at[slot, pl.ds(p + tile_h, p), pl.ds(wl, W)],
            sem.at[slot, 2])
        return center, top, bot

    def issue(t_idx, slot):
        center, top, bot = pieces(t_idx, slot)
        center.start()

        @pl.when(t_idx > 0)
        def _():
            top.start()

        @pl.when(t_idx < n_t - 1)
        def _():
            bot.start()

    def wait(t_idx, slot):
        center, top, bot = pieces(t_idx, slot)
        center.wait()

        @pl.when(t_idx > 0)
        def _():
            top.wait()

        @pl.when(t_idx < n_t - 1)
        def _():
            bot.wait()

    return issue, wait


def _zero_halos(xbuf, t, slot, n_t, *, p, wl, W, tile_h):
    """Zero the 'same'-padding borders of the halo buffer.  Column halos are
    never touched by DMAs, so zeroing them once per batch row (t == 0, both
    slots) keeps them zero; row halos are re-zeroed for the first/last tile."""
    nbuf, halo_h, Wb, Cp = xbuf.shape
    zdt = xbuf.dtype

    @pl.when(t == 0)
    def _():
        xbuf[:, :, 0:wl, :] = jnp.zeros((nbuf, halo_h, wl, Cp), zdt)
        xbuf[:, :, wl + W:Wb, :] = jnp.zeros((nbuf, halo_h, Wb - wl - W, Cp), zdt)
        xbuf[0, 0:p, :, :] = jnp.zeros((p, Wb, Cp), zdt)       # top of tile 0

    @pl.when(t == n_t - 1)
    def _():
        xbuf[slot, p + tile_h:halo_h, :, :] = jnp.zeros((p, Wb, Cp), zdt)


def _accumulate_conv3x3(xbuf, slot, w_ref, *, d, tile_h, W, Cp, wl):
    """9 accumulated K=Cp MXU dots.  Only 3 kw-shifted slabs are materialized
    (static-offset VMEM slices); the kh shift is a free major-dim row offset.
    NOTE: at Cp=128 each dot half-fills the 256-wide v6e/v7x MXU K/N; keep
    tile_h*W (the M dim) large.  Real DRN widths (256/512) fill it."""
    c0 = wl - d                                   # buffer column of padded col 0
    acc = None
    for kw in range(3):
        cs = c0 + kw * d
        slab = xbuf[slot, :, cs:cs + W, :]        # (halo_h, W, Cp)
        for kh in range(3):
            lhs = slab[kh * d:kh * d + tile_h].reshape(tile_h * W, Cp)
            part = jnp.dot(lhs, w_ref[kh * 3 + kw],
                           preferred_element_type=jnp.float32)
            acc = part if acc is None else acc + part
    return acc


def _mask_padded_rows(acc, t, tile_h, h_valid):
    """Zero output rows >= h_valid (only used when H was padded)."""
    th, W, _ = acc.shape
    rows = t * tile_h + jax.lax.broadcasted_iota(jnp.int32, (th, W), 0)
    return jnp.where((rows < h_valid)[:, :, None], acc, 0.0)


# ----------------------------------------------------------------------------
# Kernel A: dilated 3x3 conv ('same' pad) + bias + ReLU, halo-tiled over H.
# ----------------------------------------------------------------------------
def _dilated_conv3x3_relu(x, w, b, dilation, tile_h, h_valid, vmem_limit_bytes):
    """x: (N, Hp, W, Cp) channel-padded NHWC.  w: (9, Cp, Cp).  b: (1, Cp)."""
    N, Hp, W, Cp = x.shape
    n_t = Hp // tile_h
    d = p = dilation
    wl = 16                               # left offset: >= p, sublane-aligned for bf16
    halo_h = tile_h + 2 * p
    Wb = wl + W + 16
    mask = Hp > h_valid

    def kernel(x_hbm, w_ref, b_ref, o_ref, xbuf, sem):
        n = pl.program_id(0)
        t = pl.program_id(1)
        slot = t & 1
        issue, wait = _make_halo_dma(x_hbm, xbuf, sem, n, tile_h=tile_h, p=p,
                                     wl=wl, W=W, Hp=Hp, n_t=n_t)

        @pl.when(t == 0)
        def _():
            issue(t, slot)                # prime the pipeline (once per batch row)

        @pl.when(t + 1 < n_t)
        def _():
            issue(t + 1, (t + 1) & 1)     # prefetch next H tile into the other slot

        _zero_halos(xbuf, t, slot, n_t, p=p, wl=wl, W=W, tile_h=tile_h)
        wait(t, slot)

        acc = _accumulate_conv3x3(xbuf, slot, w_ref, d=d, tile_h=tile_h, W=W,
                                  Cp=Cp, wl=wl)
        acc = jnp.maximum(acc + b_ref[...], 0.0).reshape(tile_h, W, Cp)
        if mask:
            acc = _mask_padded_rows(acc, t, tile_h, h_valid)
        o_ref[0] = acc.astype(o_ref.dtype)

    return pl.pallas_call(
        kernel,
        out_shape=jax.ShapeDtypeStruct((N, Hp, W, Cp), x.dtype),
        grid=(N, n_t),
        in_specs=[
            pl.BlockSpec(memory_space=pl.ANY),                   # x stays in HBM (manual halo DMA)
            pl.BlockSpec((9, Cp, Cp), lambda n, t: (0, 0, 0)),   # per-tap weights, VMEM resident
            pl.BlockSpec((1, Cp), lambda n, t: (0, 0)),          # bias
        ],
        out_specs=pl.BlockSpec((1, tile_h, W, Cp), lambda n, t: (n, t, 0, 0)),
        scratch_shapes=[pltpu.VMEM((2, halo_h, Wb, Cp), x.dtype),  # double-buffered halo tile
                        pltpu.SemaphoreType.DMA((2, 3))],          # [slot, piece]
        compiler_params=pltpu.CompilerParams(
            # H-tile axis must stay "arbitrary": the scratch halo buffer carries
            # the prefetch pipeline + zero-halo priming across H tiles.
            dimension_semantics=("parallel", "arbitrary"),
            vmem_limit_bytes=vmem_limit_bytes),
    )(x, w, b)


# ----------------------------------------------------------------------------
# Kernel B: dilation-5 conv + fused channel-concat + 1x1 conv + ReLU.
#   x3  = ReLU(conv3x3_d5(x2) + b2)                    (VMEM only)
#   out = ReLU(x@W3[0] + x1@W3[1] + x2@W3[2] + x3@W3[3] + b3)
# ----------------------------------------------------------------------------
def _fused_conv5_concat_1x1(x, x1, x2, w2, b2, w3, b3, tile_h, h_valid,
                            vmem_limit_bytes, out_dtype):
    N, Hp, W, Cp = x.shape
    n_t = Hp // tile_h
    d = p = 5
    wl = 16
    halo_h = tile_h + 2 * p
    Wb = wl + W + 16
    mask = Hp > h_valid
    cdtype = x.dtype

    def kernel(x2_hbm, x_ref, x1_ref, w2_ref, b2_ref, w3_ref, b3_ref, o_ref,
               xbuf, sem):
        n = pl.program_id(0)
        t = pl.program_id(1)
        slot = t & 1
        issue, wait = _make_halo_dma(x2_hbm, xbuf, sem, n, tile_h=tile_h, p=p,
                                     wl=wl, W=W, Hp=Hp, n_t=n_t)

        @pl.when(t == 0)
        def _():
            issue(t, slot)

        @pl.when(t + 1 < n_t)
        def _():
            issue(t + 1, (t + 1) & 1)

        _zero_halos(xbuf, t, slot, n_t, p=p, wl=wl, W=W, tile_h=tile_h)

        # Overlap: the x / x1 contributions only need the BlockSpec-pipelined
        # tiles, so compute them before waiting on the x2 halo DMA.
        xc = x_ref[0].reshape(tile_h * W, Cp)
        x1c = x1_ref[0].reshape(tile_h * W, Cp)
        acc = jnp.dot(xc, w3_ref[0], preferred_element_type=jnp.float32)
        acc = acc + jnp.dot(x1c, w3_ref[1], preferred_element_type=jnp.float32)

        wait(t, slot)

        # dilation-5 conv on the halo tile; x3 never round-trips through HBM.
        acc3 = _accumulate_conv3x3(xbuf, slot, w2_ref, d=d, tile_h=tile_h, W=W,
                                   Cp=Cp, wl=wl)
        x3 = jnp.maximum(acc3 + b2_ref[...], 0.0).astype(cdtype)

        # interior x2 read starts at column wl (sublane-aligned -> plain vld)
        x2c = xbuf[slot, p:p + tile_h, wl:wl + W, :].reshape(tile_h * W, Cp)
        acc = acc + jnp.dot(x2c, w3_ref[2], preferred_element_type=jnp.float32)
        acc = acc + jnp.dot(x3, w3_ref[3], preferred_element_type=jnp.float32)
        acc = jnp.maximum(acc + b3_ref[...], 0.0).reshape(tile_h, W, Cp)
        if mask:
            acc = _mask_padded_rows(acc, t, tile_h, h_valid)
        o_ref[0] = acc.astype(o_ref.dtype)

    return pl.pallas_call(
        kernel,
        out_shape=jax.ShapeDtypeStruct((N, Hp, W, Cp), out_dtype),
        grid=(N, n_t),
        in_specs=[
            pl.BlockSpec(memory_space=pl.ANY),                              # x2 (halo DMA)
            pl.BlockSpec((1, tile_h, W, Cp), lambda n, t: (n, t, 0, 0)),    # x tile
            pl.BlockSpec((1, tile_h, W, Cp), lambda n, t: (n, t, 0, 0)),    # x1 tile
            pl.BlockSpec((9, Cp, Cp), lambda n, t: (0, 0, 0)),              # d=5 weights
            pl.BlockSpec((1, Cp), lambda n, t: (0, 0)),                     # b2
            pl.BlockSpec((4, Cp, Cp), lambda n, t: (0, 0, 0)),              # grouped 1x1 weights
            pl.BlockSpec((1, Cp), lambda n, t: (0, 0)),                     # b3
        ],
        out_specs=pl.BlockSpec((1, tile_h, W, Cp), lambda n, t: (n, t, 0, 0)),
        scratch_shapes=[pltpu.VMEM((2, halo_h, Wb, Cp), cdtype),
                        pltpu.SemaphoreType.DMA((2, 3))],
        compiler_params=pltpu.CompilerParams(
            dimension_semantics=("parallel", "arbitrary"),
            vmem_limit_bytes=vmem_limit_bytes),
    )(x2, x, x1, w2, b2, w3, b3)


# ----------------------------------------------------------------------------
# DilaRMoudle forward
# ----------------------------------------------------------------------------
def dila_r_module_forward(inputs_nchw, params, share=False,
                          compute_dtype=jnp.bfloat16,
                          tile_h_target=32,
                          vmem_limit_bytes=None):
    """NCHW multi-level forward.  Kernels run NHWC (channels on lanes);
    matmul operands use `compute_dtype` (bf16 default) with f32 accumulation."""
    if vmem_limit_bytes is None:
        vmem_limit_bytes = _default_vmem_limit_bytes()
    outs = []
    for i, x_nchw in enumerate(inputs_nchw):
        prm = params[0] if share else params[i]
        N, C, H, W = x_nchw.shape
        Cp = _round_up(C, 128)                 # lane-dense channel padding
        tile_h, Hp = _choose_tiles(H, tile_h_target)

        x = jnp.transpose(x_nchw, (0, 2, 3, 1))        # NCHW -> NHWC (once per level)
        x = _pad_channels(x, Cp)
        if Hp != H:
            # rare fallback for awkward H; padded rows are masked in-kernel
            x = jnp.pad(x, ((0, 0), (0, Hp - H), (0, 0), (0, 0)))
        x = x.astype(compute_dtype)

        w0 = _fold_w3x3(prm["w0"], Cp).astype(compute_dtype)
        w1 = _fold_w3x3(prm["w1"], Cp).astype(compute_dtype)
        w2 = _fold_w3x3(prm["w2"], Cp).astype(compute_dtype)
        w3 = _fold_w1x1(prm["w3"], C, Cp).astype(compute_dtype)
        b0 = _pad_bias(prm["b0"], Cp)
        b1 = _pad_bias(prm["b1"], Cp)
        b2 = _pad_bias(prm["b2"], Cp)
        b3 = _pad_bias(prm["b3"], Cp)

        x1 = _dilated_conv3x3_relu(x, w0, b0, 1, tile_h, H, vmem_limit_bytes)
        x2 = _dilated_conv3x3_relu(x1, w1, b1, 3, tile_h, H, vmem_limit_bytes)
        out = _fused_conv5_concat_1x1(x, x1, x2, w2, b2, w3, b3, tile_h, H,
                                      vmem_limit_bytes, x_nchw.dtype)

        out = out[:, :H, :, :C]                          # drop padded rows / channels
        outs.append(jnp.transpose(out, (0, 3, 1, 2)))    # NHWC -> NCHW
    return tuple(outs)


# ----------------------------------------------------------------------------
# Deterministic parameter init (xavier-uniform, like module.init_weights()).
# ----------------------------------------------------------------------------
def _xavier_uniform(key, shape):
    kh, kw, cin, cout = shape
    fan_in, fan_out = cin * kh * kw, cout * kh * kw
    limit = jnp.sqrt(6.0 / (fan_in + fan_out))
    return jax.random.uniform(key, shape, jnp.float32, -limit, limit)


def init_params(key, in_channel, num_levels):
    assert in_channel % 4 == 0
    params = []
    for i in range(num_levels):
        keys = jax.random.split(jax.random.fold_in(key, i), 8)
        p = {
            "w0": _xavier_uniform(keys[0], (3, 3, in_channel, in_channel)),
            "b0": jax.random.uniform(keys[1], (in_channel,), jnp.float32, -0.1, 0.1),
            "w1": _xavier_uniform(keys[2], (3, 3, in_channel, in_channel)),
            "b1": jax.random.uniform(keys[3], (in_channel,), jnp.float32, -0.1, 0.1),
            "w2": _xavier_uniform(keys[4], (3, 3, in_channel, in_channel)),
            "b2": jax.random.uniform(keys[5], (in_channel,), jnp.float32, -0.1, 0.1),
            "w3": _xavier_uniform(keys[6], (1, 1, in_channel * 4, in_channel)),
            "b3": jax.random.uniform(keys[7], (in_channel,), jnp.float32, -0.1, 0.1),
        }
        params.append(p)
    return params


# ----------------------------------------------------------------------------
# Pure-JAX reference (lax.conv_general_dilated) for correctness checking.
# ----------------------------------------------------------------------------
def _ref_conv_relu(x_nhwc, w_hwio, b, dilation):
    K = w_hwio.shape[0]
    pad = dilation * (K - 1) // 2
    y = jax.lax.conv_general_dilated(
        x_nhwc, w_hwio, window_strides=(1, 1),
        padding=[(pad, pad), (pad, pad)],
        rhs_dilation=(dilation, dilation),
        dimension_numbers=("NHWC", "HWIO", "NHWC"),
    )
    return jax.nn.relu(y + b)


def _ref_forward(inputs_nchw, params, share=False):
    outs = []
    for i, x_nchw in enumerate(inputs_nchw):
        p = params[0] if share else params[i]
        x = jnp.transpose(x_nchw, (0, 2, 3, 1))
        x1 = _ref_conv_relu(x, p["w0"], p["b0"], 1)
        x2 = _ref_conv_relu(x1, p["w1"], p["b1"], 3)
        x3 = _ref_conv_relu(x2, p["w2"], p["b2"], 5)
        cat = jnp.concatenate([x, x1, x2, x3], axis=-1)
        out = _ref_conv_relu(cat, p["w3"], p["b3"], 1)
        outs.append(jnp.transpose(out, (0, 3, 1, 2)))
    return tuple(outs)


if __name__ == "__main__":
    in_channel = 4          # module asserts in_channel % 4 == 0
    num_levels = 2
    batch = 2

    key = jax.random.PRNGKey(0)
    k_in0, k_in1, k_in2, k_par = jax.random.split(key, 4)

    # Multi-level FPN-like inputs, NCHW as in PyTorch.
    inputs = (
        jax.random.normal(k_in0, (batch, in_channel, 16, 16), jnp.float32),
        jax.random.normal(k_in1, (batch, in_channel, 8, 8), jnp.float32),
    )
    params = init_params(k_par, in_channel, num_levels)
    refs = _ref_forward(inputs, params, share=False)

    # 1) f32 operands: tight check of the kernel math (single-tile fast path).
    outs_f32 = jax.block_until_ready(
        dila_r_module_forward(inputs, params, share=False,
                              compute_dtype=jnp.float32))
    for o, r in zip(outs_f32, refs):
        assert o.shape == r.shape and o.dtype == r.dtype
        assert jnp.allclose(o, r, atol=1e-4, rtol=1e-4), "f32 mismatch vs reference"

    # 2) bf16 operands (production path, f32 accumulation): loose tolerance.
    outs_bf16 = jax.block_until_ready(
        dila_r_module_forward(inputs, params, share=False,
                              compute_dtype=jnp.bfloat16))
    for o, r in zip(outs_bf16, refs):
        assert o.shape == r.shape and o.dtype == r.dtype
        assert jnp.allclose(o, r, atol=5e-2, rtol=5e-2), "bf16 mismatch vs reference"

    # 3) Multi-tile path: H=17 forces pad-to-24 + row masking + 3 H tiles,
    #    exercising the double-buffered halo prefetch and boundary zeroing.
    inputs_odd = (jax.random.normal(k_in2, (1, in_channel, 17, 16), jnp.float32),)
    params_odd = [params[0]]
    refs_odd = _ref_forward(inputs_odd, params_odd)
    outs_odd = jax.block_until_ready(
        dila_r_module_forward(inputs_odd, params_odd,
                              compute_dtype=jnp.float32, tile_h_target=8))
    assert outs_odd[0].shape == refs_odd[0].shape
    assert jnp.allclose(outs_odd[0], refs_odd[0], atol=1e-4, rtol=1e-4), \
        "multi-tile mismatch vs reference"

    # TODO(synk): deformable-conv (dcn_cfg) branch not instantiated
    # (dcn_cfg=None default); no Pallas DCN implemented.
    print("KERNEL_OK")
</pallas_src>

<mosaic_0001>
module attributes {stable_mosaic.version = 11 : i64} {
  func.func @kernel(%arg0: i32, %arg1: i32, %arg2: memref<2x16x16x128xf32, #tpu.memory_space<any>>, %arg3: memref<9x128x128xf32, #tpu.memory_space<vmem>>, %arg4: memref<1x128xf32, #tpu.memory_space<vmem>>, %arg5: memref<1x16x16x128xf32, #tpu.memory_space<vmem>>, %arg6: memref<2x18x48x128xf32, #tpu.memory_space<vmem>>, %arg7: memref<2x3x!tpu.dma_semaphore, #tpu.memory_space<semaphore_mem>>) attributes {dimension_semantics = [#tpu.dimension_semantics<parallel>, #tpu.dimension_semantics<arbitrary>], iteration_bounds = array<i64: 2, 1>, scalar_prefetch = 0 : i64, scratch_operands = 2 : i64, tpu.core_type = #tpu.core_type<tc>, window_params = [{}, {pipeline_mode = #tpu.pipeline_mode<synchronous>, transform_indices = @transform_1, window_bounds = array<i64: 9, 128, 128>}, {pipeline_mode = #tpu.pipeline_mode<synchronous>, transform_indices = @transform_2, window_bounds = array<i64: 1, 128>}, {transform_indices = @transform_3, window_bounds = array<i64: 1, 16, 16, 128>}]} {
    %c1_i32 = arith.constant 1 : i32
    %0 = arith.andi %arg1, %c1_i32 : i32
    %c0_i32 = arith.constant 0 : i32
    %1 = arith.cmpi eq, %arg1, %c0_i32 : i32
    %2 = arith.extui %1 : i1 to i32
    %c0_i32_0 = arith.constant 0 : i32
    %3 = arith.cmpi ne, %2, %c0_i32_0 : i32
    scf.if %3 {
      %c16_i32_61 = arith.constant 16 : i32
      %103 = arith.muli %arg1, %c16_i32_61 : i32
      %104 = tpu.assume_multiple %103, 16 : i32
      %c1_i32_62 = arith.constant 1 : i32
      %105 = arith.subi %103, %c1_i32_62 : i32
      %c0_i32_63 = arith.constant 0 : i32
      %106 = arith.maxsi %105, %c0_i32_63 : i32
      %c16_i32_64 = arith.constant 16 : i32
      %107 = arith.addi %103, %c16_i32_64 : i32
      %c15_i32_65 = arith.constant 15 : i32
      %108 = arith.minsi %107, %c15_i32_65 : i32
      %c0_i32_66 = arith.constant 0 : i32
      %c0_i32_67 = arith.constant 0 : i32
      %c0_i32_68 = arith.constant 0 : i32
      %109 = tpu.memref_slice %arg2[%arg0, %104, %c0_i32_67, %c0_i32_68] : memref<2x16x16x128xf32, #tpu.memory_space<any>> -> memref<1x16x16x128xf32, #tpu.memory_space<any>>
      %110 = tpu.memref_squeeze %109 : memref<1x16x16x128xf32, #tpu.memory_space<any>> -> memref<16x16x128xf32, #tpu.memory_space<any>>
      %c1_i32_69 = arith.constant 1 : i32
      %c16_i32_70 = arith.constant 16 : i32
      %c0_i32_71 = arith.constant 0 : i32
      %111 = tpu.memref_slice %arg6[%0, %c1_i32_69, %c16_i32_70, %c0_i32_71] : memref<2x18x48x128xf32, #tpu.memory_space<vmem>> -> memref<1x16x16x128xf32, #tpu.memory_space<vmem>>
      %112 = tpu.memref_squeeze %111 : memref<1x16x16x128xf32, #tpu.memory_space<vmem>> -> memref<16x16x128xf32, #tpu.memory_space<vmem>>
      %113 = tpu.memref_slice %arg7[%0, %c0_i32_66] : memref<2x3x!tpu.dma_semaphore, #tpu.memory_space<semaphore_mem>> -> memref<1x1x!tpu.dma_semaphore, #tpu.memory_space<semaphore_mem>>
      %114 = tpu.memref_squeeze %113 : memref<1x1x!tpu.dma_semaphore, #tpu.memory_space<semaphore_mem>> -> memref<!tpu.dma_semaphore, #tpu.memory_space<semaphore_mem>>
      tpu.enqueue_dma source(%110 : memref<16x16x128xf32, #tpu.memory_space<any>>) target(%112 : memref<16x16x128xf32, #tpu.memory_space<vmem>>) target_semaphore(%114 : memref<!tpu.dma_semaphore, #tpu.memory_space<semaphore_mem>>)
      %c0_i32_72 = arith.constant 0 : i32
      %115 = arith.cmpi sgt, %arg1, %c0_i32_72 : i32
      %116 = arith.extui %115 : i1 to i32
      %c1_i32_73 = arith.constant 1 : i32
      %c0_i32_74 = arith.constant 0 : i32
      %117 = arith.cmpi ne, %116, %c0_i32_74 : i32
      scf.if %117 {
        %c0_i32_78 = arith.constant 0 : i32
        %c0_i32_79 = arith.constant 0 : i32
        %121 = tpu.memref_slice %arg2[%arg0, %106, %c0_i32_78, %c0_i32_79] : memref<2x16x16x128xf32, #tpu.memory_space<any>> -> memref<1x1x16x128xf32, #tpu.memory_space<any>>
        %122 = tpu.memref_squeeze %121 : memref<1x1x16x128xf32, #tpu.memory_space<any>> -> memref<1x16x128xf32, #tpu.memory_space<any>>
        %c0_i32_80 = arith.constant 0 : i32
        %c16_i32_81 = arith.constant 16 : i32
        %c0_i32_82 = arith.constant 0 : i32
        %123 = tpu.memref_slice %arg6[%0, %c0_i32_80, %c16_i32_81, %c0_i32_82] : memref<2x18x48x128xf32, #tpu.memory_space<vmem>> -> memref<1x1x16x128xf32, #tpu.memory_space<vmem>>
        %124 = tpu.memref_squeeze %123 : memref<1x1x16x128xf32, #tpu.memory_space<vmem>> -> memref<1x16x128xf32, #tpu.memory_space<vmem>>
        %125 = tpu.memref_slice %arg7[%0, %c1_i32_73] : memref<2x3x!tpu.dma_semaphore, #tpu.memory_space<semaphore_mem>> -> memref<1x1x!tpu.dma_semaphore, #tpu.memory_space<semaphore_mem>>
        %126 = tpu.memref_squeeze %125 : memref<1x1x!tpu.dma_semaphore, #tpu.memory_space<semaphore_mem>> -> memref<!tpu.dma_semaphore, #tpu.memory_space<semaphore_mem>>
        tpu.enqueue_dma source(%122 : memref<1x16x128xf32, #tpu.memory_space<any>>) target(%124 : memref<1x16x128xf32, #tpu.memory_space<vmem>>) target_semaphore(%126 : memref<!tpu.dma_semaphore, #tpu.memory_space<semaphore_mem>>)
      } else {
      }
      %c0_i32_75 = arith.constant 0 : i32
      %118 = arith.cmpi slt, %arg1, %c0_i32_75 : i32
      %119 = arith.extui %118 : i1 to i32
      %c2_i32_76 = arith.constant 2 : i32
      %c0_i32_77 = arith.constant 0 : i32
      %120 = arith.cmpi ne, %119, %c0_i32_77 : i32
      scf.if %120 {
        %c0_i32_78 = arith.constant 0 : i32
        %c0_i32_79 = arith.constant 0 : i32
        %121 = tpu.memref_slice %arg2[%arg0, %108, %c0_i32_78, %c0_i32_79] : memref<2x16x16x128xf32, #tpu.memory_space<any>> -> memref<1x1x16x128xf32, #tpu.memory_space<any>>
        %122 = tpu.memref_squeeze %121 : memref<1x1x16x128xf32, #tpu.memory_space<any>> -> memref<1x16x128xf32, #tpu.memory_space<any>>
        %c17_i32 = arith.constant 17 : i32
        %c16_i32_80 = arith.constant 16 : i32
        %c0_i32_81 = arith.constant 0 : i32
        %123 = tpu.memref_slice %arg6[%0, %c17_i32, %c16_i32_80, %c0_i32_81] : memref<2x18x48x128xf32, #tpu.memory_space<vmem>> -> memref<1x1x16x128xf32, #tpu.memory_space<vmem>>
        %124 = tpu.memref_squeeze %123 : memref<1x1x16x128xf32, #tpu.memory_space<vmem>> -> memref<1x16x128xf32, #tpu.memory_space<vmem>>
        %125 = tpu.memref_slice %arg7[%0, %c2_i32_76] : memref<2x3x!tpu.dma_semaphore, #tpu.memory_space<semaphore_mem>> -> memref<1x1x!tpu.dma_semaphore, #tpu.memory_space<semaphore_mem>>
        %126 = tpu.memref_squeeze %125 : memref<1x1x!tpu.dma_semaphore, #tpu.memory_space<semaphore_mem>> -> memref<!tpu.dma_semaphore, #tpu.memory_space<semaphore_mem>>
        tpu.enqueue_dma source(%122 : memref<1x16x128xf32, #tpu.memory_space<any>>) target(%124 : memref<1x16x128xf32, #tpu.memory_space<vmem>>) target_semaphore(%126 : memref<!tpu.dma_semaphore, #tpu.memory_space<semaphore_mem>>)
      } else {
      }
    } else {
    }
    %c1_i32_1 = arith.constant 1 : i32
    %4 = arith.addi %arg1, %c1_i32_1 : i32
    %c1_i32_2 = arith.constant 1 : i32
    %5 = arith.cmpi slt, %4, %c1_i32_2 : i32
    %6 = arith.extui %5 : i1 to i32
    %c0_i32_3 = arith.constant 0 : i32
    %7 = arith.cmpi ne, %6, %c0_i32_3 : i32
    scf.if %7 {
      %c1_i32_61 = arith.constant 1 : i32
      %103 = arith.addi %arg1, %c1_i32_61 : i32
      %c1_i32_62 = arith.constant 1 : i32
      %104 = arith.addi %arg1, %c1_i32_62 : i32
      %c1_i32_63 = arith.constant 1 : i32
      %105 = arith.andi %104, %c1_i32_63 : i32
      %c16_i32_64 = arith.constant 16 : i32
      %106 = arith.muli %103, %c16_i32_64 : i32
      %107 = tpu.assume_multiple %106, 16 : i32
      %c1_i32_65 = arith.constant 1 : i32
      %108 = arith.subi %106, %c1_i32_65 : i32
      %c0_i32_66 = arith.constant 0 : i32
      %109 = arith.maxsi %108, %c0_i32_66 : i32
      %c16_i32_67 = arith.constant 16 : i32
      %110 = arith.addi %106, %c16_i32_67 : i32
      %c15_i32_68 = arith.constant 15 : i32
      %111 = arith.minsi %110, %c15_i32_68 : i32
      %c0_i32_69 = arith.constant 0 : i32
      %c0_i32_70 = arith.constant 0 : i32
      %c0_i32_71 = arith.constant 0 : i32
      %112 = tpu.memref_slice %arg2[%arg0, %107, %c0_i32_70, %c0_i32_71] : memref<2x16x16x128xf32, #tpu.memory_space<any>> -> memref<1x16x16x128xf32, #tpu.memory_space<any>>
      %113 = tpu.memref_squeeze %112 : memref<1x16x16x128xf32, #tpu.memory_space<any>> -> memref<16x16x128xf32, #tpu.memory_space<any>>
      %c1_i32_72 = arith.constant 1 : i32
      %c16_i32_73 = arith.constant 16 : i32
      %c0_i32_74 = arith.constant 0 : i32
      %114 = tpu.memref_slice %arg6[%105, %c1_i32_72, %c16_i32_73, %c0_i32_74] : memref<2x18x48x128xf32, #tpu.memory_space<vmem>> -> memref<1x16x16x128xf32, #tpu.memory_space<vmem>>
      %115 = tpu.memref_squeeze %114 : memref<1x16x16x128xf32, #tpu.memory_space<vmem>> -> memref<16x16x128xf32, #tpu.memory_space<vmem>>
      %116 = tpu.memref_slice %arg7[%105, %c0_i32_69] : memref<2x3x!tpu.dma_semaphore, #tpu.memory_space<semaphore_mem>> -> memref<1x1x!tpu.dma_semaphore, #tpu.memory_space<semaphore_mem>>
      %117 = tpu.memref_squeeze %116 : memref<1x1x!tpu.dma_semaphore, #tpu.memory_space<semaphore_mem>> -> memref<!tpu.dma_semaphore, #tpu.memory_space<semaphore_mem>>
      tpu.enqueue_dma source(%113 : memref<16x16x128xf32, #tpu.memory_space<any>>) target(%115 : memref<16x16x128xf32, #tpu.memory_space<vmem>>) target_semaphore(%117 : memref<!tpu.dma_semaphore, #tpu.memory_space<semaphore_mem>>)
      %c0_i32_75 = arith.constant 0 : i32
      %118 = arith.cmpi sgt, %103, %c0_i32_75 : i32
      %119 = arith.extui %118 : i1 to i32
      %c1_i32_76 = arith.constant 1 : i32
      %c0_i32_77 = arith.constant 0 : i32
      %120 = arith.cmpi ne, %119, %c0_i32_77 : i32
      scf.if %120 {
        %c0_i32_81 = arith.constant 0 : i32
        %c0_i32_82 = arith.constant 0 : i32
        %124 = tpu.memref_slice %arg2[%arg0, %109, %c0_i32_81, %c0_i32_82] : memref<2x16x16x128xf32, #tpu.memory_space<any>> -> memref<1x1x16x128xf32, #tpu.memory_space<any>>
        %125 = tpu.memref_squeeze %124 : memref<1x1x16x128xf32, #tpu.memory_space<any>> -> memref<1x16x128xf32, #tpu.memory_space<any>>
        %c0_i32_83 = arith.constant 0 : i32
        %c16_i32_84 = arith.constant 16 : i32
        %c0_i32_85 = arith.constant 0 : i32
        %126 = tpu.memref_slice %arg6[%105, %c0_i32_83, %c16_i32_84, %c0_i32_85] : memref<2x18x48x128xf32, #tpu.memory_space<vmem>> -> memref<1x1x16x128xf32, #tpu.memory_space<vmem>>
        %127 = tpu.memref_squeeze %126 : memref<1x1x16x128xf32, #tpu.memory_space<vmem>> -> memref<1x16x128xf32, #tpu.memory_space<vmem>>
        %128 = tpu.memref_slice %arg7[%105, %c1_i32_76] : memref<2x3x!tpu.dma_semaphore, #tpu.memory_space<semaphore_mem>> -> memref<1x1x!tpu.dma_semaphore, #tpu.memory_space<semaphore_mem>>
        %129 = tpu.memref_squeeze %128 : memref<1x1x!tpu.dma_semaphore, #tpu.memory_space<semaphore_mem>> -> memref<!tpu.dma_semaphore, #tpu.memory_space<semaphore_mem>>
        tpu.enqueue_dma source(%125 : memref<1x16x128xf32, #tpu.memory_space<any>>) target(%127 : memref<1x16x128xf32, #tpu.memory_space<vmem>>) target_semaphore(%129 : memref<!tpu.dma_semaphore, #tpu.memory_space<semaphore_mem>>)
      } else {
      }
      %c0_i32_78 = arith.constant 0 : i32
      %121 = arith.cmpi slt, %103, %c0_i32_78 : i32
      %122 = arith.extui %121 : i1 to i32
      %c2_i32_79 = arith.constant 2 : i32
      %c0_i32_80 = arith.constant 0 : i32
      %123 = arith.cmpi ne, %122, %c0_i32_80 : i32
      scf.if %123 {
        %c0_i32_81 = arith.constant 0 : i32
        %c0_i32_82 = arith.constant 0 : i32
        %124 = tpu.memref_slice %arg2[%arg0, %111, %c0_i32_81, %c0_i32_82] : memref<2x16x16x128xf32, #tpu.memory_space<any>> -> memref<1x1x16x128xf32, #tpu.memory_space<any>>
        %125 = tpu.memref_squeeze %124 : memref<1x1x16x128xf32, #tpu.memory_space<any>> -> memref<1x16x128xf32, #tpu.memory_space<any>>
        %c17_i32 = arith.constant 17 : i32
        %c16_i32_83 = arith.constant 16 : i32
        %c0_i32_84 = arith.constant 0 : i32
        %126 = tpu.memref_slice %arg6[%105, %c17_i32, %c16_i32_83, %c0_i32_84] : memref<2x18x48x128xf32, #tpu.memory_space<vmem>> -> memref<1x1x16x128xf32, #tpu.memory_space<vmem>>
        %127 = tpu.memref_squeeze %126 : memref<1x1x16x128xf32, #tpu.memory_space<vmem>> -> memref<1x16x128xf32, #tpu.memory_space<vmem>>
        %128 = tpu.memref_slice %arg7[%105, %c2_i32_79] : memref<2x3x!tpu.dma_semaphore, #tpu.memory_space<semaphore_mem>> -> memref<1x1x!tpu.dma_semaphore, #tpu.memory_space<semaphore_mem>>
        %129 = tpu.memref_squeeze %128 : memref<1x1x!tpu.dma_semaphore, #tpu.memory_space<semaphore_mem>> -> memref<!tpu.dma_semaphore, #tpu.memory_space<semaphore_mem>>
        tpu.enqueue_dma source(%125 : memref<1x16x128xf32, #tpu.memory_space<any>>) target(%127 : memref<1x16x128xf32, #tpu.memory_space<vmem>>) target_semaphore(%129 : memref<!tpu.dma_semaphore, #tpu.memory_space<semaphore_mem>>)
      } else {
      }
    } else {
    }
    %c0_i32_4 = arith.constant 0 : i32
    %8 = arith.cmpi eq, %arg1, %c0_i32_4 : i32
    %9 = arith.extui %8 : i1 to i32
    %c0_i32_5 = arith.constant 0 : i32
    %10 = arith.cmpi ne, %9, %c0_i32_5 : i32
    scf.if %10 {
      %cst_61 = arith.constant 0.000000e+00 : f32
      %103 = vector.broadcast %cst_61 : f32 to vector<2x18x16x128xf32>
      %c0_62 = arith.constant 0 : index
      %c0_63 = arith.constant 0 : index
      %c0_64 = arith.constant 0 : index
      %c0_65 = arith.constant 0 : index
      %104 = vector.load %arg6[%c0_62, %c0_63, %c0_64, %c0_65] : memref<2x18x48x128xf32, #tpu.memory_space<vmem>>, vector<2x18x16x128xf32>
      tpu.vector_store %arg6[%c0_62, %c0_63, %c0_64, %c0_65], %103 {strides = array<i32>} : memref<2x18x48x128xf32, #tpu.memory_space<vmem>>, vector<2x18x16x128xf32>,
      %cst_66 = arith.constant 0.000000e+00 : f32
      %105 = vector.broadcast %cst_66 : f32 to vector<2x18x16x128xf32>
      %c0_67 = arith.constant 0 : index
      %c0_68 = arith.constant 0 : index
      %c32 = arith.constant 32 : index
      %c0_69 = arith.constant 0 : index
      %106 = vector.load %arg6[%c0_67, %c0_68, %c32, %c0_69] : memref<2x18x48x128xf32, #tpu.memory_space<vmem>>, vector<2x18x16x128xf32>
      tpu.vector_store %arg6[%c0_67, %c0_68, %c32, %c0_69], %105 {strides = array<i32>} : memref<2x18x48x128xf32, #tpu.memory_space<vmem>>, vector<2x18x16x128xf32>,
      %cst_70 = arith.constant 0.000000e+00 : f32
      %107 = vector.broadcast %cst_70 : f32 to vector<1x48x128xf32>
      %c0_71 = arith.constant 0 : index
      %c0_72 = arith.constant 0 : index
      %c0_73 = arith.constant 0 : index
      %c0_74 = arith.constant 0 : index
      %108 = vector.load %arg6[%c0_71, %c0_72, %c0_73, %c0_74] : memref<2x18x48x128xf32, #tpu.memory_space<vmem>>, vector<1x1x48x128xf32>
      %109 = vector.shape_cast %108 : vector<1x1x48x128xf32> to vector<1x48x128xf32>
      %110 = vector.shape_cast %107 : vector<1x48x128xf32> to vector<1x1x48x128xf32>
      tpu.vector_store %arg6[%c0_71, %c0_72, %c0_73, %c0_74], %110 {strides = array<i32>} : memref<2x18x48x128xf32, #tpu.memory_space<vmem>>, vector<1x1x48x128xf32>,
    } else {
    }
    %c0_i32_6 = arith.constant 0 : i32
    %11 = arith.cmpi eq, %arg1, %c0_i32_6 : i32
    %12 = arith.extui %11 : i1 to i32
    %c0_i32_7 = arith.constant 0 : i32
    %13 = arith.cmpi ne, %12, %c0_i32_7 : i32
    scf.if %13 {
      %cst_61 = arith.constant 0.000000e+00 : f32
      %103 = vector.broadcast %cst_61 : f32 to vector<1x48x128xf32>
      %104 = arith.index_cast %0 : i32 to index
      %c17_62 = arith.constant 17 : index
      %c0_63 = arith.constant 0 : index
      %c0_64 = arith.constant 0 : index
      %105 = vector.load %arg6[%104, %c17_62, %c0_63, %c0_64] : memref<2x18x48x128xf32, #tpu.memory_space<vmem>>, vector<1x1x48x128xf32>
      %106 = vector.shape_cast %105 : vector<1x1x48x128xf32> to vector<1x48x128xf32>
      %107 = vector.shape_cast %103 : vector<1x48x128xf32> to vector<1x1x48x128xf32>
      tpu.vector_store %arg6[%104, %c17_62, %c0_63, %c0_64], %107 {strides = array<i32>} : memref<2x18x48x128xf32, #tpu.memory_space<vmem>>, vector<1x1x48x128xf32>,
    } else {
    }
    %c16_i32 = arith.constant 16 : i32
    %14 = arith.muli %arg1, %c16_i32 : i32
    %15 = tpu.assume_multiple %14, 16 : i32
    %c1_i32_8 = arith.constant 1 : i32
    %16 = arith.subi %14, %c1_i32_8 : i32
    %c0_i32_9 = arith.constant 0 : i32
    %17 = arith.maxsi %16, %c0_i32_9 : i32
    %c16_i32_10 = arith.constant 16 : i32
    %18 = arith.addi %14, %c16_i32_10 : i32
    %c15_i32 = arith.constant 15 : i32
    %19 = arith.minsi %18, %c15_i32 : i32
    %c0_i32_11 = arith.constant 0 : i32
    %c0_i32_12 = arith.constant 0 : i32
    %c0_i32_13 = arith.constant 0 : i32
    %20 = tpu.memref_slice %arg2[%arg0, %15, %c0_i32_12, %c0_i32_13] : memref<2x16x16x128xf32, #tpu.memory_space<any>> -> memref<1x16x16x128xf32, #tpu.memory_space<any>>
    %21 = tpu.memref_squeeze %20 : memref<1x16x16x128xf32, #tpu.memory_space<any>> -> memref<16x16x128xf32, #tpu.memory_space<any>>
    %c1_i32_14 = arith.constant 1 : i32
    %c16_i32_15 = arith.constant 16 : i32
    %c0_i32_16 = arith.constant 0 : i32
    %22 = tpu.memref_slice %arg6[%0, %c1_i32_14, %c16_i32_15, %c0_i32_16] : memref<2x18x48x128xf32, #tpu.memory_space<vmem>> -> memref<1x16x16x128xf32, #tpu.memory_space<vmem>>
    %23 = tpu.memref_squeeze %22 : memref<1x16x16x128xf32, #tpu.memory_space<vmem>> -> memref<16x16x128xf32, #tpu.memory_space<vmem>>
    %24 = tpu.memref_slice %arg7[%0, %c0_i32_11] : memref<2x3x!tpu.dma_semaphore, #tpu.memory_space<semaphore_mem>> -> memref<1x1x!tpu.dma_semaphore, #tpu.memory_space<semaphore_mem>>
    %25 = tpu.memref_squeeze %24 : memref<1x1x!tpu.dma_semaphore, #tpu.memory_space<semaphore_mem>> -> memref<!tpu.dma_semaphore, #tpu.memory_space<semaphore_mem>>
    tpu.wait_dma2 semaphore(%25 : memref<!tpu.dma_semaphore, #tpu.memory_space<semaphore_mem>>) src(%21 : memref<16x16x128xf32, #tpu.memory_space<any>>) dst(%23 : memref<16x16x128xf32, #tpu.memory_space<vmem>>)
    %c0_i32_17 = arith.constant 0 : i32
    %26 = arith.cmpi sgt, %arg1, %c0_i32_17 : i32
    %27 = arith.extui %26 : i1 to i32
    %c1_i32_18 = arith.constant 1 : i32
    %c0_i32_19 = arith.constant 0 : i32
    %28 = arith.cmpi ne, %27, %c0_i32_19 : i32
    scf.if %28 {
      %c0_i32_61 = arith.constant 0 : i32
      %c0_i32_62 = arith.constant 0 : i32
      %103 = tpu.memref_slice %arg2[%arg0, %17, %c0_i32_61, %c0_i32_62] : memref<2x16x16x128xf32, #tpu.memory_space<any>> -> memref<1x1x16x128xf32, #tpu.memory_space<any>>
      %104 = tpu.memref_squeeze %103 : memref<1x1x16x128xf32, #tpu.memory_space<any>> -> memref<1x16x128xf32, #tpu.memory_space<any>>
      %c0_i32_63 = arith.constant 0 : i32
      %c16_i32_64 = arith.constant 16 : i32
      %c0_i32_65 = arith.constant 0 : i32
      %105 = tpu.memref_slice %arg6[%0, %c0_i32_63, %c16_i32_64, %c0_i32_65] : memref<2x18x48x128xf32, #tpu.memory_space<vmem>> -> memref<1x1x16x128xf32, #tpu.memory_space<vmem>>
      %106 = tpu.memref_squeeze %105 : memref<1x1x16x128xf32, #tpu.memory_space<vmem>> -> memref<1x16x128xf32, #tpu.memory_space<vmem>>
      %107 = tpu.memref_slice %arg7[%0, %c1_i32_18] : memref<2x3x!tpu.dma_semaphore, #tpu.memory_space<semaphore_mem>> -> memref<1x1x!tpu.dma_semaphore, #tpu.memory_space<semaphore_mem>>
      %108 = tpu.memref_squeeze %107 : memref<1x1x!tpu.dma_semaphore, #tpu.memory_space<semaphore_mem>> -> memref<!tpu.dma_semaphore, #tpu.memory_space<semaphore_mem>>
      tpu.wait_dma2 semaphore(%108 : memref<!tpu.dma_semaphore, #tpu.memory_space<semaphore_mem>>) src(%104 : memref<1x16x128xf32, #tpu.memory_space<any>>) dst(%106 : memref<1x16x128xf32, #tpu.memory_space<vmem>>)
    } else {
    }
    %c0_i32_20 = arith.constant 0 : i32
    %29 = arith.cmpi slt, %arg1, %c0_i32_20 : i32
    %30 = arith.extui %29 : i1 to i32
    %c2_i32 = arith.constant 2 : i32
    %c0_i32_21 = arith.constant 0 : i32
    %31 = arith.cmpi ne, %30, %c0_i32_21 : i32
    scf.if %31 {
      %c0_i32_61 = arith.constant 0 : i32
      %c0_i32_62 = arith.constant 0 : i32
      %103 = tpu.memref_slice %arg2[%arg0, %19, %c0_i32_61, %c0_i32_62] : memref<2x16x16x128xf32, #tpu.memory_space<any>> -> memref<1x1x16x128xf32, #tpu.memory_space<any>>
      %104 = tpu.memref_squeeze %103 : memref<1x1x16x128xf32, #tpu.memory_space<any>> -> memref<1x16x128xf32, #tpu.memory_space<any>>
      %c17_i32 = arith.constant 17 : i32
      %c16_i32_63 = arith.constant 16 : i32
      %c0_i32_64 = arith.constant 0 : i32
      %105 = tpu.memref_slice %arg6[%0, %c17_i32, %c16_i32_63, %c0_i32_64] : memref<2x18x48x128xf32, #tpu.memory_space<vmem>> -> memref<1x1x16x128xf32, #tpu.memory_space<vmem>>
      %106 = tpu.memref_squeeze %105 : memref<1x1x16x128xf32, #tpu.memory_space<vmem>> -> memref<1x16x128xf32, #tpu.memory_space<vmem>>
      %107 = tpu.memref_slice %arg7[%0, %c2_i32] : memref<2x3x!tpu.dma_semaphore, #tpu.memory_space<semaphore_mem>> -> memref<1x1x!tpu.dma_semaphore, #tpu.memory_space<semaphore_mem>>
      %108 = tpu.memref_squeeze %107 : memref<1x1x!tpu.dma_semaphore, #tpu.memory_space<semaphore_mem>> -> memref<!tpu.dma_semaphore, #tpu.memory_space<semaphore_mem>>
      tpu.wait_dma2 semaphore(%108 : memref<!tpu.dma_semaphore, #tpu.memory_space<semaphore_mem>>) src(%104 : memref<1x16x128xf32, #tpu.memory_space<any>>) dst(%106 : memref<1x16x128xf32, #tpu.memory_space<vmem>>)
    } else {
    }
    %32 = arith.index_cast %0 : i32 to index
    %c0 = arith.constant 0 : index
    %c15 = arith.constant 15 : index
    %c0_22 = arith.constant 0 : index
    %33 = vector.load %arg6[%32, %c0, %c15, %c0_22] : memref<2x18x48x128xf32, #tpu.memory_space<vmem>>, vector<1x18x16x128xf32>
    %34 = vector.shape_cast %33 : vector<1x18x16x128xf32> to vector<18x16x128xf32>
    %35 = vector.extract_strided_slice %34 {offsets = [0, 0, 0], sizes = [16, 16, 128], strides = [1, 1, 1]} : vector<18x16x128xf32> to vector<16x16x128xf32>
    %36 = vector.shape_cast %35 : vector<16x16x128xf32> to vector<256x128xf32>
    %c0_23 = arith.constant 0 : index
    %c0_24 = arith.constant 0 : index
    %c0_25 = arith.constant 0 : index
    %37 = vector.load %arg3[%c0_23, %c0_24, %c0_25] : memref<9x128x128xf32, #tpu.memory_space<vmem>>, vector<1x128x128xf32>
    %38 = vector.shape_cast %37 : vector<1x128x128xf32> to vector<128x128xf32>
    %cst = arith.constant dense<0.000000e+00> : vector<256x128xf32>
    %39 = tpu.matmul %36, %38, %cst {dimension_numbers = #tpu.dot_dimension_numbers<[1], [0], [0], [1], [0, 0, 1, 1], [], []>} : vector<256x128xf32>, vector<128x128xf32>, vector<256x128xf32> -> vector<256x128xf32>
    %40 = vector.extract_strided_slice %34 {offsets = [1, 0, 0], sizes = [16, 16, 128], strides = [1, 1, 1]} : vector<18x16x128xf32> to vector<16x16x128xf32>
    %41 = vector.shape_cast %40 : vector<16x16x128xf32> to vector<256x128xf32>
    %c3 = arith.constant 3 : index
    %c0_26 = arith.constant 0 : index
    %c0_27 = arith.constant 0 : index
    %42 = vector.load %arg3[%c3, %c0_26, %c0_27] : memref<9x128x128xf32, #tpu.memory_space<vmem>>, vector<1x128x128xf32>
    %43 = vector.shape_cast %42 : vector<1x128x128xf32> to vector<128x128xf32>
    %cst_28 = arith.constant dense<0.000000e+00> : vector<256x128xf32>
    %44 = tpu.matmul %41, %43, %cst_28 {dimension_numbers = #tpu.dot_dimension_numbers<[1], [0], [0], [1], [0, 0, 1, 1], [], []>} : vector<256x128xf32>, vector<128x128xf32>, vector<256x128xf32> -> vector<256x128xf32>
    %45 = arith.addf %39, %44 : vector<256x128xf32>
    %46 = vector.extract_strided_slice %34 {offsets = [2, 0, 0], sizes = [16, 16, 128], strides = [1, 1, 1]} : vector<18x16x128xf32> to vector<16x16x128xf32>
    %47 = vector.shape_cast %46 : vector<16x16x128xf32> to vector<256x128xf32>
    %c6 = arith.constant 6 : index
    %c0_29 = arith.constant 0 : index
    %c0_30 = arith.constant 0 : index
    %48 = vector.load %arg3[%c6, %c0_29, %c0_30] : memref<9x128x128xf32, #tpu.memory_space<vmem>>, vector<1x128x128xf32>
    %49 = vector.shape_cast %48 : vector<1x128x128xf32> to vector<128x128xf32>
    %cst_31 = arith.constant dense<0.000000e+00> : vector<256x128xf32>
    %50 = tpu.matmul %47, %49, %cst_31 {dimension_numbers = #tpu.dot_dimension_numbers<[1], [0], [0], [1], [0, 0, 1, 1], [], []>} : vector<256x128xf32>, vector<128x128xf32>, vector<256x128xf32> -> vector<256x128xf32>
    %51 = arith.addf %45, %50 : vector<256x128xf32>
    %52 = arith.index_cast %0 : i32 to index
    %c0_32 = arith.constant 0 : index
    %c16 = arith.constant 16 : index
    %c0_33 = arith.constant 0 : index
    %53 = vector.load %arg6[%52, %c0_32, %c16, %c0_33] : memref<2x18x48x128xf32, #tpu.memory_space<vmem>>, vector<1x18x16x128xf32>
    %54 = vector.shape_cast %53 : vector<1x18x16x128xf32> to vector<18x16x128xf32>
    %55 = vector.extract_strided_slice %54 {offsets = [0, 0, 0], sizes = [16, 16, 128], strides = [1, 1, 1]} : vector<18x16x128xf32> to vector<16x16x128xf32>
    %56 = vector.shape_cast %55 : vector<16x16x128xf32> to vector<256x128xf32>
    %c1 = arith.constant 1 : index
    %c0_34 = arith.constant 0 : index
    %c0_35 = arith.constant 0 : index
    %57 = vector.load %arg3[%c1, %c0_34, %c0_35] : memref<9x128x128xf32, #tpu.memory_space<vmem>>, vector<1x128x128xf32>
    %58 = vector.shape_cast %57 : vector<1x128x128xf32> to vector<128x128xf32>
    %cst_36 = arith.constant dense<0.000000e+00> : vector<256x128xf32>
    %59 = tpu.matmul %56, %58, %cst_36 {dimension_numbers = #tpu.dot_dimension_numbers<[1], [0], [0], [1], [0, 0, 1, 1], [], []>} : vector<256x128xf32>, vector<128x128xf32>, vector<256x128xf32> -> vector<256x128xf32>
    %60 = arith.addf %51, %59 : vector<256x128xf32>
    %61 = vector.extract_strided_slice %54 {offsets = [1, 0, 0], sizes = [16, 16, 128], strides = [1, 1, 1]} : vector<18x16x128xf32> to vector<16x16x128xf32>
    %62 = vector.shape_cast %61 : vector<16x16x128xf32> to vector<256x128xf32>
    %c4 = arith.constant 4 : index
    %c0_37 = arith.constant 0 : index
    %c0_38 = arith.constant 0 : index
    %63 = vector.load %arg3[%c4, %c0_37, %c0_38] : memref<9x128x128xf32, #tpu.memory_space<vmem>>, vector<1x128x128xf32>
    %64 = vector.shape_cast %63 : vector<1x128x128xf32> to vector<128x128xf32>
    %cst_39 = arith.constant dense<0.000000e+00> : vector<256x128xf32>
    %65 = tpu.matmul %62, %64, %cst_39 {dimension_numbers = #tpu.dot_dimension_numbers<[1], [0], [0], [1], [0, 0, 1, 1], [], []>} : vector<256x128xf32>, vector<128x128xf32>, vector<256x128xf32> -> vector<256x128xf32>
    %66 = arith.addf %60, %65 : vector<256x128xf32>
    %67 = vector.extract_strided_slice %54 {offsets = [2, 0, 0], sizes = [16, 16, 128], strides = [1, 1, 1]} : vector<18x16x128xf32> to vector<16x16x128xf32>
    %68 = vector.shape_cast %67 : vector<16x16x128xf32> to vector<256x128xf32>
    %c7 = arith.constant 7 : index
    %c0_40 = arith.constant 0 : index
    %c0_41 = arith.constant 0 : index
    %69 = vector.load %arg3[%c7, %c0_40, %c0_41] : memref<9x128x128xf32, #tpu.memory_space<vmem>>, vector<1x128x128xf32>
    %70 = vector.shape_cast %69 : vector<1x128x128xf32> to vector<128x128xf32>
    %cst_42 = arith.constant dense<0.000000e+00> : vector<256x128xf32>
    %71 = tpu.matmul %68, %70, %cst_42 {dimension_numbers = #tpu.dot_dimension_numbers<[1], [0], [0], [1], [0, 0, 1, 1], [], []>} : vector<256x128xf32>, vector<128x128xf32>, vector<256x128xf32> -> vector<256x128xf32>
    %72 = arith.addf %66, %71 : vector<256x128xf32>
    %73 = arith.index_cast %0 : i32 to index
    %c0_43 = arith.constant 0 : index
    %c17 = arith.constant 17 : index
    %c0_44 = arith.constant 0 : index
    %74 = vector.load %arg6[%73, %c0_43, %c17, %c0_44] : memref<2x18x48x128xf32, #tpu.memory_space<vmem>>, vector<1x18x16x128xf32>
    %75 = vector.shape_cast %74 : vector<1x18x16x128xf32> to vector<18x16x128xf32>
    %76 = vector.extract_strided_slice %75 {offsets = [0, 0, 0], sizes = [16, 16, 128], strides = [1, 1, 1]} : vector<18x16x128xf32> to vector<16x16x128xf32>
    %77 = vector.shape_cast %76 : vector<16x16x128xf32> to vector<256x128xf32>
    %c2 = arith.constant 2 : index
    %c0_45 = arith.constant 0 : index
    %c0_46 = arith.constant 0 : index
    %78 = vector.load %arg3[%c2, %c0_45, %c0_46] : memref<9x128x128xf32, #tpu.memory_space<vmem>>, vector<1x128x128xf32>
    %79 = vector.shape_cast %78 : vector<1x128x128xf32> to vector<128x128xf32>
    %cst_47 = arith.constant dense<0.000000e+00> : vector<256x128xf32>
    %80 = tpu.matmul %77, %79, %cst_47 {dimension_numbers = #tpu.dot_dimension_numbers<[1], [0], [0], [1], [0, 0, 1, 1], [], []>} : vector<256x128xf32>, vector<128x128xf32>, vector<256x128xf32> -> vector<256x128xf32>
    %81 = arith.addf %72, %80 : vector<256x128xf32>
    %82 = vector.extract_strided_slice %75 {offsets = [1, 0, 0], sizes = [16, 16, 128], strides = [1, 1, 1]} : vector<18x16x128xf32> to vector<16x16x128xf32>
    %83 = vector.shape_cast %82 : vector<16x16x128xf32> to vector<256x128xf32>
    %c5 = arith.constant 5 : index
    %c0_48 = arith.constant 0 : index
    %c0_49 = arith.constant 0 : index
    %84 = vector.load %arg3[%c5, %c0_48, %c0_49] : memref<9x128x128xf32, #tpu.memory_space<vmem>>, vector<1x128x128xf32>
    %85 = vector.shape_cast %84 : vector<1x128x128xf32> to vector<128x128xf32>
    %cst_50 = arith.constant dense<0.000000e+00> : vector<256x128xf32>
    %86 = tpu.matmul %83, %85, %cst_50 {dimension_numbers = #tpu.dot_dimension_numbers<[1], [0], [0], [1], [0, 0, 1, 1], [], []>} : vector<256x128xf32>, vector<128x128xf32>, vector<256x128xf32> -> vector<256x128xf32>
    %87 = arith.addf %81, %86 : vector<256x128xf32>
    %88 = vector.extract_strided_slice %75 {offsets = [2, 0, 0], sizes = [16, 16, 128], strides = [1, 1, 1]} : vector<18x16x128xf32> to vector<16x16x128xf32>
    %89 = vector.shape_cast %88 : vector<16x16x128xf32> to vector<256x128xf32>
    %c8 = arith.constant 8 : index
    %c0_51 = arith.constant 0 : index
    %c0_52 = arith.constant 0 : index
    %90 = vector.load %arg3[%c8, %c0_51, %c0_52] : memref<9x128x128xf32, #tpu.memory_space<vmem>>, vector<1x128x128xf32>
    %91 = vector.shape_cast %90 : vector<1x128x128xf32> to vector<128x128xf32>
    %cst_53 = arith.constant dense<0.000000e+00> : vector<256x128xf32>
    %92 = tpu.matmul %89, %91, %cst_53 {dimension_numbers = #tpu.dot_dimension_numbers<[1], [0], [0], [1], [0, 0, 1, 1], [], []>} : vector<256x128xf32>, vector<128x128xf32>, vector<256x128xf32> -> vector<256x128xf32>
    %93 = arith.addf %87, %92 : vector<256x128xf32>
    %c0_54 = arith.constant 0 : index
    %c0_55 = arith.constant 0 : index
    %94 = vector.load %arg4[%c0_54, %c0_55] : memref<1x128xf32, #tpu.memory_space<vmem>>, vector<1x128xf32>
    %95 = vector.broadcast %94 : vector<1x128xf32> to vector<256x128xf32>
    %96 = arith.addf %93, %95 : vector<256x128xf32>
    %cst_56 = arith.constant 0.000000e+00 : f32
    %97 = vector.broadcast %cst_56 : f32 to vector<256x128xf32>
    %98 = arith.maximumf %96, %97 : vector<256x128xf32>
    %99 = vector.shape_cast %98 : vector<256x128xf32> to vector<16x16x128xf32>
    %c0_57 = arith.constant 0 : index
    %c0_58 = arith.constant 0 : index
    %c0_59 = arith.constant 0 : index
    %c0_60 = arith.constant 0 : index
    %100 = vector.load %arg5[%c0_57, %c0_58, %c0_59, %c0_60] : memref<1x16x16x128xf32, #tpu.memory_space<vmem>>, vector<1x16x16x128xf32>
    %101 = vector.shape_cast %100 : vector<1x16x16x128xf32> to vector<16x16x128xf32>
    %102 = vector.shape_cast %99 : vector<16x16x128xf32> to vector<1x16x16x128xf32>
    tpu.vector_store %arg5[%c0_57, %c0_58, %c0_59, %c0_60], %102 {strides = array<i32>} : memref<1x16x16x128xf32, #tpu.memory_space<vmem>>, vector<1x16x16x128xf32>,
    return
  }
  func.func @transform_1(%arg0: i32, %arg1: i32) -> (i32, i32, i32) {
    %c0_i32 = arith.constant 0 : i32
    %c0_i32_0 = arith.constant 0 : i32
    %c0_i32_1 = arith.constant 0 : i32
    %c0_i32_2 = arith.constant 0 : i32
    return %c0_i32, %c0_i32_0, %c0_i32_1 : i32, i32, i32
  }
  func.func @transform_2(%arg0: i32, %arg1: i32) -> (i32, i32) {
    %c0_i32 = arith.constant 0 : i32
    %c0_i32_0 = arith.constant 0 : i32
    %c0_i32_1 = arith.constant 0 : i32
    return %c0_i32, %c0_i32_0 : i32, i32
  }
  func.func @transform_3(%arg0: i32, %arg1: i32) -> (i32, i32, i32, i32) {
    %c0_i32 = arith.constant 0 : i32
    %c0_i32_0 = arith.constant 0 : i32
    %c0_i32_1 = arith.constant 0 : i32
    return %arg0, %arg1, %c0_i32, %c0_i32_0 : i32, i32, i32, i32
  }
}

</mosaic_0001>

<bundles_post_ra>
// kernel: tpu_custom_call.1
= control target key start
LH: loop header
LB: loop body
LE: loop exit
PB: predicated region body
PF: predicated region fallthrough
CT: control target
= control target key end

     0   :  { %8 = vsyncpa [#allocation5], 0  ;;  %s5934_s0 = inlined_call_operand.hbm [shape: f32[2,16,16,128], index: 0, kind: input, shape index: {}]   ;;  %s5935_s1 = inlined_call_operand.hbm [shape: f32[9,128,128], index: 1, kind: input, shape index: {}]   ;;  %s5936_s2 = inlined_call_operand.vmem [shape: f32[1,128], index: 2, kind: input, shape index: {}]   ;;  %s5937_s3 = inlined_call_operand.hbm [shape: f32[2,16,16,128], index: 3, kind: output, shape index: {}]  }
   0x1   :  { %9 = vsyncpa [#allocation6], 0 }
   0x2   :  { %11 = vsyncpa [#allocation6 + $0x1], 0  ;;  %s4783_s12 = smov 0   ;;  %s4785_s13 = smov 0  }
   0x3   :  { %s4787_s14 = smov 0   ;;  %s4789_s15 = smov 0  }
   0x4   :  { %s4791_s16 = smov 0   ;;  %s4793_s17 = smov 0  }
   0x5 LB: > { %s3312_s18 = sadd.s32 4294967295, %s4750_s17   ;;  %s3313_s19 = sadd.s32 4294967294, %s4750_s17   ;;  %s4750_s17 = sphi %s4793_s17, %s17_s17   ;;  %s4746_s16 = sphi %s4791_s16, %s6036_s16   ;;  %s4742_s15 = sphi %s4789_s15, %s6035_s15   ;;  %s4738_s14 = sphi %s4787_s14, %s6034_s14   ;;  %s4734_s13 = sphi %s4785_s13, %s6033_s13   ;;  %s4730_s12 = sphi %s4783_s12, %s6032_s12  }
   0x6   : > { %s29_s20 = sadd.s32 1, %s4746_s16  ;;  %s80_s21 = sadd.s32 1, %s4738_s14 }
   0x7   : > { %p31_p0 = scmp.ge.s32.totalorder %s29_s20, 2  ;;  %p90_p1 = scmp.ne.s32.totalorder %s4738_s14, %s4734_s13 }
   0x8   : > { %p91_p2 = scmp.eq.s32.totalorder %s3312_s18, 1  ;;  %p96_p3 = scmp.ne.s32.totalorder %s4734_s13, %s4730_s12 }
   0x9   : > { %s6038_s20 = smov (%p31_p0, %s29_s20), 0  ;;  %p97_p5 = scmp.eq.s32.totalorder %s3313_s19, 1 }
   0xa   : > { %p4823_p4 = por %p91_p2, %p90_p1  ;;  %s75_s23 = ssub.s32 %s4746_s16, %s6038_s20 }
   0xb   : > { %p3314_p6 = scmp.ge.s32.totalorder %s4750_s17, 1  ;;  %p78_p7 = scmp.eq.s32.totalorder %s75_s23, 0 }
   0xc   : > { %p4830_p8 = por %p97_p5, %p96_p3  ;;  %p104_p9 = scmp.lt.s32.totalorder %s4750_s17, 3 }
   0xd   : > { %s4836_s25 = scalar_select %p78_p7, %s4738_s14, %s80_s21  }
   0xe   : > { %p4838_p10 = pnand %p3314_p6, %p104_p9  ;;  %p4842_p11 = scmp.eq.s32.totalorder %s3312_s18, 0 }
   0xf   : > { %s4752_s28 = smov [#allocation4]  }
  0x10   : > { %p4551_p12 = pneg %p4838_p10  ;;  %s116_s29 = sshll.u32 %s4752_s28, 4  ;;  %s117_s29 = int_to_ptr.vmem [resolvable:$true] %s116_s29 }
  0x11   : > { %s4631_s30 = scalar_lea.vmem %s117_s29, 18432  ;;  %p4639_p5 = scmp.lt.s32.totalorder %s117_s29, %s117_s29 }
  0x12   : > { %p4552_p13 = pnand %p4842_p11, %p4551_p12  ;;  %p4632_p1 = scmp.ne.s32.totalorder %s117_s29, %s4631_s30 }
  0x13   : > { %p4640_p6 = scmp.lt.s32.totalorder %s4631_s30, %s4631_s30 }
  0x14   : > { %p4622_p0 = pneg %p4552_p13 }
  0x15   : > { %p4641_p7 = por %p4640_p6, %p4639_p5 }
  0x16   : > { %p4634_p2 = pnand %p4632_p1, %p4622_p0 }
  0x18   : > { %p4635_p3 = pneg %p4634_p2 }
  0x1a   : > { %p4642_p9 = pnand %p4641_p7, %p4635_p3 }
  0x1c   : > { %4645 = shalt.err (!%p4642_p9)
}
  0x1d   : > { %s4753_s4 = smov 128   ;;  %s4754_s5 = smov 8  }
  0x1e   : > { %4554 = dma.hbm_to_vmem [thread:$0]  (!%p4552_p13), %s5935_s1, 18432, %s117_s29, [#allocation5], %s4753_s4, %s4753_s4, %s4754_s5  }
  0x1f   : > { %135 = sbr.rel (%p4838_p10) target bundleno = 632 (0x278), region = 28 }
  0x24   : > { %4719 = dma.done.wait (%p4842_p11), [#allocation5], 18432  }
  0x25   : > { %4721 = vsyncadd (%p4842_p11), [#allocation5], 4294948864  ;;  %s149_s8 = sand.u32 1, %s4734_s13   ;;  %s3351_s9 = sshll.u32 %s4742_s15, 12 }
  0x26   : > { %s4863_s10 = sshll.u32 %s149_s8, 8  ;;  %s4870_s19 = scalar_lea.hbm %s5934_s0, %s3351_s9 }
  0x27   : > { %s4755_s21 = smov [#allocation2]   ;;  %s4646_s27 = scalar_lea.hbm %s4870_s19, 4096 }
  0x28   : > { %s3198_s23 = scalar_lea.vmem %s4755_s21, 64  ;;  %p4647_p10 = scmp.ne.s32.totalorder %s4870_s19, %s4646_s27 }
  0x29   : > { %s176_s26 = sshll.u32 %s3198_s23, 4  ;;  %s4648_s30 = scalar_lea.hbm %s5934_s0, 8192  ;;  %s177_s26 = int_to_ptr.vmem [resolvable:$true] %s176_s26 }
  0x2a   : > { %p4649_p11 = scmp.lt.s32.totalorder %s4870_s19, %s5934_s0  ;;  %p4650_p12 = scmp.lt.s32.totalorder %s4648_s30, %s4646_s27 }
  0x2c   : > { %p4651_p13 = por %p4650_p12, %p4649_p11 }
  0x2e   : > { %p4652_p0 = pnand %p4651_p13, %p4647_p10 }
  0x30   : > { %4655 = shalt.err (!%p4652_p0)  }
  0x31   : > { %s4656_s6 = scalar_lea.vmem %s177_s26, 4096  ;;  %s4658_s7 = sshll.u32 %s4755_s21, 4  ;;  %s4659_s7 = int_to_ptr.vmem [resolvable:$false] %s4658_s7 }
  0x32   : > { %p4657_p1 = scmp.ne.s32.totalorder %s177_s26, %s4656_s6  ;;  %s4660_s11 = scalar_lea.vmem %s4659_s7, 27648 }
  0x33   : > { %p4661_p2 = scmp.lt.s32.totalorder %s177_s26, %s4659_s7  ;;  %p4662_p3 = scmp.lt.s32.totalorder %s4660_s11, %s4656_s6 }
  0x35   : > { %p4663_p5 = por %p4662_p3, %p4661_p2 }
  0x37   : > { %p4664_p6 = pnand %p4663_p5, %p4657_p1 }
  0x39   : > { %4667 = shalt.err (!%p4664_p6)  }
  0x3a   : > { %s4756_s18 = smov 256   ;;  %s4757_s23 = smov 768   ;;  %v4759_v0 = vmov 0.0  }
  0x3b   : > { %s4758_s28 = smov 16  }
  0x3c   : > { %179 = dma.hbm_to_vmem [thread:$0]  %s4870_s19, 4096, %s177_s26, [#allocation3], %s4756_s18, %s4757_s23, %s4758_s28 }
  0x3d   : > { %306 = vst [vmem:[#allocation2 + $0x38] sm:$0xff] %v4759_v0  ;;  %308 = vst [vmem:[#allocation2 + $0x68] sm:$0xff] %v4759_v0  ;;  %s4883_s19 = scalar_lea.vmem [#allocation7], %s4863_s10 }
  0x3e   : > { %310 = vst [vmem:[#allocation2 + $0x98] sm:$0xff] %v4759_v0  ;;  %312 = vst [vmem:[#allocation2 + $0xc8] sm:$0xff] %v4759_v0 }
  0x3f   : > { %314 = vst [vmem:[#allocation2 + $0xf8] sm:$0xff] %v4759_v0  ;;  %316 = vst [vmem:[#allocation2 + $0x128] sm:$0xff] %v4759_v0 }
  0x40   : > { %318 = vst [vmem:[#allocation2 + $0x158] sm:$0xff] %v4759_v0  ;;  %320 = vst [vmem:[#allocation2 + $0x188] sm:$0xff] %v4759_v0 }
  0x41   : > { %322 = vst [vmem:[#allocation2 + $0x1b8] sm:$0xff] %v4759_v0  ;;  %324 = vst [vmem:[#allocation2 + $0x1e8] sm:$0xff] %v4759_v0 }
  0x42   : > { %326 = vst [vmem:[#allocation2 + $0x218] sm:$0xff] %v4759_v0  ;;  %328 = vst [vmem:[#allocation2 + $0x248] sm:$0xff] %v4759_v0 }
  0x43   : > { %330 = vst [vmem:[#allocation2 + $0x278] sm:$0xff] %v4759_v0  ;;  %332 = vst [vmem:[#allocation2 + $0x2a8] sm:$0xff] %v4759_v0 }
  0x44   : > { %334 = vst [vmem:[#allocation2 + $0x2d8] sm:$0xff] %v4759_v0  ;;  %336 = vst [vmem:[#allocation2 + $0x308] sm:$0xff] %v4759_v0 }
  0x45   : > { %377 = vst [vmem:[#allocation2 + $0x50] sm:$0xff] %v4759_v0  ;;  %379 = vst [vmem:[#allocation2 + $0x80] sm:$0xff] %v4759_v0 }
  0x46   : > { %381 = vst [vmem:[#allocation2 + $0xb0] sm:$0xff] %v4759_v0  ;;  %383 = vst [vmem:[#allocation2 + $0xe0] sm:$0xff] %v4759_v0 }
  0x47   : > { %385 = vst [vmem:[#allocation2 + $0x110] sm:$0xff] %v4759_v0  ;;  %387 = vst [vmem:[#allocation2 + $0x140] sm:$0xff] %v4759_v0 }
  0x48   : > { %389 = vst [vmem:[#allocation2 + $0x170] sm:$0xff] %v4759_v0  ;;  %391 = vst [vmem:[#allocation2 + $0x1a0] sm:$0xff] %v4759_v0 }
  0x49   : > { %393 = vst [vmem:[#allocation2 + $0x1d0] sm:$0xff] %v4759_v0  ;;  %395 = vst [vmem:[#allocation2 + $0x200] sm:$0xff] %v4759_v0 }
  0x4a   : > { %397 = vst [vmem:[#allocation2 + $0x230] sm:$0xff] %v4759_v0  ;;  %399 = vst [vmem:[#allocation2 + $0x260] sm:$0xff] %v4759_v0 }
  0x4b   : > { %401 = vst [vmem:[#allocation2 + $0x290] sm:$0xff] %v4759_v0  ;;  %403 = vst [vmem:[#allocation2 + $0x2c0] sm:$0xff] %v4759_v0 }
  0x4c   : > { %405 = vst [vmem:[#allocation2 + $0x2f0] sm:$0xff] %v4759_v0  ;;  %407 = vst [vmem:[#allocation2 + $0x320] sm:$0xff] %v4759_v0 }
  0x4d   : > { %449 = vst [vmem:[#allocation2 + $0x10] sm:$0xff] %v4759_v0  ;;  %450 = vst [vmem:[#allocation2 + $0x18] sm:$0xff] %v4759_v0 }
  0x4e   : > { %3335 = vst [vmem:[#allocation2 + $0x340] sm:$0xff] %v4759_v0  ;;  %3336 = vst [vmem:[#allocation2 + $0x348] sm:$0xff] %v4759_v0 }
  0x4f   : > { %448 = vst [vmem:[#allocation2 + $0x8] sm:$0xff] %v4759_v0  ;;  %451 = vst [vmem:[#allocation2 + $0x20] sm:$0xff] %v4759_v0 }
  0x50   : > { %3334 = vst [vmem:[#allocation2 + $0x338] sm:$0xff] %v4759_v0  ;;  %3337 = vst [vmem:[#allocation2 + $0x350] sm:$0xff] %v4759_v0 }
  0x51   : > { %4722 = dma.done.wait [#allocation3], 4096 }
  0x52   : > { %4723 = vsyncadd [#allocation3], 4294963200  ;;  %v559_v1 = vld [vmem:[#allocation4 + $0x1f8] sm:$0xff]  ;;  %v558_v2 = vld [vmem:[#allocation4 + $0x1f0] sm:$0xff]  ;;  %s3120_s26 = sshll.u32 %s4883_s19, 4  ;;  %s5881_s30 = scalar_lea.hbm %s5937_s3, %s3351_s9  ;;  %s5884_s26 = int_to_ptr.vmem [resolvable:$true] %s3120_s26 }
  0x53   : > { %4513 = vmatprep.subr.mxu1 %v559_v1  ;;  %3793 = vmatprep.subr.mxu0 %v559_v1  ;;  %v557_v3 = vld [vmem:[#allocation4 + $0x1e8] sm:$0xff]  ;;  %v556_v4 = vld [vmem:[#allocation4 + $0x1e0] sm:$0xff]  ;;  %v555_v5 = vld [vmem:[#allocation4 + $0x1d8] sm:$0xff]  ;;  %s5889_s4 = scalar_lea.sflag [#allocation6], %s149_s8  ;;  %s4668_s5 = scalar_lea.vmem %s5884_s26, 4096 }
  0x54   : > { %4529 = vmatpush3.msra.mxu1 %v559_v1  ;;  %3794 = vmatpush3.msra.mxu0 %v559_v1  ;;  %v554_v6 = vld [vmem:[#allocation4 + $0x1d0] sm:$0xff]  ;;  %v553_v7 = vld [vmem:[#allocation4 + $0x1c8] sm:$0xff]  ;;  %v552_v8 = vld [vmem:[#allocation4 + $0x1c0] sm:$0xff]  ;;  %p4669_p7 = scmp.ne.s32.totalorder %s5884_s26, %s4668_s5  ;;  %s4760_s15 = smov [#allocation7]  }
  0x55   : > { %4514 = vmatprep.subr.mxu1 %v558_v2  ;;  %3795 = vmatprep.subr.mxu0 %v558_v2  ;;  %v551_v9 = vld [vmem:[#allocation4 + $0x1b8] sm:$0xff]  ;;  %v550_v10 = vld [vmem:[#allocation4 + $0x1b0] sm:$0xff]  ;;  %v549_v11 = vld [vmem:[#allocation4 + $0x1a8] sm:$0xff]  ;;  %s4672_s6 = sshll.u32 %s4760_s15, 4  ;;  %s4673_s6 = int_to_ptr.vmem [resolvable:$false] %s4672_s6 }
  0x56   : > { %4530 = vmatpush3.msra.mxu1 %v558_v2  ;;  %3796 = vmatpush3.msra.mxu0 %v558_v2  ;;  %v548_v12 = vld [vmem:[#allocation4 + $0x1a0] sm:$0xff]  ;;  %v547_v13 = vld [vmem:[#allocation4 + $0x198] sm:$0xff]  ;;  %v546_v14 = vld [vmem:[#allocation4 + $0x190] sm:$0xff]  ;;  %p4670_p9 = pnand %p4669_p7, %p4823_p4  ;;  %s4674_s9 = scalar_lea.vmem %s4673_s6, 8192 }
  0x57   : > { %4515 = vmatprep.subr.mxu1 %v557_v3  ;;  %3797 = vmatprep.subr.mxu0 %v557_v3  ;;  %v545_v15 = vld [vmem:[#allocation4 + $0x188] sm:$0xff]  ;;  %v544_v16 = vld [vmem:[#allocation4 + $0x180] sm:$0xff]  ;;  %v542_v20 = vld [vmem:[#allocation4 + $0x78] sm:$0xff]  ;;  %p4675_p11 = scmp.lt.s32.totalorder %s5884_s26, %s4673_s6  ;;  %p4676_p12 = scmp.lt.s32.totalorder %s4674_s9, %s4668_s5 }
  0x58   : > { %4531 = vmatpush3.msra.mxu1 %v557_v3  ;;  %3798 = vmatpush3.msra.mxu0 %v557_v3  ;;  %v4885_v17 = vld [vmem:[#allocation2 + $0x1bf] sm:$0xff]  ;;  %v4889_v19 = vld [vmem:[#allocation2 + $0x1c7] sm:$0xff]  ;;  %v541_v23 = vld [vmem:[#allocation4 + $0x70] sm:$0xff]  ;;  %p4671_p10 = pneg %p4670_p9 }
  0x59   : > { %4516 = vmatprep.subr.mxu1 %v556_v4  ;;  %3799 = vmatprep.subr.mxu0 %v556_v4  ;;  %v4887_v18 = vld [vmem:[#allocation2 + $0x3f] sm:$0xff]  ;;  %v4892_v21 = vld [vmem:[#allocation2 + $0x47] sm:$0xff]  ;;  %v4896_v24 = vld [vmem:[#allocation2 + $0x1ef] sm:$0xff]  ;;  %p4677_p13 = por %p4676_p12, %p4675_p11 }
  0x5a   : > { %4532 = vmatpush3.msra.mxu1 %v556_v4  ;;  %3800 = vmatpush3.msra.mxu0 %v556_v4  ;;  %v1026_v22 = vld [vmem:[#allocation4 + $0x378] sm:$0xff]  ;;  %v1025_v25 = vld [vmem:[#allocation4 + $0x370] sm:$0xff]  ;;  %v540_v28 = vld [vmem:[#allocation4 + $0x68] sm:$0xff] }
  0x5b   : > { %4517 = vmatprep.subr.mxu1 %v555_v5  ;;  %3801 = vmatprep.subr.mxu0 %v555_v5  ;;  %v4899_v26 = vld [vmem:[#allocation2 + $0x6f] sm:$0xff]  ;;  %v4901_v27 = vld [vmem:[#allocation2 + $0x1f7] sm:$0xff]  ;;  %v539_v31 = vld [vmem:[#allocation4 + $0x60] sm:$0xff]  ;;  %p4678_p0 = pnand %p4677_p13, %p4671_p10 }
  0x5c   : > { %4533 = vmatpush3.msra.mxu1 %v555_v5  ;;  %3802 = vmatpush3.msra.mxu0 %v555_v5  ;;  %v4904_v29 = vld [vmem:[#allocation2 + $0x77] sm:$0xff]  ;;  %v1024_v30 = vld [vmem:[#allocation4 + $0x368] sm:$0xff]  ;;  %v4908_v32 = vld [vmem:[#allocation2 + $0x21f] sm:$0xff] }
  0x5d   : > { %4518 = vmatprep.subr.mxu1 %v554_v6  ;;  %3803 = vmatprep.subr.mxu0 %v554_v6  ;;  %v1023_v33 = vld [vmem:[#allocation4 + $0x360] sm:$0xff]  ;;  %v538_v36 = vld [vmem:[#allocation4 + $0x58] sm:$0xff]  ;;  %v537_v39 = vld [vmem:[#allocation4 + $0x50] sm:$0xff] }
  0x5e   : > { %4534 = vmatpush3.msra.mxu1 %v554_v6  ;;  %3804 = vmatpush3.msra.mxu0 %v554_v6  ;;  %v4911_v34 = vld [vmem:[#allocation2 + $0x9f] sm:$0xff]  ;;  %v4913_v35 = vld [vmem:[#allocation2 + $0x227] sm:$0xff]  ;;  %v4920_v40 = vld [vmem:[#allocation2 + $0x24f] sm:$0xff] }
  0x5f   : > { %4519 = vmatprep.subr.mxu1 %v553_v7  ;;  %3805 = vmatprep.subr.mxu0 %v553_v7  ;;  %v4916_v37 = vld [vmem:[#allocation2 + $0xa7] sm:$0xff]  ;;  %v1022_v38 = vld [vmem:[#allocation4 + $0x358] sm:$0xff]  ;;  %v1021_v41 = vld [vmem:[#allocation4 + $0x350] sm:$0xff] }
  0x60   : > { %4535 = vmatpush3.msra.mxu1 %v553_v7  ;;  %3806 = vmatpush3.msra.mxu0 %v553_v7  ;;  %v4923_v42 = vld [vmem:[#allocation2 + $0xcf] sm:$0xff]  ;;  %v4925_v43 = vld [vmem:[#allocation2 + $0x257] sm:$0xff]  ;;  %v535_v47 = vld [vmem:[#allocation4 + $0x40] sm:$0xff] }
  0x61   : > { %4520 = vmatprep.subr.mxu1 %v552_v8  ;;  %3807 = vmatprep.subr.mxu0 %v552_v8  ;;  %v536_v44 = vld [vmem:[#allocation4 + $0x48] sm:$0xff]  ;;  %v4928_v45 = vld [vmem:[#allocation2 + $0xd7] sm:$0xff]  ;;  %v4932_v48 = vld [vmem:[#allocation2 + $0x27f] sm:$0xff] }
  0x62   : > { %4536 = vmatpush3.msra.mxu1 %v552_v8  ;;  %3808 = vmatpush3.msra.mxu0 %v552_v8  ;;  %v1020_v46 = vld [vmem:[#allocation4 + $0x348] sm:$0xff]  ;;  %v1019_v49 = vld [vmem:[#allocation4 + $0x340] sm:$0xff]  ;;  %v534_v52 = vld [vmem:[#allocation4 + $0x38] sm:$0xff] }
  0x63   : > { %4521 = vmatprep.subr.mxu1 %v551_v9  ;;  %3809 = vmatprep.subr.mxu0 %v551_v9  ;;  %v4935_v50 = vld [vmem:[#allocation2 + $0xff] sm:$0xff]  ;;  %v4937_v51 = vld [vmem:[#allocation2 + $0x287] sm:$0xff]  ;;  %v533_v55 = vld [vmem:[#allocation4 + $0x30] sm:$0xff] }
  0x64   : > { %4537 = vmatpush3.msra.mxu1 %v551_v9  ;;  %3810 = vmatpush3.msra.mxu0 %v551_v9  ;;  %v4940_v53 = vld [vmem:[#allocation2 + $0x107] sm:$0xff]  ;;  %v1018_v54 = vld [vmem:[#allocation4 + $0x338] sm:$0xff]  ;;  %v4944_v56 = vld [vmem:[#allocation2 + $0x2af] sm:$0xff] }
  0x65   : > { %4522 = vmatprep.subr.mxu1 %v550_v10  ;;  %3811 = vmatprep.subr.mxu0 %v550_v10  ;;  %v1017_v57 = vld [vmem:[#allocation4 + $0x330] sm:$0xff]  ;;  %v532_v60 = vld [vmem:[#allocation4 + $0x28] sm:$0xff]  ;;  %v531_v63 = vld [vmem:[#allocation4 + $0x20] sm:$0xff] }
  0x66   : > { %4538 = vmatpush3.msra.mxu1 %v550_v10  ;;  %3812 = vmatpush3.msra.mxu0 %v550_v10  ;;  %v4947_v58 = vld [vmem:[#allocation2 + $0x12f] sm:$0xff]  ;;  %v4949_v59 = vld [vmem:[#allocation2 + $0x2b7] sm:$0xff]  ;;  %v4956_v0 = vld [vmem:[#allocation2 + $0x2df] sm:$0xff] }
  0x67   : > { %4523 = vmatprep.subr.mxu1 %v549_v11  ;;  %3813 = vmatprep.subr.mxu0 %v549_v11  ;;  %v4952_v61 = vld [vmem:[#allocation2 + $0x137] sm:$0xff]  ;;  %v1016_v62 = vld [vmem:[#allocation4 + $0x328] sm:$0xff]  ;;  %v1015_v1 = vld [vmem:[#allocation4 + $0x320] sm:$0xff] }
  0x68   : > { %4539 = vmatpush3.msra.mxu1 %v549_v11  ;;  %3814 = vmatpush3.msra.mxu0 %v549_v11  ;;  %v4959_v2 = vld [vmem:[#allocation2 + $0x15f] sm:$0xff]  ;;  %v4961_v3 = vld [vmem:[#allocation2 + $0x2e7] sm:$0xff]  ;;  %v529_v7 = vld [vmem:[#allocation4 + $0x10] sm:$0xff] }
  0x69   : > { %4524 = vmatprep.subr.mxu1 %v548_v12  ;;  %3815 = vmatprep.subr.mxu0 %v548_v12  ;;  %v530_v4 = vld [vmem:[#allocation4 + $0x18] sm:$0xff]  ;;  %v4964_v5 = vld [vmem:[#allocation2 + $0x167] sm:$0xff]  ;;  %v4968_v8 = vld [vmem:[#allocation2 + $0x30f] sm:$0xff] }
  0x6a   : > { %4540 = vmatpush3.msra.mxu1 %v548_v12  ;;  %3816 = vmatpush3.msra.mxu0 %v548_v12  ;;  %v1014_v6 = vld [vmem:[#allocation4 + $0x318] sm:$0xff]  ;;  %v1013_v9 = vld [vmem:[#allocation4 + $0x310] sm:$0xff]  ;;  %v528_v12 = vld [vmem:[#allocation4 + $0x8] sm:$0xff] }
  0x6b   : > { %4525 = vmatprep.subr.mxu1 %v547_v13  ;;  %3817 = vmatprep.subr.mxu0 %v547_v13  ;;  %v4971_v10 = vld [vmem:[#allocation2 + $0x18f] sm:$0xff]  ;;  %v4973_v11 = vld [vmem:[#allocation2 + $0x317] sm:$0xff] }
  0x6c   : > { %4541 = vmatpush3.msra.mxu1 %v547_v13  ;;  %3818 = vmatpush3.msra.mxu0 %v547_v13  ;;  %v4976_v13 = vld [vmem:[#allocation2 + $0x197] sm:$0xff] }
  0x6d   : > { %4526 = vmatprep.subr.mxu1 %v546_v14  ;;  %3819 = vmatprep.subr.mxu0 %v546_v14 }
  0x6e   : > { %4542 = vmatpush3.msra.mxu1 %v546_v14  ;;  %3820 = vmatpush3.msra.mxu0 %v546_v14  ;;  %v1012_v14 = vld [vmem:[#allocation4 + $0x308] sm:$0xff] }
  0x6f   : > { %4527 = vmatprep.subr.mxu1 %v545_v15  ;;  %3821 = vmatprep.subr.mxu0 %v545_v15 }
  0x70   : > { %4543 = vmatpush3.msra.mxu1 %v545_v15  ;;  %3822 = vmatpush3.msra.mxu0 %v545_v15  ;;  %v527_v15 = vld [vmem:[#allocation4] sm:$0xff] }
  0x71   : > { %4528 = vmatprep.subr.mxu1 %v544_v16  ;;  %3823 = vmatprep.subr.mxu0 %v544_v16 }
  0x72   : > { %4544 = vmatpush3.msra.mxu1 %v544_v16  ;;  %3849 = vmatprep.mubr.f32.mxu1 %v4885_v17 }
  0x73   : > { %3824 = vmatpush3.msra.mxu0 %v544_v16  ;;  %3825 = vmatprep.mubr.f32.mxu0 %v4887_v18  ;;  %v491_v16 = vld [vmem:[#allocation2 + $0xf] sm:$0xff] }
  0x74   : > { %3850 = vmatmul.mubr.f32.vlgmr.msra.gmra.mxu1 %v4889_v19  ;;  %3873 = vmatprep.subr.mxu1 %v542_v20 }
  0x75   : > { %3826 = vmatmul.mubr.f32.vlgmr.msra.gmra.mxu0 %v4892_v21  ;;  %3874 = vmatpush3.msra.mxu1 %v542_v20  ;;  %v1011_v20 = vld [vmem:[#allocation4 + $0x300] sm:$0xff] }
  0x76   : > { %3953 = vmatprep.subr.mxu0 %v1026_v22  ;;  %3875 = vmatprep.subr.mxu1 %v541_v23 }
  0x77   : > { %3954 = vmatpush3.msra.mxu0 %v1026_v22  ;;  %3852 = vmatprep.mubr.f32.mxu1 %v4896_v24  ;;  %v492_v22 = vld [vmem:[#allocation2 + $0x17] sm:$0xff] }
  0x78   : > { %3876 = vmatpush3.msra.mxu1 %v541_v23  ;;  %3955 = vmatprep.subr.mxu0 %v1025_v25  ;;  %v1336_v23 = vld [vmem:[#allocation4 + $0xf8] sm:$0xff] }
  0x79   : > { %3828 = vmatprep.mubr.f32.mxu0 %v4899_v26  ;;  %3853 = vmatmul.mubr.f32.gmra.mxu1 %v4901_v27 }
  0x7a   : > { %3877 = vmatprep.subr.mxu1 %v540_v28  ;;  %3956 = vmatpush3.msra.mxu0 %v1025_v25  ;;  %v1610_v25 = vld [vmem:[#allocation4 + $0x278] sm:$0xff] }
  0x7b   : > { %3829 = vmatmul.mubr.f32.gmra.mxu0 %v4904_v29  ;;  %3878 = vmatpush3.msra.mxu1 %v540_v28  ;;  %v1335_v28 = vld [vmem:[#allocation4 + $0xf0] sm:$0xff] }
  0x7c   : > { %3957 = vmatprep.subr.mxu0 %v1024_v30  ;;  %3879 = vmatprep.subr.mxu1 %v539_v31 }
  0x7d   : > { %3958 = vmatpush3.msra.mxu0 %v1024_v30  ;;  %3855 = vmatprep.mubr.f32.mxu1 %v4908_v32  ;;  %v1609_v30 = vld [vmem:[#allocation4 + $0x270] sm:$0xff] }
  0x7e   : > { %3880 = vmatpush3.msra.mxu1 %v539_v31  ;;  %3959 = vmatprep.subr.mxu0 %v1023_v33  ;;  %v1334_v31 = vld [vmem:[#allocation4 + $0xe8] sm:$0xff] }
  0x7f   : > { %3831 = vmatprep.mubr.f32.mxu0 %v4911_v34  ;;  %3856 = vmatmul.mubr.f32.gmra.mxu1 %v4913_v35 }
  0x80   : > { %3881 = vmatprep.subr.mxu1 %v538_v36  ;;  %3960 = vmatpush3.msra.mxu0 %v1023_v33  ;;  %v1608_v33 = vld [vmem:[#allocation4 + $0x268] sm:$0xff] }
  0x81   : > { %3832 = vmatmul.mubr.f32.gmra.mxu0 %v4916_v37  ;;  %3882 = vmatpush3.msra.mxu1 %v538_v36  ;;  %v1605_v36 = vld [vmem:[#allocation4 + $0x250] sm:$0xff] }
  0x82   : > { %3961 = vmatprep.subr.mxu0 %v1022_v38  ;;  %3883 = vmatprep.subr.mxu1 %v537_v39 }
  0x83   : > { %3962 = vmatpush3.msra.mxu0 %v1022_v38  ;;  %3858 = vmatprep.mubr.f32.mxu1 %v4920_v40  ;;  %v1604_v38 = vld [vmem:[#allocation4 + $0x248] sm:$0xff] }
  0x84   : > { %3884 = vmatpush3.msra.mxu1 %v537_v39  ;;  %3963 = vmatprep.subr.mxu0 %v1021_v41  ;;  %v1329_v39 = vld [vmem:[#allocation4 + $0xc0] sm:$0xff] }
  0x85   : > { %3834 = vmatprep.mubr.f32.mxu0 %v4923_v42  ;;  %3859 = vmatmul.mubr.f32.gmra.mxu1 %v4925_v43 }
  0x86   : > { %3885 = vmatprep.subr.mxu1 %v536_v44  ;;  %3964 = vmatpush3.msra.mxu0 %v1021_v41  ;;  %v1603_v41 = vld [vmem:[#allocation4 + $0x240] sm:$0xff] }
  0x87   : > { %3835 = vmatmul.mubr.f32.gmra.mxu0 %v4928_v45  ;;  %3886 = vmatpush3.msra.mxu1 %v536_v44  ;;  %v1602_v44 = vld [vmem:[#allocation4 + $0x238] sm:$0xff] }
  0x88   : > { %3965 = vmatprep.subr.mxu0 %v1020_v46  ;;  %3887 = vmatprep.subr.mxu1 %v535_v47 }
  0x89   : > { %3966 = vmatpush3.msra.mxu0 %v1020_v46  ;;  %3861 = vmatprep.mubr.f32.mxu1 %v4932_v48  ;;  %v1601_v46 = vld [vmem:[#allocation4 + $0x230] sm:$0xff] }
  0x8a   : > { %3888 = vmatpush3.msra.mxu1 %v535_v47  ;;  %3967 = vmatprep.subr.mxu0 %v1019_v49  ;;  %v1326_v47 = vld [vmem:[#allocation4 + $0xa8] sm:$0xff] }
  0x8b   : > { %3837 = vmatprep.mubr.f32.mxu0 %v4935_v50  ;;  %3862 = vmatmul.mubr.f32.gmra.mxu1 %v4937_v51 }
  0x8c   : > { %3889 = vmatprep.subr.mxu1 %v534_v52  ;;  %3968 = vmatpush3.msra.mxu0 %v1019_v49  ;;  %v1600_v49 = vld [vmem:[#allocation4 + $0x228] sm:$0xff] }
  0x8d   : > { %3838 = vmatmul.mubr.f32.gmra.mxu0 %v4940_v53  ;;  %3890 = vmatpush3.msra.mxu1 %v534_v52  ;;  %v1595_v52 = vld [vmem:[#allocation4 + $0x200] sm:$0xff] }
  0x8e   : > { %3969 = vmatprep.subr.mxu0 %v1018_v54  ;;  %3891 = vmatprep.subr.mxu1 %v533_v55 }
  0x8f   : > { %3970 = vmatpush3.msra.mxu0 %v1018_v54  ;;  %3864 = vmatprep.mubr.f32.mxu1 %v4944_v56  ;;  %v1285_v54 = vld [vmem:[#allocation2 + $0x18] sm:$0xff] }
  0x90   : > { %3892 = vmatpush3.msra.mxu1 %v533_v55  ;;  %3971 = vmatprep.subr.mxu0 %v1017_v57  ;;  %v1286_v55 = vld [vmem:[#allocation2 + $0x40] sm:$0xff] }
  0x91   : > { %3840 = vmatprep.mubr.f32.mxu0 %v4947_v58  ;;  %3865 = vmatmul.mubr.f32.gmra.mxu1 %v4949_v59 }
  0x92   : > { %3893 = vmatprep.subr.mxu1 %v532_v60  ;;  %3972 = vmatpush3.msra.mxu0 %v1017_v57  ;;  %v1287_v57 = vld [vmem:[#allocation2 + $0x48] sm:$0xff] }
  0x93   : > { %3841 = vmatmul.mubr.f32.gmra.mxu0 %v4952_v61  ;;  %3894 = vmatpush3.msra.mxu1 %v532_v60  ;;  %v1883_v60 = vld [vmem:[#allocation4 + $0x3f0] sm:$0xff] }
  0x94   : > { %3973 = vmatprep.subr.mxu0 %v1016_v62  ;;  %3895 = vmatprep.subr.mxu1 %v531_v63 }
  0x95   : > { %3974 = vmatpush3.msra.mxu0 %v1016_v62  ;;  %3867 = vmatprep.mubr.f32.mxu1 %v4956_v0  ;;  %v2193_v62 = vld [vmem:[#allocation4 + $0x170] sm:$0xff] }
  0x96   : > { %3896 = vmatpush3.msra.mxu1 %v531_v63  ;;  %3975 = vmatprep.subr.mxu0 %v1015_v1  ;;  %v5047_v63 = vld [vmem:[#allocation2 + $0xa0] sm:$0xff] }
  0x97   : > { %3843 = vmatprep.mubr.f32.mxu0 %v4959_v2  ;;  %3868 = vmatmul.mubr.f32.gmra.mxu1 %v4961_v3 }
  0x98   : > { %3897 = vmatprep.subr.mxu1 %v530_v4  ;;  %3976 = vmatpush3.msra.mxu0 %v1015_v1  ;;  %v5050_v1 = vld [vmem:[#allocation2 + $0xa8] sm:$0xff] }
  0x99   : > { %3844 = vmatmul.mubr.f32.gmra.mxu0 %v4964_v5  ;;  %3898 = vmatpush3.msra.mxu1 %v530_v4  ;;  %v1881_v4 = vld [vmem:[#allocation4 + $0x3e0] sm:$0xff] }
  0x9a   : > { %3977 = vmatprep.subr.mxu0 %v1014_v6  ;;  %3899 = vmatprep.subr.mxu1 %v529_v7 }
  0x9b   : > { %3978 = vmatpush3.msra.mxu0 %v1014_v6  ;;  %3870 = vmatprep.mubr.f32.mxu1 %v4968_v8  ;;  %v2191_v6 = vld [vmem:[#allocation4 + $0x160] sm:$0xff] }
  0x9c   : > { %3900 = vmatpush3.msra.mxu1 %v529_v7  ;;  %3979 = vmatprep.subr.mxu0 %v1013_v9  ;;  %v5063_v7 = vld [vmem:[#allocation2 + $0x100] sm:$0xff] }
  0x9d   : > { %3846 = vmatprep.mubr.f32.mxu0 %v4971_v10  ;;  %3871 = vmatmul.mubr.f32.gmra.mxu1 %v4973_v11 }
  0x9e   : > { %3901 = vmatprep.subr.mxu1 %v528_v12  ;;  %3980 = vmatpush3.msra.mxu0 %v1013_v9  ;;  %v5066_v9 = vld [vmem:[#allocation2 + $0x108] sm:$0xff] }
  0x9f   : > { %3847 = vmatmul.mubr.f32.gmra.mxu0 %v4976_v13  ;;  %3902 = vmatpush3.msra.mxu1 %v528_v12  ;;  %v1879_v12 = vld [vmem:[#allocation4 + $0x3d0] sm:$0xff] }
  0xa0   : > { %3981 = vmatprep.subr.mxu0 %v1012_v14  ;;  %3903 = vmatprep.subr.mxu1 %v527_v15 }
  0xa1   : > { %3982 = vmatpush3.msra.mxu0 %v1012_v14  ;;  %3904 = vmatpush3.msra.mxu1 %v527_v15  ;;  %v2189_v14 = vld [vmem:[#allocation4 + $0x150] sm:$0xff]  ;;  %v5079_v15 = vld [vmem:[#allocation2 + $0x160] sm:$0xff] }
  0xa2   : > { %3905 = vmatprep.mubr.f32.mxu1 %v491_v16  ;;  %3983 = vmatprep.subr.mxu0 %v1011_v20  ;;  %v1878_v16 = vld [vmem:[#allocation4 + $0x3c8] sm:$0xff] }
  0xa3   : > { %3906 = vmatmul.mubr.f32.vlgmr.msra.gmra.mxu1 %v492_v22  ;;  %3984 = vmatpush3.msra.mxu0 %v1011_v20  ;;  %v5082_v20 = vld [vmem:[#allocation2 + $0x168] sm:$0xff] }
  0xa4   : > { %3985 = vmatprep.mubr.f32.mxu0 %v4899_v26  ;;  %4033 = vmatprep.subr.mxu1 %v1336_v23  ;;  %v2188_v22 = vld [vmem:[#allocation4 + $0x148] sm:$0xff] }
  0xa5   : > { %3986 = vmatmul.mubr.f32.vlgmr.msra.gmra.mxu0 %v4904_v29  ;;  %4034 = vmatpush3.msra.mxu1 %v1336_v23  ;;  %v5087_v23 = vld [vmem:[#allocation2 + $0x190] sm:$0xff] }
  0xa6   : > { %4113 = vmatprep.subr.mxu0 %v1610_v25  ;;  %3908 = vmatprep.mubr.f32.mxu1 %v4887_v18  ;;  %v1333_v18 = vld [vmem:[#allocation4 + $0xe0] sm:$0xff] }
  0xa7   : > { %4114 = vmatpush3.msra.mxu0 %v1610_v25  ;;  %3909 = vmatmul.mubr.f32.gmra.mxu1 %v4892_v21  ;;  %v1607_v21 = vld [vmem:[#allocation4 + $0x260] sm:$0xff] }
  0xa8   : > { %3988 = vmatprep.mubr.f32.mxu0 %v4911_v34  ;;  %4035 = vmatprep.subr.mxu1 %v1335_v28  ;;  %v1877_v25 = vld [vmem:[#allocation4 + $0x3c0] sm:$0xff] }
  0xa9   : > { %3989 = vmatmul.mubr.f32.gmra.mxu0 %v4916_v37  ;;  %4036 = vmatpush3.msra.mxu1 %v1335_v28  ;;  %v5090_v28 = vld [vmem:[#allocation2 + $0x198] sm:$0xff] }
  0xaa   : > { %4115 = vmatprep.subr.mxu0 %v1609_v30  ;;  %3911 = vmatprep.mubr.f32.mxu1 %v4899_v26  ;;  %v1332_v26 = vld [vmem:[#allocation4 + $0xd8] sm:$0xff] }
  0xab   : > { %4116 = vmatpush3.msra.mxu0 %v1609_v30  ;;  %3912 = vmatmul.mubr.f32.gmra.mxu1 %v4904_v29  ;;  %v1606_v29 = vld [vmem:[#allocation4 + $0x258] sm:$0xff]  ;;  %v2187_v30 = vld [vmem:[#allocation4 + $0x140] sm:$0xff] }
  0xac   : > { %3991 = vmatprep.mubr.f32.mxu0 %v4923_v42  ;;  %4037 = vmatprep.subr.mxu1 %v1334_v31 }
  0xad   : > { %3992 = vmatmul.mubr.f32.gmra.mxu0 %v4928_v45  ;;  %4038 = vmatpush3.msra.mxu1 %v1334_v31  ;;  %v5095_v31 = vld [vmem:[#allocation2 + $0x1c0] sm:$0xff] }
  0xae   : > { %4117 = vmatprep.subr.mxu0 %v1608_v33  ;;  %3914 = vmatprep.mubr.f32.mxu1 %v4911_v34  ;;  %v1331_v34 = vld [vmem:[#allocation4 + $0xd0] sm:$0xff] }
  0xaf   : > { %4118 = vmatpush3.msra.mxu0 %v1608_v33  ;;  %3915 = vmatmul.mubr.f32.gmra.mxu1 %v4916_v37  ;;  %v1330_v37 = vld [vmem:[#allocation4 + $0xc8] sm:$0xff]  ;;  %v1876_v33 = vld [vmem:[#allocation4 + $0x3b8] sm:$0xff] }
  0xb0   : > { %3994 = vmatprep.mubr.f32.mxu0 %v4935_v50  ;;  %4039 = vmatprep.subr.mxu1 %v1333_v18 }
  0xb1   : > { %3995 = vmatmul.mubr.f32.gmra.mxu0 %v4940_v53  ;;  %4040 = vmatpush3.msra.mxu1 %v1333_v18  ;;  %v5098_v18 = vld [vmem:[#allocation2 + $0x1c8] sm:$0xff] }
  0xb2   : > { %4119 = vmatprep.subr.mxu0 %v1607_v21  ;;  %3917 = vmatprep.mubr.f32.mxu1 %v4923_v42  ;;  %v1328_v42 = vld [vmem:[#allocation4 + $0xb8] sm:$0xff] }
  0xb3   : > { %4120 = vmatpush3.msra.mxu0 %v1607_v21  ;;  %3918 = vmatmul.mubr.f32.gmra.mxu1 %v4928_v45  ;;  %v1327_v45 = vld [vmem:[#allocation4 + $0xb0] sm:$0xff]  ;;  %v2186_v21 = vld [vmem:[#allocation4 + $0x138] sm:$0xff] }
  0xb4   : > { %3997 = vmatprep.mubr.f32.mxu0 %v4947_v58  ;;  %4041 = vmatprep.subr.mxu1 %v1332_v26 }
  0xb5   : > { %3998 = vmatmul.mubr.f32.gmra.mxu0 %v4952_v61  ;;  %4042 = vmatpush3.msra.mxu1 %v1332_v26  ;;  %v5103_v26 = vld [vmem:[#allocation2 + $0x1f0] sm:$0xff] }
  0xb6   : > { %4121 = vmatprep.subr.mxu0 %v1606_v29  ;;  %3920 = vmatprep.mubr.f32.mxu1 %v4935_v50  ;;  %v1321_v50 = vld [vmem:[#allocation4 + $0x80] sm:$0xff] }
  0xb7   : > { %4122 = vmatpush3.msra.mxu0 %v1606_v29  ;;  %3921 = vmatmul.mubr.f32.gmra.mxu1 %v4940_v53  ;;  %v1284_v53 = vld [vmem:[#allocation2 + $0x10] sm:$0xff] }
  0xb8   : > { %4000 = vmatprep.mubr.f32.mxu0 %v4959_v2  ;;  %4043 = vmatprep.subr.mxu1 %v1331_v34  ;;  %v1875_v29 = vld [vmem:[#allocation4 + $0x3b0] sm:$0xff] }
  0xb9   : > { %4001 = vmatmul.mubr.f32.gmra.mxu0 %v4964_v5  ;;  %4044 = vmatpush3.msra.mxu1 %v1331_v34  ;;  %v5106_v34 = vld [vmem:[#allocation2 + $0x1f8] sm:$0xff] }
  0xba   : > { %4123 = vmatprep.subr.mxu0 %v1605_v36  ;;  %3923 = vmatprep.mubr.f32.mxu1 %v4947_v58  ;;  %v2194_v58 = vld [vmem:[#allocation4 + $0x178] sm:$0xff] }
  0xbb   : > { %4124 = vmatpush3.msra.mxu0 %v1605_v36  ;;  %3924 = vmatmul.mubr.f32.gmra.mxu1 %v4952_v61  ;;  %v5043_v61 = vld [vmem:[#allocation2 + $0x78] sm:$0xff]  ;;  %v2185_v36 = vld [vmem:[#allocation4 + $0x130] sm:$0xff] }
  0xbc   : > { %4003 = vmatprep.mubr.f32.mxu0 %v4971_v10  ;;  %4045 = vmatprep.subr.mxu1 %v1330_v37 }
  0xbd   : > { %4004 = vmatmul.mubr.f32.gmra.mxu0 %v4976_v13  ;;  %4046 = vmatpush3.msra.mxu1 %v1330_v37  ;;  %v5111_v37 = vld [vmem:[#allocation2 + $0x220] sm:$0xff] }
  0xbe   : > { %4125 = vmatprep.subr.mxu0 %v1604_v38  ;;  %3926 = vmatprep.mubr.f32.mxu1 %v4959_v2  ;;  %v2192_v2 = vld [vmem:[#allocation4 + $0x168] sm:$0xff] }
  0xbf   : > { %4126 = vmatpush3.msra.mxu0 %v1604_v38  ;;  %3927 = vmatmul.mubr.f32.gmra.mxu1 %v4964_v5  ;;  %v5058_v5 = vld [vmem:[#allocation2 + $0xd8] sm:$0xff]  ;;  %v1874_v38 = vld [vmem:[#allocation4 + $0x3a8] sm:$0xff] }
  0xc0   : > { %4006 = vmatprep.mubr.f32.mxu0 %v4885_v17  ;;  %4047 = vmatprep.subr.mxu1 %v1329_v39 }
  0xc1   : > { %4007 = vmatmul.mubr.f32.gmra.mxu0 %v4889_v19  ;;  %4048 = vmatpush3.msra.mxu1 %v1329_v39  ;;  %v5114_v39 = vld [vmem:[#allocation2 + $0x228] sm:$0xff] }
  0xc2   : > { %4127 = vmatprep.subr.mxu0 %v1603_v41  ;;  %3929 = vmatprep.mubr.f32.mxu1 %v4971_v10  ;;  %v2190_v10 = vld [vmem:[#allocation4 + $0x158] sm:$0xff] }
  0xc3   : > { %4128 = vmatpush3.msra.mxu0 %v1603_v41  ;;  %3930 = vmatmul.mubr.f32.gmra.mxu1 %v4976_v13  ;;  %v5074_v13 = vld [vmem:[#allocation2 + $0x138] sm:$0xff]  ;;  %v2184_v41 = vld [vmem:[#allocation4 + $0x128] sm:$0xff] }
  0xc4   : > { %4009 = vmatprep.mubr.f32.mxu0 %v4896_v24  ;;  %4049 = vmatprep.subr.mxu1 %v1328_v42 }
  0xc5   : > { %4010 = vmatmul.mubr.f32.gmra.mxu0 %v4901_v27  ;;  %4050 = vmatpush3.msra.mxu1 %v1328_v42  ;;  %v5119_v42 = vld [vmem:[#allocation2 + $0x250] sm:$0xff] }
  0xc6   : > { %4129 = vmatprep.subr.mxu0 %v1602_v44  ;;  %3932 = vmatprep.mubr.f32.mxu1 %v4885_v17  ;;  %v1325_v17 = vld [vmem:[#allocation4 + $0xa0] sm:$0xff] }
  0xc7   : > { %4130 = vmatpush3.msra.mxu0 %v1602_v44  ;;  %3933 = vmatmul.mubr.f32.gmra.mxu1 %v4889_v19  ;;  %v1599_v19 = vld [vmem:[#allocation4 + $0x220] sm:$0xff] }
  0xc8   : > { %4012 = vmatprep.mubr.f32.mxu0 %v4908_v32  ;;  %4051 = vmatprep.subr.mxu1 %v1327_v45  ;;  %v1873_v44 = vld [vmem:[#allocation4 + $0x3a0] sm:$0xff] }
  0xc9   : > { %4013 = vmatmul.mubr.f32.gmra.mxu0 %v4913_v35  ;;  %4052 = vmatpush3.msra.mxu1 %v1327_v45  ;;  %v5122_v45 = vld [vmem:[#allocation2 + $0x258] sm:$0xff] }
  0xca   : > { %4131 = vmatprep.subr.mxu0 %v1601_v46  ;;  %3935 = vmatprep.mubr.f32.mxu1 %v4896_v24  ;;  %v1324_v24 = vld [vmem:[#allocation4 + $0x98] sm:$0xff] }
  0xcb   : > { %4132 = vmatpush3.msra.mxu0 %v1601_v46  ;;  %3936 = vmatmul.mubr.f32.gmra.mxu1 %v4901_v27  ;;  %v1598_v27 = vld [vmem:[#allocation4 + $0x218] sm:$0xff]  ;;  %v2183_v46 = vld [vmem:[#allocation4 + $0x120] sm:$0xff] }
  0xcc   : > { %4015 = vmatprep.mubr.f32.mxu0 %v4920_v40  ;;  %4053 = vmatprep.subr.mxu1 %v1326_v47 }
  0xcd   : > { %4016 = vmatmul.mubr.f32.gmra.mxu0 %v4925_v43  ;;  %4054 = vmatpush3.msra.mxu1 %v1326_v47  ;;  %v5127_v47 = vld [vmem:[#allocation2 + $0x280] sm:$0xff] }
  0xce   : > { %4133 = vmatprep.subr.mxu0 %v1600_v49  ;;  %3938 = vmatprep.mubr.f32.mxu1 %v4908_v32  ;;  %v1323_v32 = vld [vmem:[#allocation4 + $0x90] sm:$0xff] }
  0xcf   : > { %4134 = vmatpush3.msra.mxu0 %v1600_v49  ;;  %3939 = vmatmul.mubr.f32.gmra.mxu1 %v4913_v35  ;;  %v1597_v35 = vld [vmem:[#allocation4 + $0x210] sm:$0xff]  ;;  %v1872_v49 = vld [vmem:[#allocation4 + $0x398] sm:$0xff] }
  0xd0   : > { %4018 = vmatprep.mubr.f32.mxu0 %v4932_v48  ;;  %4055 = vmatprep.subr.mxu1 %v1325_v17 }
  0xd1   : > { %4019 = vmatmul.mubr.f32.gmra.mxu0 %v4937_v51  ;;  %4056 = vmatpush3.msra.mxu1 %v1325_v17  ;;  %v5130_v17 = vld [vmem:[#allocation2 + $0x288] sm:$0xff] }
  0xd2   : > { %4135 = vmatprep.subr.mxu0 %v1599_v19  ;;  %3941 = vmatprep.mubr.f32.mxu1 %v4920_v40  ;;  %v1322_v40 = vld [vmem:[#allocation4 + $0x88] sm:$0xff] }
  0xd3   : > { %4136 = vmatpush3.msra.mxu0 %v1599_v19  ;;  %3942 = vmatmul.mubr.f32.gmra.mxu1 %v4925_v43  ;;  %v1596_v43 = vld [vmem:[#allocation4 + $0x208] sm:$0xff]  ;;  %v2182_v19 = vld [vmem:[#allocation4 + $0x118] sm:$0xff] }
  0xd4   : > { %4021 = vmatprep.mubr.f32.mxu0 %v4944_v56  ;;  %4057 = vmatprep.subr.mxu1 %v1324_v24 }
  0xd5   : > { %4022 = vmatmul.mubr.f32.gmra.mxu0 %v4949_v59  ;;  %4058 = vmatpush3.msra.mxu1 %v1324_v24  ;;  %v5135_v24 = vld [vmem:[#allocation2 + $0x2b0] sm:$0xff] }
  0xd6   : > { %4137 = vmatprep.subr.mxu0 %v1598_v27  ;;  %3944 = vmatprep.mubr.f32.mxu1 %v4932_v48  ;;  %v525_v48 = vld [vmem:[#allocation2 + $0x33f] sm:$0xff] }
  0xd7   : > { %4138 = vmatpush3.msra.mxu0 %v1598_v27  ;;  %3945 = vmatmul.mubr.f32.gmra.mxu1 %v4937_v51  ;;  %v526_v51 = vld [vmem:[#allocation2 + $0x347] sm:$0xff]  ;;  %v1871_v27 = vld [vmem:[#allocation4 + $0x390] sm:$0xff] }
  0xd8   : > { %4024 = vmatprep.mubr.f32.mxu0 %v4956_v0  ;;  %4059 = vmatprep.subr.mxu1 %v1323_v32 }
  0xd9   : > { %4025 = vmatmul.mubr.f32.gmra.mxu0 %v4961_v3  ;;  %4060 = vmatpush3.msra.mxu1 %v1323_v32  ;;  %v5138_v32 = vld [vmem:[#allocation2 + $0x2b8] sm:$0xff] }
  0xda   : > { %4139 = vmatprep.subr.mxu0 %v1597_v35  ;;  %3947 = vmatprep.mubr.f32.mxu1 %v4944_v56  ;;  %v1884_v56 = vld [vmem:[#allocation4 + $0x3f8] sm:$0xff] }
  0xdb   : > { %4140 = vmatpush3.msra.mxu0 %v1597_v35  ;;  %3948 = vmatmul.mubr.f32.gmra.mxu1 %v4949_v59  ;;  %v5041_v59 = vld [vmem:[#allocation2 + $0x70] sm:$0xff] }
  0xdc   : > { %4027 = vmatprep.mubr.f32.mxu0 %v4968_v8  ;;  %4061 = vmatprep.subr.mxu1 %v1322_v40  ;;  %v1880_v8 = vld [vmem:[#allocation4 + $0x3d8] sm:$0xff]  ;;  %v2181_v35 = vld [vmem:[#allocation4 + $0x110] sm:$0xff] }
  0xdd   : > { %4028 = vmatmul.mubr.f32.gmra.mxu0 %v4973_v11  ;;  %4062 = vmatpush3.msra.mxu1 %v1322_v40  ;;  %v5071_v11 = vld [vmem:[#allocation2 + $0x130] sm:$0xff]  ;;  %v5143_v40 = vld [vmem:[#allocation2 + $0x2e0] sm:$0xff] }
  0xde   : > { %4141 = vmatprep.subr.mxu0 %v1596_v43  ;;  %3950 = vmatprep.mubr.f32.mxu1 %v4956_v0  ;;  %v1882_v0 = vld [vmem:[#allocation4 + $0x3e8] sm:$0xff] }
  0xdf   : > { %4142 = vmatpush3.msra.mxu0 %v1596_v43  ;;  %3951 = vmatmul.mubr.f32.gmra.mxu1 %v4961_v3  ;;  %v5055_v3 = vld [vmem:[#allocation2 + $0xd0] sm:$0xff]  ;;  %v1870_v43 = vld [vmem:[#allocation4 + $0x388] sm:$0xff] }
  0xe0   : > { %4030 = vmatprep.mubr.f32.mxu0 %v525_v48  ;;  %4063 = vmatprep.subr.mxu1 %v1321_v50  ;;  %v5146_v48 = vld [vmem:[#allocation2 + $0x2e8] sm:$0xff] }
  0xe1   : > { %4031 = vmatmul.mubr.f32.gmra.mxu0 %v526_v51  ;;  %4064 = vmatpush3.msra.mxu1 %v1321_v50  ;;  %v2180_v50 = vld [vmem:[#allocation4 + $0x108] sm:$0xff]  ;;  %v5151_v51 = vld [vmem:[#allocation2 + $0x310] sm:$0xff] }
  0xe2   : > { %4143 = vmatprep.subr.mxu0 %v1595_v52  ;;  %4065 = vmatprep.mubr.f32.mxu1 %v1284_v53  ;;  %v5154_v53 = vld [vmem:[#allocation2 + $0x318] sm:$0xff] }
  0xe3   : > { %4144 = vmatpush3.msra.mxu0 %v1595_v52  ;;  %4066 = vmatmul.mubr.f32.vlgmr.msra.gmra.mxu1 %v1285_v54  ;;  %v1869_v52 = vld [vmem:[#allocation4 + $0x380] sm:$0xff] }
  0xe4   : > { %4145 = vmatprep.mubr.f32.mxu0 %v1286_v55  ;;  %4193 = vmatprep.subr.mxu1 %v1884_v56  ;;  %v2179_v54 = vld [vmem:[#allocation4 + $0x100] sm:$0xff] }
  0xe5   : > { %4146 = vmatmul.mubr.f32.vlgmr.msra.gmra.mxu0 %v1287_v57  ;;  %4194 = vmatpush3.msra.mxu1 %v1884_v56  ;;  %v2468_v56 = vld [vmem:[#allocation4 + $0x2f8] sm:$0xff] }
  0xe6   : > { %4273 = vmatprep.subr.mxu0 %v2194_v58  ;;  %4068 = vmatprep.mubr.f32.mxu1 %v1286_v55  ;;  %v2142_v55 = vld [vmem:[#allocation2 + $0x11] sm:$0xff] }
  0xe7   : > { %4274 = vmatpush3.msra.mxu0 %v2194_v58  ;;  %4069 = vmatmul.mubr.f32.gmra.mxu1 %v1287_v57  ;;  %v2143_v57 = vld [vmem:[#allocation2 + $0x19] sm:$0xff] }
  0xe8   : > { %4148 = vmatprep.mubr.f32.mxu0 %v5041_v59  ;;  %4195 = vmatprep.subr.mxu1 %v1883_v60  ;;  %v2742_v58 = vld [vmem:[#allocation4 + $0x478] sm:$0xff] }
  0xe9   : > { %4149 = vmatmul.mubr.f32.gmra.mxu0 %v5043_v61  ;;  %4196 = vmatpush3.msra.mxu1 %v1883_v60  ;;  %v5161_v60 = vld [vmem:[#allocation2 + $0x41] sm:$0xff] }
  0xea   : > { %4275 = vmatprep.subr.mxu0 %v2193_v62  ;;  %4071 = vmatprep.mubr.f32.mxu1 %v5041_v59 }
  0xeb   : > { %4276 = vmatpush3.msra.mxu0 %v2193_v62  ;;  %4072 = vmatmul.mubr.f32.gmra.mxu1 %v5043_v61  ;;  %v2467_v62 = vld [vmem:[#allocation4 + $0x2f0] sm:$0xff] }
  0xec   : > { %4151 = vmatprep.mubr.f32.mxu0 %v5047_v63  ;;  %4197 = vmatprep.subr.mxu1 %v1882_v0 }
  0xed   : > { %4152 = vmatmul.mubr.f32.gmra.mxu0 %v5050_v1  ;;  %4198 = vmatpush3.msra.mxu1 %v1882_v0  ;;  %v5164_v0 = vld [vmem:[#allocation2 + $0x49] sm:$0xff] }
  0xee   : > { %4277 = vmatprep.subr.mxu0 %v2192_v2  ;;  %4074 = vmatprep.mubr.f32.mxu1 %v5047_v63 }
  0xef   : > { %4278 = vmatpush3.msra.mxu0 %v2192_v2  ;;  %4075 = vmatmul.mubr.f32.gmra.mxu1 %v5050_v1  ;;  %v2466_v2 = vld [vmem:[#allocation4 + $0x2e8] sm:$0xff] }
  0xf0   : > { %4154 = vmatprep.mubr.f32.mxu0 %v5055_v3  ;;  %4199 = vmatprep.subr.mxu1 %v1881_v4 }
  0xf1   : > { %4155 = vmatmul.mubr.f32.gmra.mxu0 %v5058_v5  ;;  %4200 = vmatpush3.msra.mxu1 %v1881_v4  ;;  %v5172_v4 = vld [vmem:[#allocation2 + $0x79] sm:$0xff] }
  0xf2   : > { %4279 = vmatprep.subr.mxu0 %v2191_v6  ;;  %4077 = vmatprep.mubr.f32.mxu1 %v5055_v3 }
  0xf3   : > { %4280 = vmatpush3.msra.mxu0 %v2191_v6  ;;  %4078 = vmatmul.mubr.f32.gmra.mxu1 %v5058_v5  ;;  %v2465_v6 = vld [vmem:[#allocation4 + $0x2e0] sm:$0xff] }
  0xf4   : > { %4157 = vmatprep.mubr.f32.mxu0 %v5063_v7  ;;  %4201 = vmatprep.subr.mxu1 %v1880_v8 }
  0xf5   : > { %4158 = vmatmul.mubr.f32.gmra.mxu0 %v5066_v9  ;;  %4202 = vmatpush3.msra.mxu1 %v1880_v8  ;;  %v5180_v8 = vld [vmem:[#allocation2 + $0xa9] sm:$0xff] }
  0xf6   : > { %4281 = vmatprep.subr.mxu0 %v2190_v10  ;;  %4080 = vmatprep.mubr.f32.mxu1 %v5063_v7 }
  0xf7   : > { %4282 = vmatpush3.msra.mxu0 %v2190_v10  ;;  %4081 = vmatmul.mubr.f32.gmra.mxu1 %v5066_v9  ;;  %v2464_v10 = vld [vmem:[#allocation4 + $0x2d8] sm:$0xff] }
  0xf8   : > { %4160 = vmatprep.mubr.f32.mxu0 %v5071_v11  ;;  %4203 = vmatprep.subr.mxu1 %v1879_v12 }
  0xf9   : > { %4161 = vmatmul.mubr.f32.gmra.mxu0 %v5074_v13  ;;  %4204 = vmatpush3.msra.mxu1 %v1879_v12  ;;  %v5188_v12 = vld [vmem:[#allocation2 + $0xd9] sm:$0xff] }
  0xfa   : > { %4283 = vmatprep.subr.mxu0 %v2189_v14  ;;  %4083 = vmatprep.mubr.f32.mxu1 %v5071_v11 }
  0xfb   : > { %4284 = vmatpush3.msra.mxu0 %v2189_v14  ;;  %4084 = vmatmul.mubr.f32.gmra.mxu1 %v5074_v13  ;;  %v5195_v14 = vld [vmem:[#allocation2 + $0x101] sm:$0xff] }
  0xfc   : > { %4163 = vmatprep.mubr.f32.mxu0 %v5079_v15  ;;  %4205 = vmatprep.subr.mxu1 %v1878_v16 }
  0xfd   : > { %4164 = vmatmul.mubr.f32.gmra.mxu0 %v5082_v20  ;;  %4206 = vmatpush3.msra.mxu1 %v1878_v16  ;;  %v2463_v16 = vld [vmem:[#allocation4 + $0x2d0] sm:$0xff] }
  0xfe   : > { %4285 = vmatprep.subr.mxu0 %v2188_v22  ;;  %4086 = vmatprep.mubr.f32.mxu1 %v5079_v15 }
  0xff   : > { %4286 = vmatpush3.msra.mxu0 %v2188_v22  ;;  %4087 = vmatmul.mubr.f32.gmra.mxu1 %v5082_v20 }
 0x100   : > { %4166 = vmatprep.mubr.f32.mxu0 %v5087_v23  ;;  %4207 = vmatprep.subr.mxu1 %v1877_v25 }
 0x101   : > { %4167 = vmatmul.mubr.f32.gmra.mxu0 %v5090_v28  ;;  %4208 = vmatpush3.msra.mxu1 %v1877_v25  ;;  %v2737_v25 = vld [vmem:[#allocation4 + $0x450] sm:$0xff] }
 0x102   : > { %4287 = vmatprep.subr.mxu0 %v2187_v30  ;;  %4089 = vmatprep.mubr.f32.mxu1 %v5087_v23 }
 0x103   : > { %4288 = vmatpush3.msra.mxu0 %v2187_v30  ;;  %4090 = vmatmul.mubr.f32.gmra.mxu1 %v5090_v28 }
 0x104   : > { %4169 = vmatprep.mubr.f32.mxu0 %v5095_v31  ;;  %4209 = vmatprep.subr.mxu1 %v1876_v33 }
 0x105   : > { %4170 = vmatmul.mubr.f32.gmra.mxu0 %v5098_v18  ;;  %4210 = vmatpush3.msra.mxu1 %v1876_v33  ;;  %v5209_v33 = vld [vmem:[#allocation2 + $0x131] sm:$0xff] }
 0x106   : > { %4289 = vmatprep.subr.mxu0 %v2186_v21  ;;  %4092 = vmatprep.mubr.f32.mxu1 %v5095_v31 }
 0x107   : > { %4290 = vmatpush3.msra.mxu0 %v2186_v21  ;;  %4093 = vmatmul.mubr.f32.gmra.mxu1 %v5098_v18  ;;  %v2462_v21 = vld [vmem:[#allocation4 + $0x2c8] sm:$0xff] }
 0x108   : > { %4172 = vmatprep.mubr.f32.mxu0 %v5103_v26  ;;  %4211 = vmatprep.subr.mxu1 %v1875_v29 }
 0x109   : > { %4173 = vmatmul.mubr.f32.gmra.mxu0 %v5106_v34  ;;  %4212 = vmatpush3.msra.mxu1 %v1875_v29  ;;  %v5214_v29 = vld [vmem:[#allocation2 + $0x139] sm:$0xff] }
 0x10a   : > { %4291 = vmatprep.subr.mxu0 %v2185_v36  ;;  %4095 = vmatprep.mubr.f32.mxu1 %v5103_v26 }
 0x10b   : > { %4292 = vmatpush3.msra.mxu0 %v2185_v36  ;;  %4096 = vmatmul.mubr.f32.gmra.mxu1 %v5106_v34 }
 0x10c   : > { %4175 = vmatprep.mubr.f32.mxu0 %v5111_v37  ;;  %4213 = vmatprep.subr.mxu1 %v1874_v38 }
 0x10d   : > { %4176 = vmatmul.mubr.f32.gmra.mxu0 %v5114_v39  ;;  %4214 = vmatpush3.msra.mxu1 %v1874_v38 }
 0x10e   : > { %4293 = vmatprep.subr.mxu0 %v2184_v41  ;;  %4098 = vmatprep.mubr.f32.mxu1 %v5111_v37 }
 0x10f   : > { %4294 = vmatpush3.msra.mxu0 %v2184_v41  ;;  %4099 = vmatmul.mubr.f32.gmra.mxu1 %v5114_v39  ;;  %v5223_v41 = vld [vmem:[#allocation2 + $0x161] sm:$0xff] }
 0x110   : > { %4178 = vmatprep.mubr.f32.mxu0 %v5119_v42  ;;  %4215 = vmatprep.subr.mxu1 %v1873_v44 }
 0x111   : > { %4179 = vmatmul.mubr.f32.gmra.mxu0 %v5122_v45  ;;  %4216 = vmatpush3.msra.mxu1 %v1873_v44  ;;  %v2461_v44 = vld [vmem:[#allocation4 + $0x2c0] sm:$0xff] }
 0x112   : > { %4295 = vmatprep.subr.mxu0 %v2183_v46  ;;  %4101 = vmatprep.mubr.f32.mxu1 %v5119_v42 }
 0x113   : > { %4296 = vmatpush3.msra.mxu0 %v2183_v46  ;;  %4102 = vmatmul.mubr.f32.gmra.mxu1 %v5122_v45  ;;  %v2735_v46 = vld [vmem:[#allocation4 + $0x440] sm:$0xff] }
 0x114   : > { %4181 = vmatprep.mubr.f32.mxu0 %v5127_v47  ;;  %4217 = vmatprep.subr.mxu1 %v1872_v49 }
 0x115   : > { %4182 = vmatmul.mubr.f32.gmra.mxu0 %v5130_v17  ;;  %4218 = vmatpush3.msra.mxu1 %v1872_v49 }
 0x116   : > { %4297 = vmatprep.subr.mxu0 %v2182_v19  ;;  %4104 = vmatprep.mubr.f32.mxu1 %v5127_v47 }
 0x117   : > { %4298 = vmatpush3.msra.mxu0 %v2182_v19  ;;  %4105 = vmatmul.mubr.f32.gmra.mxu1 %v5130_v17  ;;  %v5235_v19 = vld [vmem:[#allocation2 + $0x191] sm:$0xff] }
 0x118   : > { %4184 = vmatprep.mubr.f32.mxu0 %v5135_v24  ;;  %4219 = vmatprep.subr.mxu1 %v1871_v27 }
 0x119   : > { %4185 = vmatmul.mubr.f32.gmra.mxu0 %v5138_v32  ;;  %4220 = vmatpush3.msra.mxu1 %v1871_v27  ;;  %v2460_v27 = vld [vmem:[#allocation4 + $0x2b8] sm:$0xff] }
 0x11a   : > { %4299 = vmatprep.subr.mxu0 %v2181_v35  ;;  %4107 = vmatprep.mubr.f32.mxu1 %v5135_v24 }
 0x11b   : > { %4300 = vmatpush3.msra.mxu0 %v2181_v35  ;;  %4108 = vmatmul.mubr.f32.gmra.mxu1 %v5138_v32 }
 0x11c   : > { %4187 = vmatprep.mubr.f32.mxu0 %v5143_v40  ;;  %4221 = vmatprep.subr.mxu1 %v1870_v43 }
 0x11d   : > { %4188 = vmatmul.mubr.f32.gmra.mxu0 %v5146_v48  ;;  %4222 = vmatpush3.msra.mxu1 %v1870_v43  ;;  %v2734_v43 = vld [vmem:[#allocation4 + $0x438] sm:$0xff] }
 0x11e   : > { %4301 = vmatprep.subr.mxu0 %v2180_v50  ;;  %4110 = vmatprep.mubr.f32.mxu1 %v5143_v40 }
 0x11f   : > { %4302 = vmatpush3.msra.mxu0 %v2180_v50  ;;  %4111 = vmatmul.mubr.f32.gmra.mxu1 %v5146_v48 }
 0x120   : > { %4190 = vmatprep.mubr.f32.mxu0 %v5151_v51  ;;  %4223 = vmatprep.subr.mxu1 %v1869_v52 }
 0x121   : > { %4191 = vmatmul.mubr.f32.gmra.mxu0 %v5154_v53  ;;  %4224 = vmatpush3.msra.mxu1 %v1869_v52  ;;  %v5249_v52 = vld [vmem:[#allocation2 + $0x1c1] sm:$0xff] }
 0x122   : > { %4303 = vmatprep.subr.mxu0 %v2179_v54  ;;  %4225 = vmatprep.mubr.f32.mxu1 %v5041_v59  ;;  %v2741_v59 = vld [vmem:[#allocation4 + $0x470] sm:$0xff] }
 0x123   : > { %4304 = vmatpush3.msra.mxu0 %v2179_v54  ;;  %4226 = vmatmul.mubr.f32.vlgmr.msra.gmra.mxu1 %v5043_v61  ;;  %v5169_v61 = vld [vmem:[#allocation2 + $0x71] sm:$0xff] }
 0x124   : > { %4305 = vmatprep.mubr.f32.mxu0 %v2142_v55  ;;  %4353 = vmatprep.subr.mxu1 %v2468_v56  ;;  %v2459_v54 = vld [vmem:[#allocation4 + $0x2b0] sm:$0xff] }
 0x125   : > { %4306 = vmatmul.mubr.f32.vlgmr.msra.gmra.mxu0 %v2143_v57  ;;  %4354 = vmatpush3.msra.mxu1 %v2468_v56 }
 0x126   : > { %4433 = vmatprep.subr.mxu0 %v2742_v58  ;;  %4228 = vmatprep.mubr.f32.mxu1 %v5047_v63  ;;  %v2740_v63 = vld [vmem:[#allocation4 + $0x468] sm:$0xff] }
 0x127   : > { %4434 = vmatpush3.msra.mxu0 %v2742_v58  ;;  %4229 = vmatmul.mubr.f32.gmra.mxu1 %v5050_v1  ;;  %v5177_v1 = vld [vmem:[#allocation2 + $0xa1] sm:$0xff]  ;;  %v5263_v58 = vld [vmem:[#allocation2 + $0x1f1] sm:$0xff] }
 0x128   : > { %4308 = vmatprep.mubr.f32.mxu0 %v5161_v60  ;;  %4355 = vmatprep.subr.mxu1 %v2467_v62 }
 0x129   : > { %4309 = vmatmul.mubr.f32.gmra.mxu0 %v5164_v0  ;;  %4356 = vmatpush3.msra.mxu1 %v2467_v62  ;;  %v2458_v62 = vld [vmem:[#allocation4 + $0x2a8] sm:$0xff] }
 0x12a   : > { %4435 = vmatprep.subr.mxu0 %v2741_v59  ;;  %4231 = vmatprep.mubr.f32.mxu1 %v5055_v3  ;;  %v2739_v3 = vld [vmem:[#allocation4 + $0x460] sm:$0xff] }
 0x12b   : > { %4436 = vmatpush3.msra.mxu0 %v2741_v59  ;;  %4232 = vmatmul.mubr.f32.gmra.mxu1 %v5058_v5  ;;  %v5185_v5 = vld [vmem:[#allocation2 + $0xd1] sm:$0xff]  ;;  %v2732_v59 = vld [vmem:[#allocation4 + $0x428] sm:$0xff] }
 0x12c   : > { %4311 = vmatprep.mubr.f32.mxu0 %v5169_v61  ;;  %4357 = vmatprep.subr.mxu1 %v2466_v2 }
 0x12d   : > { %4312 = vmatmul.mubr.f32.gmra.mxu0 %v5172_v4  ;;  %4358 = vmatpush3.msra.mxu1 %v2466_v2 }
 0x12e   : > { %4437 = vmatprep.subr.mxu0 %v2740_v63  ;;  %4234 = vmatprep.mubr.f32.mxu1 %v5063_v7  ;;  %v2738_v7 = vld [vmem:[#allocation4 + $0x458] sm:$0xff] }
 0x12f   : > { %4438 = vmatpush3.msra.mxu0 %v2740_v63  ;;  %4235 = vmatmul.mubr.f32.gmra.mxu1 %v5066_v9  ;;  %v5275_v63 = vld [vmem:[#allocation2 + $0x221] sm:$0xff] }
 0x130   : > { %4314 = vmatprep.mubr.f32.mxu0 %v5177_v1  ;;  %4359 = vmatprep.subr.mxu1 %v2465_v6 }
 0x131   : > { %4315 = vmatmul.mubr.f32.gmra.mxu0 %v5180_v8  ;;  %4360 = vmatpush3.msra.mxu1 %v2465_v6  ;;  %v2457_v6 = vld [vmem:[#allocation4 + $0x2a0] sm:$0xff] }
 0x132   : > { %4439 = vmatprep.subr.mxu0 %v2739_v3  ;;  %4237 = vmatprep.mubr.f32.mxu1 %v5071_v11  ;;  %v5200_v11 = vld [vmem:[#allocation2 + $0x109] sm:$0xff] }
 0x133   : > { %4440 = vmatpush3.msra.mxu0 %v2739_v3  ;;  %4238 = vmatmul.mubr.f32.gmra.mxu1 %v5074_v13 }
 0x134   : > { %4317 = vmatprep.mubr.f32.mxu0 %v5185_v5  ;;  %4361 = vmatprep.subr.mxu1 %v2464_v10  ;;  %v5192_v9 = vpop.f32.mrf.mxu1 }
 0x135   : > { %4318 = vmatmul.mubr.f32.gmra.mxu0 %v5188_v12  ;;  %4362 = vmatpush3.msra.mxu1 %v2464_v10  ;;  %v5197_v22 = vpop.f32.mrf.mxu0  ;;  %v2731_v10 = vld [vmem:[#allocation4 + $0x420] sm:$0xff] }
 0x136   : > { %4441 = vmatprep.subr.mxu0 %v2738_v7  ;;  %4240 = vmatprep.mubr.f32.mxu1 %v5079_v15  ;;  %v5202_v13 = vpop.f32.mrf.mxu1 }
 0x137   : > { %4442 = vmatpush3.msra.mxu0 %v2738_v7  ;;  %4241 = vmatmul.mubr.f32.gmra.mxu1 %v5082_v20  ;;  %v5205_v30 = vpop.f32.mrf.mxu0  ;;  %v2736_v20 = vld [vmem:[#allocation4 + $0x448] sm:$0xff] }
 0x138   : > { %4320 = vmatprep.mubr.f32.mxu0 %v5195_v14  ;;  %4363 = vmatprep.subr.mxu1 %v2463_v16 }
 0x139   : > { %4321 = vmatmul.mubr.f32.gmra.mxu0 %v5200_v11  ;;  %4364 = vmatpush3.msra.mxu1 %v2463_v16  ;;  %v5211_v15 = vpop.f32.mrf.mxu1  ;;  %v5289_v16 = vld [vmem:[#allocation2 + $0x251] sm:$0xff] }
 0x13a   : > { %4443 = vmatprep.subr.mxu0 %v2737_v25  ;;  %4243 = vmatprep.mubr.f32.mxu1 %v5087_v23 }
 0x13b   : > { %4444 = vmatpush3.msra.mxu0 %v2737_v25  ;;  %4244 = vmatmul.mubr.f32.gmra.mxu1 %v5090_v28  ;;  %v5217_v36 = vpop.f32.mrf.mxu0  ;;  %v5219_v38 = vpop.f32.mrf.mxu1  ;;  %v5228_v28 = vld [vmem:[#allocation2 + $0x169] sm:$0xff]  ;;  %v2456_v25 = vld [vmem:[#allocation4 + $0x298] sm:$0xff] }
 0x13c   : > { %4323 = vmatprep.mubr.f32.mxu0 %v5209_v33  ;;  %4365 = vmatprep.subr.mxu1 %v2462_v21 }
 0x13d   : > { %4324 = vmatmul.mubr.f32.gmra.mxu0 %v5214_v29  ;;  %4366 = vmatpush3.msra.mxu1 %v2462_v21  ;;  %v5225_v23 = vpop.f32.mrf.mxu0 }
 0x13e   : > { %4445 = vmatprep.subr.mxu0 %v2736_v20  ;;  %4246 = vmatprep.mubr.f32.mxu1 %v5095_v31 }
 0x13f   : > { %4446 = vmatpush3.msra.mxu0 %v2736_v20  ;;  %4247 = vmatmul.mubr.f32.gmra.mxu1 %v5098_v18  ;;  %v5231_v49 = vpop.f32.mrf.mxu1  ;;  %v5242_v18 = vld [vmem:[#allocation2 + $0x199] sm:$0xff] }
 0x140   : > { %4326 = vmatprep.mubr.f32.mxu0 %v5223_v41  ;;  %4367 = vmatprep.subr.mxu1 %v2461_v44 }
 0x141   : > { %4327 = vmatmul.mubr.f32.gmra.mxu0 %v5228_v28  ;;  %4368 = vmatpush3.msra.mxu1 %v2461_v44  ;;  %v5237_v35 = vpop.f32.mrf.mxu0  ;;  %v5239_v31 = vpop.f32.mrf.mxu1 }
 0x142   : > { %4447 = vmatprep.subr.mxu0 %v2735_v46  ;;  %4249 = vmatprep.mubr.f32.mxu1 %v5103_v26  ;;  %v5254_v26 = vld [vmem:[#allocation2 + $0x1c9] sm:$0xff] }
 0x143   : > { %4448 = vmatpush3.msra.mxu0 %v2735_v46  ;;  %4250 = vmatmul.mubr.f32.gmra.mxu1 %v5106_v34  ;;  %v5245_v50 = vpop.f32.mrf.mxu0  ;;  %v2733_v34 = vld [vmem:[#allocation4 + $0x430] sm:$0xff]  ;;  %v5303_v46 = vld [vmem:[#allocation2 + $0x281] sm:$0xff] }
 0x144   : > { %4329 = vmatprep.mubr.f32.mxu0 %v5235_v19  ;;  %4369 = vmatprep.subr.mxu1 %v2460_v27 }
 0x145   : > { %4330 = vmatmul.mubr.f32.gmra.mxu0 %v5242_v18  ;;  %4370 = vmatpush3.msra.mxu1 %v2460_v27  ;;  %v5251_v55 = vpop.f32.mrf.mxu1  ;;  %v2455_v27 = vld [vmem:[#allocation4 + $0x290] sm:$0xff] }
 0x146   : > { %4449 = vmatprep.subr.mxu0 %v2734_v43  ;;  %4252 = vmatprep.mubr.f32.mxu1 %v5111_v37 }
 0x147   : > { %4450 = vmatpush3.msra.mxu0 %v2734_v43  ;;  %4253 = vmatmul.mubr.f32.gmra.mxu1 %v5114_v39  ;;  %v5257_v56 = vpop.f32.mrf.mxu0  ;;  %v5259_v57 = vpop.f32.mrf.mxu1  ;;  %v5268_v39 = vld [vmem:[#allocation2 + $0x1f9] sm:$0xff]  ;;  %v2729_v43 = vld [vmem:[#allocation4 + $0x410] sm:$0xff] }
 0x148   : > { %4332 = vmatprep.mubr.f32.mxu0 %v5249_v52  ;;  %4371 = vmatprep.subr.mxu1 %v2459_v54 }
 0x149   : > { %4333 = vmatmul.mubr.f32.gmra.mxu0 %v5254_v26  ;;  %4372 = vmatpush3.msra.mxu1 %v2459_v54  ;;  %v5265_v37 = vpop.f32.mrf.mxu0 }
 0x14a   : > { %4451 = vmatprep.subr.mxu0 %v2733_v34  ;;  %4255 = vmatprep.mubr.f32.mxu1 %v5119_v42 }
 0x14b   : > { %4452 = vmatpush3.msra.mxu0 %v2733_v34  ;;  %4256 = vmatmul.mubr.f32.gmra.mxu1 %v5122_v45  ;;  %v5271_v2 = vpop.f32.mrf.mxu1  ;;  %v5282_v45 = vld [vmem:[#allocation2 + $0x229] sm:$0xff]  ;;  %v5315_v34 = vld [vmem:[#allocation2 + $0x2b1] sm:$0xff] }
 0x14c   : > { %4335 = vmatprep.mubr.f32.mxu0 %v5263_v58  ;;  %4373 = vmatprep.subr.mxu1 %v2458_v62 }
 0x14d   : > { %4336 = vmatmul.mubr.f32.gmra.mxu0 %v5268_v39  ;;  %4374 = vmatpush3.msra.mxu1 %v2458_v62  ;;  %v5277_v3 = vpop.f32.mrf.mxu0  ;;  %v5279_v42 = vpop.f32.mrf.mxu1  ;;  %v2454_v62 = vld [vmem:[#allocation4 + $0x288] sm:$0xff] }
 0x14e   : > { %4453 = vmatprep.subr.mxu0 %v2732_v59  ;;  %4258 = vmatprep.mubr.f32.mxu1 %v5127_v47  ;;  %v5294_v47 = vld [vmem:[#allocation2 + $0x259] sm:$0xff] }
 0x14f   : > { %4454 = vmatpush3.msra.mxu0 %v2732_v59  ;;  %4259 = vmatmul.mubr.f32.gmra.mxu1 %v5130_v17  ;;  %v5285_v7 = vpop.f32.mrf.mxu0  ;;  %v2730_v17 = vld [vmem:[#allocation4 + $0x418] sm:$0xff] }
 0x150   : > { %4338 = vmatprep.mubr.f32.mxu0 %v5275_v63  ;;  %4375 = vmatprep.subr.mxu1 %v2457_v6 }
 0x151   : > { %4339 = vmatmul.mubr.f32.gmra.mxu0 %v5282_v45  ;;  %4376 = vmatpush3.msra.mxu1 %v2457_v6  ;;  %v5291_v21 = vpop.f32.mrf.mxu1  ;;  %v2728_v6 = vld [vmem:[#allocation4 + $0x408] sm:$0xff] }
 0x152   : > { %4455 = vmatprep.subr.mxu0 %v2731_v10  ;;  %4261 = vmatprep.mubr.f32.mxu1 %v5135_v24 }
 0x153   : > { %4456 = vmatpush3.msra.mxu0 %v2731_v10  ;;  %4262 = vmatmul.mubr.f32.gmra.mxu1 %v5138_v32  ;;  %v5297_v20 = vpop.f32.mrf.mxu0  ;;  %v5299_v44 = vpop.f32.mrf.mxu1  ;;  %v5308_v32 = vld [vmem:[#allocation2 + $0x289] sm:$0xff] }
 0x154   : > { %5942 = vst [vmem:[#allocation23_spill] sm:$0xff] %v5299_v44  ;;  %4341 = vmatprep.mubr.f32.mxu0 %v5289_v16  ;;  %4377 = vmatprep.subr.mxu1 %v2456_v25  ;;  %v2727_v44 = vld [vmem:[#allocation4 + $0x400] sm:$0xff] }
 0x155   : > { %4342 = vmatmul.mubr.f32.gmra.mxu0 %v5294_v47  ;;  %4378 = vmatpush3.msra.mxu1 %v2456_v25  ;;  %v5305_v24 = vpop.f32.mrf.mxu0  ;;  %v1318_v25 = vld [vmem:[#allocation2 + $0x340] sm:$0xff] }
 0x156   : > { %4457 = vmatprep.subr.mxu0 %v2730_v17  ;;  %4264 = vmatprep.mubr.f32.mxu1 %v5143_v40 }
 0x157   : > { %4458 = vmatpush3.msra.mxu0 %v2730_v17  ;;  %4265 = vmatmul.mubr.f32.gmra.mxu1 %v5146_v48  ;;  %v5311_v54 = vpop.f32.mrf.mxu1  ;;  %v5322_v48 = vld [vmem:[#allocation2 + $0x2b9] sm:$0xff]  ;;  %v1319_v17 = vld [vmem:[#allocation2 + $0x348] sm:$0xff] }
 0x158   : > { %5943 = vst [vmem:[#allocation24_spill] sm:$0xff] %v5311_v54  ;;  %4344 = vmatprep.mubr.f32.mxu0 %v5303_v46  ;;  %4379 = vmatprep.subr.mxu1 %v2455_v27 }
 0x159   : > { %4345 = vmatmul.mubr.f32.gmra.mxu0 %v5308_v32  ;;  %4380 = vmatpush3.msra.mxu1 %v2455_v27  ;;  %v5317_v59 = vpop.f32.mrf.mxu0  ;;  %v5319_v40 = vpop.f32.mrf.mxu1 }
 0x15a   : > { %5944 = vst [vmem:[#allocation25_spill] sm:$0xff] %v5319_v40  ;;  %4459 = vmatprep.subr.mxu0 %v2729_v43  ;;  %4267 = vmatprep.mubr.f32.mxu1 %v5151_v51  ;;  %v5331_v40 = vld [vmem:[#allocation2 + $0x2e1] sm:$0xff] }
 0x15b   : > { %4460 = vmatpush3.msra.mxu0 %v2729_v43  ;;  %4268 = vmatmul.mubr.f32.gmra.mxu1 %v5154_v53  ;;  %v5325_v10 = vpop.f32.mrf.mxu0  ;;  %v2453_v51 = vld [vmem:[#allocation4 + $0x280] sm:$0xff]  ;;  %v5333_v43 = vld [vmem:[#allocation2 + $0x2e9] sm:$0xff] }
 0x15c   : > { %4347 = vmatprep.mubr.f32.mxu0 %v5315_v34  ;;  %4381 = vmatprep.subr.mxu1 %v2454_v62 }
 0x15d   : > { %4348 = vmatmul.mubr.f32.gmra.mxu0 %v5322_v48  ;;  %4382 = vmatpush3.msra.mxu1 %v2454_v62  ;;  %v5329_v27 = vpop.f32.mrf.mxu1 }
 0x15e   : > { %5945 = vst [vmem:[#allocation26_spill] sm:$0xff] %v5329_v27  ;;  %4461 = vmatprep.subr.mxu0 %v2728_v6  ;;  %4270 = vmatprep.mubr.f32.mxu1 %v1318_v25 }
 0x15f   : > { %4462 = vmatpush3.msra.mxu0 %v2728_v6  ;;  %4271 = vmatmul.mubr.f32.gmra.mxu1 %v1319_v17  ;;  %v5335_v53 = vpop.f32.mrf.mxu0  ;;  %v5337_v54 = vpop.f32.mrf.mxu1 }
 0x160   : > { %5946 = vst [vmem:[#allocation27_spill] sm:$0xff] %v5337_v54  ;;  %4350 = vmatprep.mubr.f32.mxu0 %v5331_v40  ;;  %4383 = vmatprep.subr.mxu1 %v2453_v51 }
 0x161   : > { %4351 = vmatmul.mubr.f32.gmra.mxu0 %v5333_v43  ;;  %4384 = vmatpush3.msra.mxu1 %v2453_v51  ;;  %v5341_v62 = vpop.f32.mrf.mxu0 }
 0x162   : > { %4463 = vmatprep.subr.mxu0 %v2727_v44  ;;  %4385 = vmatprep.mubr.f32.mxu1 %v5161_v60 }
 0x163   : > { %4464 = vmatpush3.msra.mxu0 %v2727_v44  ;;  %v3907_v25 = vpop.f32.mrf.mxu1  ;;  %4386 = vmatmul.mubr.f32.vlgmr.msra.gmra.mxu1 %v5164_v0 }
 0x164   : > { %v857_v6 = vadd.f32 %v3907_v25, %v5197_v22  ;;  %4465 = vmatprep.mubr.f32.mxu0 %v5169_v61  ;;  %4388 = vmatprep.mubr.f32.mxu1 %v5169_v61 }
 0x165   : > { %v3987_v17 = vpop.f32.mrf.mxu0  ;;  %4466 = vmatmul.mubr.f32.vlgmr.msra.gmra.mxu0 %v5172_v4  ;;  %v851_v54 = vpop.f32.mrf.mxu1 }
 0x166   : > { %v5349_v51 = vadd.f32 %v3987_v17, %v857_v6  ;;  %v852_v27 = vadd.f32 %v851_v54, %v5205_v30  ;;  %4468 = vmatprep.mubr.f32.mxu0 %v5177_v1 }
 0x167   : > { %v1093_v60 = vpop.f32.mrf.mxu0  ;;  %v3910_v44 = vpop.f32.mrf.mxu1  ;;  %4389 = vmatmul.mubr.f32.gmra.mxu1 %v5172_v4 }
 0x168   : > { %v5354_v0 = vadd.f32 %v1093_v60, %v852_v27  ;;  %v867_v22 = vadd.f32 %v3910_v44, %v5217_v36  ;;  %4391 = vmatprep.mubr.f32.mxu1 %v5177_v1 }
 0x169   : > { %v3990_v61 = vpop.f32.mrf.mxu0  ;;  %4469 = vmatmul.mubr.f32.gmra.mxu0 %v5180_v8  ;;  %v861_v25 = vpop.f32.mrf.mxu1 }
 0x16a   : > { %v5359_v6 = vadd.f32 %v3990_v61, %v867_v22  ;;  %v862_v30 = vadd.f32 %v861_v25, %v5225_v23  ;;  %4471 = vmatprep.mubr.f32.mxu0 %v5185_v5 }
 0x16b   : > { %v1103_v54 = vpop.f32.mrf.mxu0  ;;  %v3913_v17 = vpop.f32.mrf.mxu1  ;;  %4392 = vmatmul.mubr.f32.gmra.mxu1 %v5180_v8 }
 0x16c   : > { %v5364_v4 = vadd.f32 %v1103_v54, %v862_v30  ;;  %v877_v36 = vadd.f32 %v3913_v17, %v5237_v35  ;;  %4394 = vmatprep.mubr.f32.mxu1 %v5185_v5 }
 0x16d   : > { %v3993_v1 = vpop.f32.mrf.mxu0  ;;  %4472 = vmatmul.mubr.f32.gmra.mxu0 %v5188_v12  ;;  %v871_v27 = vpop.f32.mrf.mxu1 }
 0x16e   : > { %v5369_v60 = vadd.f32 %v3993_v1, %v877_v36  ;;  %v872_v23 = vadd.f32 %v871_v27, %v5245_v50  ;;  %4474 = vmatprep.mubr.f32.mxu0 %v5195_v14 }
 0x16f   : > { %v1113_v44 = vpop.f32.mrf.mxu0  ;;  %v3916_v22 = vpop.f32.mrf.mxu1  ;;  %4395 = vmatmul.mubr.f32.gmra.mxu1 %v5188_v12 }
 0x170   : > { %v5374_v8 = vadd.f32 %v1113_v44, %v872_v23  ;;  %v887_v35 = vadd.f32 %v3916_v22, %v5257_v56  ;;  %4397 = vmatprep.mubr.f32.mxu1 %v5195_v14 }
 0x171   : > { %v3996_v5 = vpop.f32.mrf.mxu0  ;;  %4475 = vmatmul.mubr.f32.gmra.mxu0 %v5200_v11  ;;  %v881_v61 = vpop.f32.mrf.mxu1 }
 0x172   : > { %v5379_v25 = vadd.f32 %v3996_v5, %v887_v35  ;;  %v882_v50 = vadd.f32 %v881_v61, %v5265_v37  ;;  %4477 = vmatprep.mubr.f32.mxu0 %v5209_v33 }
 0x173   : > { %v1123_v30 = vpop.f32.mrf.mxu0  ;;  %v3919_v54 = vpop.f32.mrf.mxu1  ;;  %4398 = vmatmul.mubr.f32.gmra.mxu1 %v5200_v11 }
 0x174   : > { %v5384_v12 = vadd.f32 %v1123_v30, %v882_v50  ;;  %v897_v56 = vadd.f32 %v3919_v54, %v5277_v3  ;;  %4400 = vmatprep.mubr.f32.mxu1 %v5209_v33 }
 0x175   : > { %v3999_v14 = vpop.f32.mrf.mxu0  ;;  %4478 = vmatmul.mubr.f32.gmra.mxu0 %v5214_v29  ;;  %v891_v17 = vpop.f32.mrf.mxu1 }
 0x176   : > { %v5389_v36 = vadd.f32 %v3999_v14, %v897_v56  ;;  %v892_v37 = vadd.f32 %v891_v17, %v5285_v7  ;;  %4480 = vmatprep.mubr.f32.mxu0 %v5223_v41 }
 0x177   : > { %v1133_v1 = vpop.f32.mrf.mxu0  ;;  %v3922_v27 = vpop.f32.mrf.mxu1  ;;  %4401 = vmatmul.mubr.f32.gmra.mxu1 %v5214_v29 }
 0x178   : > { %v5394_v11 = vadd.f32 %v1133_v1, %v892_v37  ;;  %v907_v3 = vadd.f32 %v3922_v27, %v5297_v20  ;;  %4403 = vmatprep.mubr.f32.mxu1 %v5223_v41 }
 0x179   : > { %v4002_v33 = vpop.f32.mrf.mxu0  ;;  %4481 = vmatmul.mubr.f32.gmra.mxu0 %v5228_v28  ;;  %v901_v23 = vpop.f32.mrf.mxu1 }
 0x17a   : > { %v5399_v44 = vadd.f32 %v4002_v33, %v907_v3  ;;  %v902_v7 = vadd.f32 %v901_v23, %v5305_v24  ;;  %4483 = vmatprep.mubr.f32.mxu0 %v5235_v19 }
 0x17b   : > { %v1143_v22 = vpop.f32.mrf.mxu0  ;;  %v3925_v35 = vpop.f32.mrf.mxu1  ;;  %4404 = vmatmul.mubr.f32.gmra.mxu1 %v5228_v28 }
 0x17c   : > { %v5404_v29 = vadd.f32 %v1143_v22, %v902_v7  ;;  %v917_v20 = vadd.f32 %v3925_v35, %v5317_v59  ;;  %4406 = vmatprep.mubr.f32.mxu1 %v5235_v19 }
 0x17d   : > { %v4005_v41 = vpop.f32.mrf.mxu0  ;;  %4484 = vmatmul.mubr.f32.gmra.mxu0 %v5242_v18  ;;  %v911_v5 = vpop.f32.mrf.mxu1 }
 0x17e   : > { %v5409_v61 = vadd.f32 %v4005_v41, %v917_v20  ;;  %v912_v24 = vadd.f32 %v911_v5, %v5325_v10  ;;  %4486 = vmatprep.mubr.f32.mxu0 %v5249_v52 }
 0x17f   : > { %v1153_v50 = vpop.f32.mrf.mxu0  ;;  %v3928_v30 = vpop.f32.mrf.mxu1  ;;  %4407 = vmatmul.mubr.f32.gmra.mxu1 %v5242_v18 }
 0x180   : > { %v5414_v28 = vadd.f32 %v1153_v50, %v912_v24  ;;  %v927_v59 = vadd.f32 %v3928_v30, %v5335_v53  ;;  %4409 = vmatprep.mubr.f32.mxu1 %v5249_v52 }
 0x181   : > { %v4008_v19 = vpop.f32.mrf.mxu0  ;;  %4487 = vmatmul.mubr.f32.gmra.mxu0 %v5254_v26  ;;  %v921_v54 = vpop.f32.mrf.mxu1 }
 0x182   : > { %v5419_v56 = vadd.f32 %v4008_v19, %v927_v59  ;;  %v922_v10 = vadd.f32 %v921_v54, %v5341_v62  ;;  %4489 = vmatprep.mubr.f32.mxu0 %v5263_v58 }
 0x183   : > { %v1163_v14 = vpop.f32.mrf.mxu0  ;;  %v3931_v17 = vpop.f32.mrf.mxu1  ;;  %4410 = vmatmul.mubr.f32.gmra.mxu1 %v5254_v26 }
 0x184   : > { %v5424_v18 = vadd.f32 %v1163_v14, %v922_v10  ;;  %v937_v53 = vadd.f32 %v3931_v17, %v5192_v9  ;;  %4412 = vmatprep.mubr.f32.mxu1 %v5263_v58 }
 0x185   : > { %v4011_v52 = vpop.f32.mrf.mxu0  ;;  %4490 = vmatmul.mubr.f32.gmra.mxu0 %v5268_v39  ;;  %v931_v37 = vpop.f32.mrf.mxu1 }
 0x186   : > { %v5429_v1 = vadd.f32 %v4011_v52, %v937_v53  ;;  %v932_v62 = vadd.f32 %v931_v37, %v5202_v13  ;;  %4492 = vmatprep.mubr.f32.mxu0 %v5275_v63 }
 0x187   : > { %v1173_v27 = vpop.f32.mrf.mxu0  ;;  %v3934_v3 = vpop.f32.mrf.mxu1  ;;  %4413 = vmatmul.mubr.f32.gmra.mxu1 %v5268_v39 }
 0x188   : > { %v5434_v26 = vadd.f32 %v1173_v27, %v932_v62  ;;  %v947_v9 = vadd.f32 %v3934_v3, %v5211_v15  ;;  %4415 = vmatprep.mubr.f32.mxu1 %v5275_v63  ;;  %v2175_v62 = vld [vmem:[#allocation2 + $0x319] sm:$0xff] }
 0x189   : > { %v4014_v58 = vpop.f32.mrf.mxu0  ;;  %4493 = vmatmul.mubr.f32.gmra.mxu0 %v5282_v45  ;;  %v941_v33 = vpop.f32.mrf.mxu1 }
 0x18a   : > { %v5439_v23 = vadd.f32 %v4014_v58, %v947_v9  ;;  %v942_v13 = vadd.f32 %v941_v33, %v5219_v38  ;;  %4495 = vmatprep.mubr.f32.mxu0 %v5289_v16 }
 0x18b   : > { %v1183_v7 = vpop.f32.mrf.mxu0  ;;  %v3937_v22 = vpop.f32.mrf.mxu1  ;;  %4416 = vmatmul.mubr.f32.gmra.mxu1 %v5282_v45 }
 0x18c   : > { %v5444_v39 = vadd.f32 %v1183_v7, %v942_v13  ;;  %v957_v15 = vadd.f32 %v3937_v22, %v5231_v49  ;;  %4418 = vmatprep.mubr.f32.mxu1 %v5289_v16  ;;  %v5949_v7 = vld [vmem:[#allocation25_spill] sm:$0xff] }
 0x18d   : > { %v4017_v63 = vpop.f32.mrf.mxu0  ;;  %4496 = vmatmul.mubr.f32.gmra.mxu0 %v5294_v47  ;;  %v951_v35 = vpop.f32.mrf.mxu1 }
 0x18e   : > { %v5449_v20 = vadd.f32 %v4017_v63, %v957_v15  ;;  %v952_v38 = vadd.f32 %v951_v35, %v5239_v31  ;;  %4498 = vmatprep.mubr.f32.mxu0 %v5303_v46  ;;  %v2177_v15 = vld [vmem:[#allocation2 + $0x349] sm:$0xff] }
 0x18f   : > { %v1193_v41 = vpop.f32.mrf.mxu0  ;;  %v3940_v5 = vpop.f32.mrf.mxu1  ;;  %4419 = vmatmul.mubr.f32.gmra.mxu1 %v5294_v47 }
 0x190   : > { %v5454_v45 = vadd.f32 %v1193_v41, %v952_v38  ;;  %v967_v49 = vadd.f32 %v3940_v5, %v5251_v55  ;;  %4421 = vmatprep.mubr.f32.mxu1 %v5303_v46 }
 0x191   : > { %v4020_v16 = vpop.f32.mrf.mxu0  ;;  %4499 = vmatmul.mubr.f32.gmra.mxu0 %v5308_v32  ;;  %v961_v24 = vpop.f32.mrf.mxu1 }
 0x192   : > { %v5459_v50 = vadd.f32 %v4020_v16, %v967_v49  ;;  %v962_v31 = vadd.f32 %v961_v24, %v5259_v57  ;;  %4501 = vmatprep.mubr.f32.mxu0 %v5315_v34  ;;  %v5951_v24 = vld [vmem:[#allocation27_spill] sm:$0xff] }
 0x193   : > { %v1203_v30 = vpop.f32.mrf.mxu0  ;;  %v3943_v59 = vpop.f32.mrf.mxu1  ;;  %4422 = vmatmul.mubr.f32.gmra.mxu1 %v5308_v32  ;;  %v2174_v32 = vld [vmem:[#allocation2 + $0x311] sm:$0xff] }
 0x194   : > { %v5464_v47 = vadd.f32 %v1203_v30, %v962_v31  ;;  %v977_v55 = vadd.f32 %v3943_v59, %v5271_v2  ;;  %4424 = vmatprep.mubr.f32.mxu1 %v5315_v34 }
 0x195   : > { %v4023_v46 = vpop.f32.mrf.mxu0  ;;  %4502 = vmatmul.mubr.f32.gmra.mxu0 %v5322_v48  ;;  %v971_v19 = vpop.f32.mrf.mxu1 }
 0x196   : > { %v5469_v54 = vadd.f32 %v4023_v46, %v977_v55  ;;  %v972_v57 = vadd.f32 %v971_v19, %v5279_v42  ;;  %4504 = vmatprep.mubr.f32.mxu0 %v5331_v40  ;;  %v5947_v42 = vld [vmem:[#allocation23_spill] sm:$0xff] }
 0x197   : > { %v1213_v10 = vpop.f32.mrf.mxu0  ;;  %v3946_v14 = vpop.f32.mrf.mxu1  ;;  %4425 = vmatmul.mubr.f32.gmra.mxu1 %v5322_v48  ;;  %v2176_v48 = vld [vmem:[#allocation2 + $0x341] sm:$0xff] }
 0x198   : > { %v5474_v17 = vadd.f32 %v1213_v10, %v972_v57  ;;  %v987_v2 = vadd.f32 %v3946_v14, %v5291_v21  ;;  %4427 = vmatprep.mubr.f32.mxu1 %v5331_v40  ;;  %v5948_v21 = vld [vmem:[#allocation24_spill] sm:$0xff] }
 0x199   : > { %v4026_v34 = vpop.f32.mrf.mxu0  ;;  %4505 = vmatmul.mubr.f32.gmra.mxu0 %v5333_v43  ;;  %v981_v53 = vpop.f32.mrf.mxu1 }
 0x19a   : > { %v5479_v52 = vadd.f32 %v4026_v34, %v987_v2  ;;  %v982_v37 = vadd.f32 %v981_v53, %v5947_v42  ;;  %4507 = vmatprep.mubr.f32.mxu0 %v2174_v32 }
 0x19b   : > { %v1223_v27 = vpop.f32.mrf.mxu0  ;;  %v3949_v3 = vpop.f32.mrf.mxu1  ;;  %4428 = vmatmul.mubr.f32.gmra.mxu1 %v5333_v43  ;;  %v5950_v43 = vld [vmem:[#allocation26_spill] sm:$0xff] }
 0x19c   : > { %v5483_v9 = vadd.f32 %v1223_v27, %v982_v37  ;;  %v997_v58 = vadd.f32 %v3949_v3, %v5948_v21  ;;  %4430 = vmatprep.mubr.f32.mxu1 %v2174_v32 }
 0x19d   : > { %v4029_v40 = vpop.f32.mrf.mxu0  ;;  %4508 = vmatmul.mubr.f32.gmra.mxu0 %v2175_v62  ;;  %v991_v33 = vpop.f32.mrf.mxu1 }
 0x19e   : > { %v5486_v13 = vadd.f32 %v4029_v40, %v997_v58  ;;  %v992_v22 = vadd.f32 %v991_v33, %v5949_v7  ;;  %4510 = vmatprep.mubr.f32.mxu0 %v2176_v48 }
 0x19f   : > { %v1233_v63 = vpop.f32.mrf.mxu0  ;;  %v3952_v35 = vpop.f32.mrf.mxu1  ;;  %4431 = vmatmul.mubr.f32.gmra.mxu1 %v2175_v62 }
 0x1a0   : > { %v5489_v38 = vadd.f32 %v1233_v63, %v992_v22  ;;  %v1007_v41 = vadd.f32 %v3952_v35, %v5950_v43 }
 0x1a1   : > { %v4032_v5 = vpop.f32.mrf.mxu0  ;;  %4511 = vmatmul.mubr.f32.gmra.mxu0 %v2177_v15  ;;  %v1001_v49 = vpop.f32.mrf.mxu1 }
 0x1a2   : > { %v5492_v16 = vadd.f32 %v4032_v5, %v1007_v41  ;;  %v1002_v31 = vadd.f32 %v1001_v49, %v5951_v24 }
 0x1a3   : > { %v1243_v30 = vpop.f32.mrf.mxu0  ;;  %v4067_v59 = vpop.f32.mrf.mxu1 }
 0x1a4   : > { %v5495_v55 = vadd.f32 %v1243_v30, %v1002_v31  ;;  %v1563_v46 = vadd.f32 %v4067_v59, %v5349_v51 }
 0x1a5   : > { %v4147_v19 = vpop.f32.mrf.mxu0  ;;  %v1403_v57 = vpop.f32.mrf.mxu1 }
 0x1a6   : > { %v5498_v10 = vadd.f32 %v4147_v19, %v1563_v46  ;;  %v1562_v14 = vadd.f32 %v1403_v57, %v5354_v0 }
 0x1a7   : > { %v1677_v32 = vpop.f32.mrf.mxu0  ;;  %v4070_v2 = vpop.f32.mrf.mxu1 }
 0x1a8   : > { %v5501_v34 = vadd.f32 %v1677_v32, %v1562_v14  ;;  %v1565_v53 = vadd.f32 %v4070_v2, %v5359_v6 }
 0x1a9   : > { %v4150_v42 = vpop.f32.mrf.mxu0  ;;  %v1413_v37 = vpop.f32.mrf.mxu1 }
 0x1aa   : > { %v5504_v62 = vadd.f32 %v4150_v42, %v1565_v53  ;;  %v1564_v27 = vadd.f32 %v1413_v37, %v5364_v4 }
 0x1ab   : > { %v1687_v3 = vpop.f32.mrf.mxu0  ;;  %v4073_v51 = vpop.f32.mrf.mxu1 }
 0x1ac   : > { %v5507_v48 = vadd.f32 %v1687_v3, %v1564_v27  ;;  %v1567_v21 = vadd.f32 %v4073_v51, %v5369_v60 }
 0x1ad   : > { %v4153_v58 = vpop.f32.mrf.mxu0  ;;  %v1423_v0 = vpop.f32.mrf.mxu1 }
 0x1ae   : > { %v5510_v40 = vadd.f32 %v4153_v58, %v1567_v21  ;;  %v1566_v33 = vadd.f32 %v1423_v0, %v5374_v8 }
 0x1af   : > { %v1697_v7 = vpop.f32.mrf.mxu0  ;;  %v4076_v6 = vpop.f32.mrf.mxu1 }
 0x1b0   : > { %v5513_v22 = vadd.f32 %v1697_v7, %v1566_v33  ;;  %v1569_v15 = vadd.f32 %v4076_v6, %v5379_v25 }
 0x1b1   : > { %v4156_v63 = vpop.f32.mrf.mxu0  ;;  %v1433_v4 = vpop.f32.mrf.mxu1 }
 0x1b2   : > { %v5516_v35 = vadd.f32 %v4156_v63, %v1569_v15  ;;  %v1568_v43 = vadd.f32 %v1433_v4, %v5384_v12 }
 0x1b3   : > { %v1707_v41 = vpop.f32.mrf.mxu0  ;;  %v4079_v60 = vpop.f32.mrf.mxu1 }
 0x1b4   : > { %v5519_v5 = vadd.f32 %v1707_v41, %v1568_v43  ;;  %v1571_v49 = vadd.f32 %v4079_v60, %v5389_v36 }
 0x1b5   : > { %v4159_v24 = vpop.f32.mrf.mxu0  ;;  %v1443_v8 = vpop.f32.mrf.mxu1 }
 0x1b6   : > { %v5522_v31 = vadd.f32 %v4159_v24, %v1571_v49  ;;  %v1570_v30 = vadd.f32 %v1443_v8, %v5394_v11 }
 0x1b7   : > { %v1717_v59 = vpop.f32.mrf.mxu0  ;;  %v4082_v25 = vpop.f32.mrf.mxu1 }
 0x1b8   : > { %v5525_v46 = vadd.f32 %v1717_v59, %v1570_v30  ;;  %v1573_v19 = vadd.f32 %v4082_v25, %v5399_v44 }
 0x1b9   : > { %v4162_v57 = vpop.f32.mrf.mxu0  ;;  %v1453_v12 = vpop.f32.mrf.mxu1 }
 0x1ba   : > { %v5528_v14 = vadd.f32 %v4162_v57, %v1573_v19  ;;  %v1572_v32 = vadd.f32 %v1453_v12, %v5404_v29 }
 0x1bb   : > { %v1727_v2 = vpop.f32.mrf.mxu0  ;;  %v4085_v36 = vpop.f32.mrf.mxu1 }
 0x1bc   : > { %v5531_v53 = vadd.f32 %v1727_v2, %v1572_v32  ;;  %v1575_v42 = vadd.f32 %v4085_v36, %v5409_v61 }
 0x1bd   : > { %v4165_v37 = vpop.f32.mrf.mxu0  ;;  %v1463_v11 = vpop.f32.mrf.mxu1 }
 0x1be   : > { %v5534_v27 = vadd.f32 %v4165_v37, %v1575_v42  ;;  %v1574_v3 = vadd.f32 %v1463_v11, %v5414_v28 }
 0x1bf   : > { %v1737_v51 = vpop.f32.mrf.mxu0  ;;  %v4088_v44 = vpop.f32.mrf.mxu1 }
 0x1c0   : > { %v5537_v21 = vadd.f32 %v1737_v51, %v1574_v3  ;;  %v1577_v58 = vadd.f32 %v4088_v44, %v5419_v56 }
 0x1c1   : > { %v4168_v0 = vpop.f32.mrf.mxu0  ;;  %v1473_v29 = vpop.f32.mrf.mxu1 }
 0x1c2   : > { %v5540_v33 = vadd.f32 %v4168_v0, %v1577_v58  ;;  %v1576_v7 = vadd.f32 %v1473_v29, %v5424_v18 }
 0x1c3   : > { %v1747_v6 = vpop.f32.mrf.mxu0  ;;  %v4091_v61 = vpop.f32.mrf.mxu1 }
 0x1c4   : > { %v5543_v15 = vadd.f32 %v1747_v6, %v1576_v7  ;;  %v1579_v63 = vadd.f32 %v4091_v61, %v5429_v1 }
 0x1c5   : > { %v4171_v4 = vpop.f32.mrf.mxu0  ;;  %v1483_v28 = vpop.f32.mrf.mxu1 }
 0x1c6   : > { %v5546_v43 = vadd.f32 %v4171_v4, %v1579_v63  ;;  %v1578_v41 = vadd.f32 %v1483_v28, %v5434_v26 }
 0x1c7   : > { %v1757_v60 = vpop.f32.mrf.mxu0  ;;  %v4094_v56 = vpop.f32.mrf.mxu1 }
 0x1c8   : > { %v5549_v49 = vadd.f32 %v1757_v60, %v1578_v41  ;;  %v1581_v24 = vadd.f32 %v4094_v56, %v5439_v23 }
 0x1c9   : > { %v4174_v8 = vpop.f32.mrf.mxu0  ;;  %v1493_v18 = vpop.f32.mrf.mxu1 }
 0x1ca   : > { %v5552_v30 = vadd.f32 %v4174_v8, %v1581_v24  ;;  %v1580_v59 = vadd.f32 %v1493_v18, %v5444_v39 }
 0x1cb   : > { %v1767_v25 = vpop.f32.mrf.mxu0  ;;  %v4097_v1 = vpop.f32.mrf.mxu1 }
 0x1cc   : > { %5952 = vst [vmem:[#allocation23_spill] sm:$0xff] %v5552_v30  ;;  %v5555_v19 = vadd.f32 %v1767_v25, %v1580_v59  ;;  %v1583_v57 = vadd.f32 %v4097_v1, %v5449_v20 }
 0x1cd   : > { %v4177_v12 = vpop.f32.mrf.mxu0  ;;  %v1503_v26 = vpop.f32.mrf.mxu1 }
 0x1ce   : > { %5953 = vst [vmem:[#allocation24_spill] sm:$0xff] %v5555_v19  ;;  %v5558_v32 = vadd.f32 %v4177_v12, %v1583_v57  ;;  %v1582_v2 = vadd.f32 %v1503_v26, %v5454_v45 }
 0x1cf   : > { %v1777_v36 = vpop.f32.mrf.mxu0  ;;  %v4100_v23 = vpop.f32.mrf.mxu1 }
 0x1d0   : > { %5954 = vst [vmem:[#allocation25_spill] sm:$0xff] %v5558_v32  ;;  %v5561_v42 = vadd.f32 %v1777_v36, %v1582_v2  ;;  %v1585_v37 = vadd.f32 %v4100_v23, %v5459_v50 }
 0x1d1   : > { %v4180_v11 = vpop.f32.mrf.mxu0  ;;  %v1513_v39 = vpop.f32.mrf.mxu1 }
 0x1d2   : > { %5955 = vst [vmem:[#allocation26_spill] sm:$0xff] %v5561_v42  ;;  %v5564_v3 = vadd.f32 %v4180_v11, %v1585_v37  ;;  %v1584_v51 = vadd.f32 %v1513_v39, %v5464_v47 }
 0x1d3   : > { %v1787_v44 = vpop.f32.mrf.mxu0  ;;  %v4103_v20 = vpop.f32.mrf.mxu1 }
 0x1d4   : > { %5956 = vst [vmem:[#allocation27_spill] sm:$0xff] %v5564_v3  ;;  %v5567_v58 = vadd.f32 %v1787_v44, %v1584_v51  ;;  %v1587_v0 = vadd.f32 %v4103_v20, %v5469_v54 }
 0x1d5   : > { %v4183_v29 = vpop.f32.mrf.mxu0  ;;  %v1523_v45 = vpop.f32.mrf.mxu1 }
 0x1d6   : > { %5957 = vst [vmem:[#allocation28_spill] sm:$0xff] %v5567_v58  ;;  %v5570_v7 = vadd.f32 %v4183_v29, %v1587_v0  ;;  %v1586_v6 = vadd.f32 %v1523_v45, %v5474_v17 }
 0x1d7   : > { %v1797_v61 = vpop.f32.mrf.mxu0  ;;  %v4106_v50 = vpop.f32.mrf.mxu1 }
 0x1d8   : > { %5958 = vst [vmem:[#allocation29_spill] sm:$0xff] %v5570_v7  ;;  %v5573_v63 = vadd.f32 %v1797_v61, %v1586_v6  ;;  %v1589_v4 = vadd.f32 %v4106_v50, %v5479_v52 }
 0x1d9   : > { %v4186_v28 = vpop.f32.mrf.mxu0  ;;  %v1533_v47 = vpop.f32.mrf.mxu1 }
 0x1da   : > { %5959 = vst [vmem:[#allocation30_spill] sm:$0xff] %v5573_v63  ;;  %v5576_v41 = vadd.f32 %v4186_v28, %v1589_v4  ;;  %v1588_v60 = vadd.f32 %v1533_v47, %v5483_v9 }
 0x1db   : > { %v1807_v56 = vpop.f32.mrf.mxu0  ;;  %v4109_v54 = vpop.f32.mrf.mxu1 }
 0x1dc   : > { %5960 = vst [vmem:[#allocation31_spill] sm:$0xff] %v5576_v41  ;;  %v5579_v24 = vadd.f32 %v1807_v56, %v1588_v60  ;;  %v1591_v8 = vadd.f32 %v4109_v54, %v5486_v13 }
 0x1dd   : > { %v4189_v18 = vpop.f32.mrf.mxu0  ;;  %v1543_v17 = vpop.f32.mrf.mxu1 }
 0x1de   : > { %5961 = vst [vmem:[#allocation32_spill] sm:$0xff] %v5579_v24  ;;  %v5582_v59 = vadd.f32 %v4189_v18, %v1591_v8  ;;  %v1590_v25 = vadd.f32 %v1543_v17, %v5489_v38 }
 0x1df   : > { %v1817_v1 = vpop.f32.mrf.mxu0  ;;  %v4112_v52 = vpop.f32.mrf.mxu1 }
 0x1e0   : > { %5962 = vst [vmem:[#allocation33_spill] sm:$0xff] %v5582_v59  ;;  %v5585_v57 = vadd.f32 %v1817_v1, %v1590_v25  ;;  %v1593_v12 = vadd.f32 %v4112_v52, %v5492_v16 }
 0x1e1   : > { %v4192_v26 = vpop.f32.mrf.mxu0  ;;  %v1553_v9 = vpop.f32.mrf.mxu1 }
 0x1e2   : > { %5963 = vst [vmem:[#allocation34_spill] sm:$0xff] %v5585_v57  ;;  %v5588_v2 = vadd.f32 %v4192_v26, %v1593_v12  ;;  %v1592_v36 = vadd.f32 %v1553_v9, %v5495_v55 }
 0x1e3   : > { %v1827_v23 = vpop.f32.mrf.mxu0  ;;  %v4227_v13 = vpop.f32.mrf.mxu1 }
 0x1e4   : > { %5964 = vst [vmem:[#allocation35_spill] sm:$0xff] %v5588_v2  ;;  %v5591_v37 = vadd.f32 %v1827_v23, %v1592_v36 }
 0x1e5   : > { %v5593_v11 = vpop.f32.mrf.mxu0  ;;  %v1951_v39 = vpop.f32.mrf.mxu1 }
 0x1e6   : > { %5965 = vst [vmem:[#allocation36_spill] sm:$0xff] %v5591_v37 }
 0x1e7   : > { %v5595_v38 = vpop.f32.mrf.mxu0  ;;  %v4230_v51 = vpop.f32.mrf.mxu1 }
 0x1e9   : > { %v5597_v44 = vpop.f32.mrf.mxu0  ;;  %v5599_v20 = vpop.f32.mrf.mxu1 }
 0x1eb   : > { %v5601_v16 = vpop.f32.mrf.mxu0  ;;  %v5603_v0 = vpop.f32.mrf.mxu1 }
 0x1ed   : > { %v5605_v29 = vpop.f32.mrf.mxu0  ;;  %v5607_v55 = vpop.f32.mrf.mxu1 }
 0x1ef   : > { %v5609_v45 = vpop.f32.mrf.mxu0  ;;  %v5611_v6 = vpop.f32.mrf.mxu1 }
 0x1f1   : > { %v5613_v61 = vpop.f32.mrf.mxu0  ;;  %v5615_v50 = vpop.f32.mrf.mxu1 }
 0x1f3   : > { %v5617_v4 = vpop.f32.mrf.mxu0  ;;  %v5619_v28 = vpop.f32.mrf.mxu1 }
 0x1f5   : > { %v5621_v47 = vpop.f32.mrf.mxu0  ;;  %v5623_v60 = vpop.f32.mrf.mxu1 }
 0x1f7   : > { %v5625_v56 = vpop.f32.mrf.mxu0  ;;  %v5627_v54 = vpop.f32.mrf.mxu1 }
 0x1f9   : > { %v5629_v8 = vpop.f32.mrf.mxu0  ;;  %v5631_v18 = vpop.f32.mrf.mxu1 }
 0x1fb   : > { %v5633_v17 = vpop.f32.mrf.mxu0  ;;  %v5635_v25 = vpop.f32.mrf.mxu1 }
 0x1fd   : > { %v5637_v1 = vpop.f32.mrf.mxu0  ;;  %v5639_v52 = vpop.f32.mrf.mxu1 }
 0x1ff   : > { %v5641_v12 = vpop.f32.mrf.mxu0  ;;  %v5643_v26 = vpop.f32.mrf.mxu1 }
 0x201   : > { %v5645_v9 = vpop.f32.mrf.mxu0  ;;  %v5647_v36 = vpop.f32.mrf.mxu1 }
 0x203   : > { %v5649_v23 = vpop.f32.mrf.mxu0  ;;  %v5651_v37 = vpop.f32.mrf.mxu1 }
 0x205   : > { %v5653_v2 = vpop.f32.mrf.mxu0  ;;  %v5655_v57 = vpop.f32.mrf.mxu1 }
 0x207   : > { %v5657_v59 = vpop.f32.mrf.mxu0  ;;  %v5659_v24 = vpop.f32.mrf.mxu1 }
 0x208   : > { %5966 = vst [vmem:[#allocation37_spill] sm:$0xff] %v5657_v59  ;;  %5967 = vst [vmem:[#allocation38_spill] sm:$0xff] %v5659_v24 }
 0x209   : > { %v5661_v41 = vpop.f32.mrf.mxu0  ;;  %v5663_v63 = vpop.f32.mrf.mxu1 }
 0x20a   : > { %5968 = vst [vmem:[#allocation39_spill] sm:$0xff] %v5661_v41  ;;  %5969 = vst [vmem:[#allocation40_spill] sm:$0xff] %v5663_v63 }
 0x20b   : > { %v5665_v7 = vpop.f32.mrf.mxu0  ;;  %v5667_v58 = vpop.f32.mrf.mxu1 }
 0x20c   : > { %5970 = vst [vmem:[#allocation41_spill] sm:$0xff] %v5665_v7  ;;  %5971 = vst [vmem:[#allocation42_spill] sm:$0xff] %v5667_v58 }
 0x20d   : > { %v5669_v3 = vpop.f32.mrf.mxu0  ;;  %v5671_v42 = vpop.f32.mrf.mxu1 }
 0x20e   : > { %5972 = vst [vmem:[#allocation43_spill] sm:$0xff] %v5669_v3  ;;  %5973 = vst [vmem:[#allocation44_spill] sm:$0xff] %v5671_v42 }
 0x20f   : > { %v5673_v32 = vpop.f32.mrf.mxu0  ;;  %v5675_v19 = vpop.f32.mrf.mxu1 }
 0x210   : > { %5974 = vst [vmem:[#allocation45_spill] sm:$0xff] %v5673_v32  ;;  %5975 = vst [vmem:[#allocation46_spill] sm:$0xff] %v5675_v19 }
 0x211   : > { %v5677_v30 = vpop.f32.mrf.mxu0  ;;  %v5679_v59 = vpop.f32.mrf.mxu1 }
 0x212   : > { %5976 = vst [vmem:[#allocation47_spill] sm:$0xff] %v5677_v30  ;;  %5977 = vst [vmem:[#allocation48_spill] sm:$0xff] %v5679_v59 }
 0x213   : > { %v5681_v24 = vpop.f32.mrf.mxu0  ;;  %v5683_v41 = vpop.f32.mrf.mxu1 }
 0x214   : > { %5978 = vst [vmem:[#allocation49_spill] sm:$0xff] %v5681_v24  ;;  %5979 = vst [vmem:[#allocation50_spill] sm:$0xff] %v5683_v41 }
 0x215   : > { %v5685_v63 = vpop.f32.mrf.mxu0  ;;  %v5687_v7 = vpop.f32.mrf.mxu1 }
 0x216   : > { %5980 = vst [vmem:[#allocation51_spill] sm:$0xff] %v5685_v63  ;;  %5981 = vst [vmem:[#allocation52_spill] sm:$0xff] %v5687_v7  ;;  %v2111_v63 = vadd.f32 %v4227_v13, %v5498_v10  ;;  %v2112_v10 = vadd.f32 %v5599_v20, %v5507_v48 }
 0x217   : > { %v5689_v58 = vpop.f32.mrf.mxu0  ;;  %v5691_v3 = vpop.f32.mrf.mxu1 }
 0x218   : > { %5982 = vst [vmem:[#allocation53_spill] sm:$0xff] %v5689_v58  ;;  %5983 = vst [vmem:[#allocation54_spill] sm:$0xff] %v5691_v3  ;;  %v2110_v58 = vadd.f32 %v1951_v39, %v5501_v34  ;;  %v2115_v34 = vadd.f32 %v5603_v0, %v5510_v40 }
 0x219   : > { %v5693_v42 = vpop.f32.mrf.mxu0  ;;  %v5695_v32 = vpop.f32.mrf.mxu1 }
 0x21a   : > { %5984 = vst [vmem:[#allocation55_spill] sm:$0xff] %v5693_v42  ;;  %5985 = vst [vmem:[#allocation56_spill] sm:$0xff] %v5695_v32  ;;  %v2425_v0 = vadd.f32 %v5605_v29, %v2115_v34 }
 0x21b   : > { %v5697_v19 = vpop.f32.mrf.mxu0  ;;  %v5699_v30 = vpop.f32.mrf.mxu1 }
 0x21c   : > { %5986 = vst [vmem:[#allocation57_spill] sm:$0xff] %v5697_v19  ;;  %5987 = vst [vmem:[#allocation58_spill] sm:$0xff] %v5699_v30  ;;  %v2421_v19 = vadd.f32 %v5593_v11, %v2111_v63  ;;  %v2113_v30 = vadd.f32 %v4230_v51, %v5504_v62 }
 0x21d   : > { %v5701_v59 = vpop.f32.mrf.mxu0  ;;  %v5703_v24 = vpop.f32.mrf.mxu1 }
 0x21e   : > { %5988 = vst [vmem:[#allocation59_spill] sm:$0xff] %v5701_v59  ;;  %5989 = vst [vmem:[#allocation60_spill] sm:$0xff] %v5703_v24  ;;  %v2420_v24 = vadd.f32 %v5595_v38, %v2110_v58  ;;  %v2423_v62 = vadd.f32 %v5597_v44, %v2113_v30  ;;  %v2114_v58 = vadd.f32 %v5607_v55, %v5513_v22 }
 0x21f   : > { %v5706_v41 = vpop.f32.mrf.mxu0  ;;  %v5708_v7 = vpop.f32.mrf.mxu1 }
 0x221   : > { %v5711_v3 = vpop.f32.mrf.mxu0  ;;  %v5713_v42 = vpop.f32.mrf.mxu1 }
 0x222   : > { %5990 = vst [vmem:[#allocation61_spill] sm:$0xff] %v5711_v3  ;;  %v5727_v3 = vld [vmem:[%s5936_s2] ss:$0 sm:$0xff] }
 0x223   : > { %v5717_v32 = vpop.f32.mrf.mxu0  ;;  %v4387_v59 = vpop.f32.mrf.mxu1 }
 0x224   : > { %5991 = vst [vmem:[#allocation62_spill] sm:$0xff] %v5717_v32  ;;  %v2695_v13 = vadd.f32 %v4387_v59, %v2421_v19  ;;  %v2422_v19 = vadd.f32 %v5601_v16, %v2112_v10  ;;  %v2117_v32 = vadd.f32 %v5611_v6, %v5516_v35  ;;  %v2424_v16 = vadd.f32 %v5609_v45, %v2114_v58 }
 0x225   : > { %v4467_v39 = vpop.f32.mrf.mxu0  ;;  %v2535_v63 = vpop.f32.mrf.mxu1  ;;  %v2116_v10 = vadd.f32 %v5615_v50, %v5519_v5 }
 0x226   : > { %v2969_v11 = vadd.f32 %v4467_v39, %v2695_v13  ;;  %v2694_v51 = vadd.f32 %v2535_v63, %v2420_v24 }
 0x227   : > { %v2809_v38 = vpop.f32.mrf.mxu0  ;;  %v4390_v48 = vpop.f32.mrf.mxu1 }
 0x228   : > { %v3008_v40 = vadd.f32 %v5727_v3, %v2969_v11  ;;  %v2968_v59 = vadd.f32 %v2809_v38, %v2694_v51  ;;  %v2697_v20 = vadd.f32 %v4390_v48, %v2423_v62  ;;  %v2427_v62 = vadd.f32 %v5613_v61, %v2117_v32 }
 0x229   : > { %v4470_v30 = vpop.f32.mrf.mxu0  ;;  %v2545_v44 = vpop.f32.mrf.mxu1  ;;  %v2119_v11 = vadd.f32 %v5619_v28, %v5522_v31  ;;  %v2426_v48 = vadd.f32 %v5617_v4, %v2116_v10 }
 0x22a   : > { %v3040_v24 = vmax.f32 %v3008_v40, 0.0  ;;  %v3007_v13 = vadd.f32 %v5727_v3, %v2968_v59  ;;  %v2971_v22 = vadd.f32 %v4470_v30, %v2697_v20  ;;  %v2696_v55 = vadd.f32 %v2545_v44, %v2422_v19 }
 0x22b   : > { %v2819_v39 = vpop.f32.mrf.mxu0  ;;  %v4393_v63 = vpop.f32.mrf.mxu1  ;;  %v2118_v19 = vadd.f32 %v5623_v60, %v5525_v46  ;;  %v2429_v20 = vadd.f32 %v5621_v47, %v2119_v11 }
 0x22c   : > { %3072 = vst [vmem:[%s4883_s19 + $0x8] sm:$0xff] %v3040_v24  ;;  %v3039_v29 = vmax.f32 %v3007_v13, 0.0  ;;  %v3010_v34 = vadd.f32 %v5727_v3, %v2971_v22  ;;  %v2970_v35 = vadd.f32 %v2819_v39, %v2696_v55  ;;  %v2699_v6 = vadd.f32 %v4393_v63, %v2425_v0 }
 0x22d   : > { %v4473_v51 = vpop.f32.mrf.mxu0  ;;  %v2555_v38 = vpop.f32.mrf.mxu1  ;;  %v2121_v0 = vadd.f32 %v5627_v54, %v5528_v14  ;;  %v2428_v13 = vadd.f32 %v5625_v56, %v2118_v19  ;;  %v2120_v22 = vadd.f32 %v5631_v18, %v5531_v53  ;;  %v2123_v63 = vadd.f32 %v5635_v25, %v5534_v27 }
 0x22e   : > { %3071 = vst [vmem:[%s4883_s19] sm:$0xff] %v3039_v29  ;;  %v3042_v45 = vmax.f32 %v3010_v34, 0.0  ;;  %v3009_v5 = vadd.f32 %v5727_v3, %v2970_v35  ;;  %v2973_v50 = vadd.f32 %v4473_v51, %v2699_v6  ;;  %v2698_v58 = vadd.f32 %v2555_v38, %v2424_v16 }
 0x22f   : > { %v2829_v40 = vpop.f32.mrf.mxu0  ;;  %v4396_v59 = vpop.f32.mrf.mxu1  ;;  %v2431_v39 = vadd.f32 %v5629_v8, %v2121_v0  ;;  %v2430_v6 = vadd.f32 %v5633_v17, %v2120_v22  ;;  %v5992_v22 = vld [vmem:[#allocation23_spill] sm:$0xff] }
 0x230   : > { %3074 = vst [vmem:[%s4883_s19 + $0x18] sm:$0xff] %v3042_v45  ;;  %v3041_v32 = vmax.f32 %v3009_v5, 0.0  ;;  %v3012_v31 = vadd.f32 %v5727_v3, %v2973_v50  ;;  %v2972_v61 = vadd.f32 %v2829_v40, %v2698_v58  ;;  %v2701_v28 = vadd.f32 %v4396_v59, %v2427_v62 }
 0x231   : > { %v4476_v30 = vpop.f32.mrf.mxu0  ;;  %v2565_v44 = vpop.f32.mrf.mxu1  ;;  %v2122_v62 = vadd.f32 %v5639_v52, %v5537_v21  ;;  %v2433_v45 = vadd.f32 %v5637_v1, %v2123_v63  ;;  %v2125_v5 = vadd.f32 %v5643_v26, %v5540_v33  ;;  %v2124_v40 = vadd.f32 %v5647_v36, %v5543_v15  ;;  %v5995_v63 = vld [vmem:[#allocation24_spill] sm:$0xff] }
 0x232   : > { %3073 = vst [vmem:[%s4883_s19 + $0x10] sm:$0xff] %v3041_v32  ;;  %v3044_v4 = vmax.f32 %v3012_v31, 0.0  ;;  %v3011_v46 = vadd.f32 %v5727_v3, %v2972_v61  ;;  %v2975_v60 = vadd.f32 %v4476_v30, %v2701_v28  ;;  %v2700_v24 = vadd.f32 %v2565_v44, %v2426_v48 }
 0x233   : > { %v2839_v55 = vpop.f32.mrf.mxu0  ;;  %v4399_v16 = vpop.f32.mrf.mxu1  ;;  %v2432_v19 = vadd.f32 %v5641_v12, %v2122_v62  ;;  %v2435_v61 = vadd.f32 %v5645_v9, %v2125_v5  ;;  %v2127_v28 = vadd.f32 %v5651_v37, %v5546_v43  ;;  %v2434_v44 = vadd.f32 %v5649_v23, %v2124_v40  ;;  %v5997_v62 = vld [vmem:[#allocation39_spill] sm:$0xff] }
 0x234   : > { %3076 = vst [vmem:[%s4883_s19 + $0x28] sm:$0xff] %v3044_v4  ;;  %v3043_v47 = vmax.f32 %v3011_v46, 0.0  ;;  %v3014_v14 = vadd.f32 %v5727_v3, %v2975_v60  ;;  %v2974_v54 = vadd.f32 %v2839_v55, %v2700_v24  ;;  %v2703_v10 = vadd.f32 %v4399_v16, %v2429_v20  ;;  %v5993_v55 = vld [vmem:[#allocation38_spill] sm:$0xff] }
 0x235   : > { %v4479_v29 = vpop.f32.mrf.mxu0  ;;  %v2575_v34 = vpop.f32.mrf.mxu1  ;;  %v2126_v4 = vadd.f32 %v5655_v57, %v5549_v49  ;;  %v2129_v16 = vadd.f32 %v5993_v55, %v5992_v22 }
 0x236   : > { %3075 = vst [vmem:[%s4883_s19 + $0x20] sm:$0xff] %v3043_v47  ;;  %v3046_v56 = vmax.f32 %v3014_v14, 0.0  ;;  %v3013_v53 = vadd.f32 %v5727_v3, %v2974_v54  ;;  %v2977_v18 = vadd.f32 %v4479_v29, %v2703_v10  ;;  %v2702_v35 = vadd.f32 %v2575_v34, %v2428_v13  ;;  %v5994_v10 = vld [vmem:[#allocation37_spill] sm:$0xff]  ;;  %v5996_v29 = vld [vmem:[#allocation40_spill] sm:$0xff] }
 0x237   : > { %v2849_v11 = vpop.f32.mrf.mxu0  ;;  %v4402_v51 = vpop.f32.mrf.mxu1  ;;  %v2437_v13 = vadd.f32 %v5653_v2, %v2127_v28  ;;  %v2128_v34 = vadd.f32 %v5996_v29, %v5995_v63  ;;  %v6004_v28 = vld [vmem:[#allocation27_spill] sm:$0xff] }
 0x238   : > { %3078 = vst [vmem:[%s4883_s19 + $0x38] sm:$0xff] %v3046_v56  ;;  %v3045_v8 = vmax.f32 %v3013_v53, 0.0  ;;  %v3016_v27 = vadd.f32 %v5727_v3, %v2977_v18  ;;  %v2976_v25 = vadd.f32 %v2849_v11, %v2702_v35  ;;  %v2705_v38 = vadd.f32 %v4402_v51, %v2431_v39  ;;  %v5998_v51 = vld [vmem:[#allocation25_spill] sm:$0xff] }
 0x239   : > { %v4482_v50 = vpop.f32.mrf.mxu0  ;;  %v2585_v58 = vpop.f32.mrf.mxu1  ;;  %v2436_v39 = vadd.f32 %v5994_v10, %v2126_v4  ;;  %v2439_v11 = vadd.f32 %v5997_v62, %v2129_v16 }
 0x23a   : > { %3077 = vst [vmem:[%s4883_s19 + $0x30] sm:$0xff] %v3045_v8  ;;  %v3048_v17 = vmax.f32 %v3016_v27, 0.0  ;;  %v3015_v21 = vadd.f32 %v5727_v3, %v2976_v25  ;;  %v2979_v52 = vadd.f32 %v4482_v50, %v2705_v38  ;;  %v2704_v48 = vadd.f32 %v2585_v58, %v2430_v6  ;;  %v5999_v8 = vld [vmem:[#allocation42_spill] sm:$0xff] }
 0x23b   : > { %v2859_v59 = vpop.f32.mrf.mxu0  ;;  %v4405_v32 = vpop.f32.mrf.mxu1  ;;  %v2131_v27 = vadd.f32 %v5999_v8, %v5998_v51 }
 0x23c   : > { %3080 = vst [vmem:[%s4883_s19 + $0x48] sm:$0xff] %v3048_v17  ;;  %v3047_v1 = vmax.f32 %v3015_v21, 0.0  ;;  %v3018_v33 = vadd.f32 %v5727_v3, %v2979_v52  ;;  %v2978_v26 = vadd.f32 %v2859_v59, %v2704_v48  ;;  %v2707_v31 = vadd.f32 %v4405_v32, %v2433_v45  ;;  %v6000_v17 = vld [vmem:[#allocation41_spill] sm:$0xff]  ;;  %v6001_v52 = vld [vmem:[#allocation26_spill] sm:$0xff]  ;;  %v6002_v48 = vld [vmem:[#allocation44_spill] sm:$0xff] }
 0x23d   : > { %v4485_v20 = vpop.f32.mrf.mxu0  ;;  %v2595_v0 = vpop.f32.mrf.mxu1  ;;  %v2438_v21 = vadd.f32 %v6000_v17, %v2128_v34 }
 0x23e   : > { %3079 = vst [vmem:[%s4883_s19 + $0x40] sm:$0xff] %v3047_v1  ;;  %v3050_v12 = vmax.f32 %v3018_v33, 0.0  ;;  %v3017_v15 = vadd.f32 %v5727_v3, %v2978_v26  ;;  %v2981_v36 = vadd.f32 %v4485_v20, %v2707_v31  ;;  %v2706_v30 = vadd.f32 %v2595_v0, %v2432_v19  ;;  %v6003_v31 = vld [vmem:[#allocation43_spill] sm:$0xff]  ;;  %v6005_v20 = vld [vmem:[#allocation46_spill] sm:$0xff] }
 0x23f   : > { %v2869_v46 = vpop.f32.mrf.mxu0  ;;  %v4408_v60 = vpop.f32.mrf.mxu1  ;;  %v2130_v19 = vadd.f32 %v6002_v48, %v6001_v52  ;;  %v2133_v0 = vadd.f32 %v6005_v20, %v6004_v28 }
 0x240   : > { %3082 = vst [vmem:[%s4883_s19 + $0x58] sm:$0xff] %v3050_v12  ;;  %v3049_v9 = vmax.f32 %v3017_v15, 0.0  ;;  %v3020_v43 = vadd.f32 %v5727_v3, %v2981_v36  ;;  %v2980_v37 = vadd.f32 %v2869_v46, %v2706_v30  ;;  %v2709_v24 = vadd.f32 %v4408_v60, %v2435_v61  ;;  %v6006_v46 = vld [vmem:[#allocation45_spill] sm:$0xff] }
 0x241   : > { %v4488_v47 = vpop.f32.mrf.mxu0  ;;  %v2605_v14 = vpop.f32.mrf.mxu1  ;;  %v2441_v61 = vadd.f32 %v6003_v31, %v2131_v27  ;;  %v2440_v60 = vadd.f32 %v6006_v46, %v2130_v19 }
 0x242   : > { %3081 = vst [vmem:[%s4883_s19 + $0x50] sm:$0xff] %v3049_v9  ;;  %v3052_v23 = vmax.f32 %v3020_v43, 0.0  ;;  %v3019_v49 = vadd.f32 %v5727_v3, %v2980_v37  ;;  %v2983_v57 = vadd.f32 %v4488_v47, %v2709_v24  ;;  %v2708_v54 = vadd.f32 %v2605_v14, %v2434_v44  ;;  %v6007_v9 = vld [vmem:[#allocation28_spill] sm:$0xff]  ;;  %v6009_v14 = vld [vmem:[#allocation47_spill] sm:$0xff] }
 0x243   : > { %v2879_v56 = vpop.f32.mrf.mxu0  ;;  %v4411_v53 = vpop.f32.mrf.mxu1  ;;  %v6008_v43 = vld [vmem:[#allocation48_spill] sm:$0xff] }
 0x244   : > { %3084 = vst [vmem:[%s4883_s19 + $0x68] sm:$0xff] %v3052_v23  ;;  %v3051_v2 = vmax.f32 %v3019_v49, 0.0  ;;  %v3022_v18 = vadd.f32 %v5727_v3, %v2983_v57  ;;  %v2982_v35 = vadd.f32 %v2879_v56, %v2708_v54  ;;  %v2711_v6 = vadd.f32 %v4411_v53, %v2437_v13  ;;  %v6010_v49 = vld [vmem:[#allocation29_spill] sm:$0xff]  ;;  %v6011_v57 = vld [vmem:[#allocation50_spill] sm:$0xff] }
 0x245   : > { %v4491_v25 = vpop.f32.mrf.mxu0  ;;  %v2615_v38 = vpop.f32.mrf.mxu1  ;;  %v2132_v37 = vadd.f32 %v6008_v43, %v6007_v9  ;;  %v2443_v23 = vadd.f32 %v6009_v14, %v2133_v0  ;;  %v2135_v54 = vadd.f32 %v6011_v57, %v6010_v49  ;;  %v6012_v53 = vld [vmem:[#allocation49_spill] sm:$0xff] }
 0x246   : > { %3083 = vst [vmem:[%s4883_s19 + $0x60] sm:$0xff] %v3051_v2  ;;  %v3054_v45 = vmax.f32 %v3022_v18, 0.0  ;;  %v3021_v5 = vadd.f32 %v5727_v3, %v2982_v35  ;;  %v2985_v50 = vadd.f32 %v4491_v25, %v2711_v6  ;;  %v2710_v58 = vadd.f32 %v2615_v38, %v2436_v39  ;;  %v6013_v18 = vld [vmem:[#allocation30_spill] sm:$0xff]  ;;  %v6014_v35 = vld [vmem:[#allocation52_spill] sm:$0xff]  ;;  %v6015_v38 = vld [vmem:[#allocation51_spill] sm:$0xff] }
 0x247   : > { %v2889_v40 = vpop.f32.mrf.mxu0  ;;  %v4414_v59 = vpop.f32.mrf.mxu1  ;;  %v2442_v2 = vadd.f32 %v6012_v53, %v2132_v37  ;;  %v2134_v6 = vadd.f32 %v6014_v35, %v6013_v18 }
 0x248   : > { %3086 = vst [vmem:[%s4883_s19 + $0x78] sm:$0xff] %v3054_v45  ;;  %v3053_v32 = vmax.f32 %v3021_v5, 0.0  ;;  %v3024_v1 = vadd.f32 %v5727_v3, %v2985_v50  ;;  %v2984_v33 = vadd.f32 %v2889_v40, %v2710_v58  ;;  %v2713_v26 = vadd.f32 %v4414_v59, %v2439_v11  ;;  %v6016_v5 = vld [vmem:[#allocation31_spill] sm:$0xff]  ;;  %v6017_v50 = vld [vmem:[#allocation54_spill] sm:$0xff]  ;;  %v6018_v59 = vld [vmem:[#allocation53_spill] sm:$0xff] }
 0x249   : > { %v4494_v12 = vpop.f32.mrf.mxu0  ;;  %v2625_v15 = vpop.f32.mrf.mxu1  ;;  %v2445_v45 = vadd.f32 %v6015_v38, %v2135_v54  ;;  %v2137_v58 = vadd.f32 %v6017_v50, %v6016_v5  ;;  %v6030_v5 = vld [vmem:[#allocation61_spill] sm:$0xff] }
 0x24a   : > { %3085 = vst [vmem:[%s4883_s19 + $0x70] sm:$0xff] %v3053_v32  ;;  %v3056_v36 = vmax.f32 %v3024_v1, 0.0  ;;  %v3023_v30 = vadd.f32 %v5727_v3, %v2984_v33  ;;  %v2987_v44 = vadd.f32 %v4494_v12, %v2713_v26  ;;  %v2712_v4 = vadd.f32 %v2625_v15, %v2438_v21  ;;  %v6019_v1 = vld [vmem:[#allocation32_spill] sm:$0xff]  ;;  %v6021_v15 = vld [vmem:[#allocation55_spill] sm:$0xff] }
 0x24b   : > { %v2899_v24 = vpop.f32.mrf.mxu0  ;;  %v4417_v13 = vpop.f32.mrf.mxu1  ;;  %v2444_v32 = vadd.f32 %v6018_v59, %v2134_v6  ;;  %v6020_v33 = vld [vmem:[#allocation56_spill] sm:$0xff] }
 0x24c   : > { %3088 = vst [vmem:[%s4883_s19 + $0x88] sm:$0xff] %v3056_v36  ;;  %v3055_v22 = vmax.f32 %v3023_v30, 0.0  ;;  %v3026_v55 = vadd.f32 %v5727_v3, %v2987_v44  ;;  %v2986_v16 = vadd.f32 %v2899_v24, %v2712_v4  ;;  %v2715_v47 = vadd.f32 %v4417_v13, %v2441_v61  ;;  %v6022_v30 = vld [vmem:[#allocation33_spill] sm:$0xff]  ;;  %v6023_v44 = vld [vmem:[#allocation58_spill] sm:$0xff] }
 0x24d   : > { %v4497_v10 = vpop.f32.mrf.mxu0  ;;  %v2635_v39 = vpop.f32.mrf.mxu1  ;;  %v2136_v26 = vadd.f32 %v6020_v33, %v6019_v1  ;;  %v2447_v36 = vadd.f32 %v6021_v15, %v2137_v58  ;;  %v2139_v4 = vadd.f32 %v6023_v44, %v6022_v30  ;;  %v6024_v13 = vld [vmem:[#allocation57_spill] sm:$0xff] }
 0x24e   : > { %3087 = vst [vmem:[%s4883_s19 + $0x80] sm:$0xff] %v3055_v22  ;;  %v3058_v63 = vmax.f32 %v3026_v55, 0.0  ;;  %v3025_v29 = vadd.f32 %v5727_v3, %v2986_v16  ;;  %v2989_v34 = vadd.f32 %v4497_v10, %v2715_v47  ;;  %v2714_v56 = vadd.f32 %v2635_v39, %v2440_v60  ;;  %v6025_v55 = vld [vmem:[#allocation34_spill] sm:$0xff]  ;;  %v6026_v16 = vld [vmem:[#allocation60_spill] sm:$0xff]  ;;  %v6027_v39 = vld [vmem:[#allocation59_spill] sm:$0xff] }
 0x24f   : > { %v2909_v62 = vpop.f32.mrf.mxu0  ;;  %v4420_v11 = vpop.f32.mrf.mxu1  ;;  %v2446_v22 = vadd.f32 %v6024_v13, %v2136_v26  ;;  %v2138_v47 = vadd.f32 %v6026_v16, %v6025_v55 }
 0x250   : > { %3090 = vst [vmem:[%s4883_s19 + $0x98] sm:$0xff] %v3058_v63  ;;  %v3057_v51 = vmax.f32 %v3025_v29, 0.0  ;;  %v3028_v8 = vadd.f32 %v5727_v3, %v2989_v34  ;;  %v2988_v27 = vadd.f32 %v2909_v62, %v2714_v56  ;;  %v2717_v25 = vadd.f32 %v4420_v11, %v2443_v23  ;;  %v6028_v29 = vld [vmem:[#allocation35_spill] sm:$0xff]  ;;  %v6029_v11 = vld [vmem:[#allocation36_spill] sm:$0xff] }
 0x251   : > { %v4500_v17 = vpop.f32.mrf.mxu0  ;;  %v2645_v21 = vpop.f32.mrf.mxu1  ;;  %v2449_v63 = vadd.f32 %v6027_v39, %v2139_v4  ;;  %v2141_v34 = vadd.f32 %v5708_v7, %v6028_v29  ;;  %v2448_v62 = vadd.f32 %v5706_v41, %v2138_v47 }
 0x252   : > { %3089 = vst [vmem:[%s4883_s19 + $0x90] sm:$0xff] %v3057_v51  ;;  %v3060_v52 = vmax.f32 %v3028_v8, 0.0  ;;  %v3027_v48 = vadd.f32 %v5727_v3, %v2988_v27  ;;  %v2991_v19 = vadd.f32 %v4500_v17, %v2717_v25  ;;  %v2716_v40 = vadd.f32 %v2645_v21, %v2442_v2 }
 0x253   : > { %v2919_v31 = vpop.f32.mrf.mxu0  ;;  %v4423_v61 = vpop.f32.mrf.mxu1  ;;  %v2140_v51 = vadd.f32 %v5713_v42, %v6029_v11  ;;  %v2451_v50 = vadd.f32 %v6030_v5, %v2141_v34 }
 0x254   : > { %3092 = vst [vmem:[%s4883_s19 + $0xa8] sm:$0xff] %v3060_v52  ;;  %v3059_v28 = vmax.f32 %v3027_v48, 0.0  ;;  %v3030_v20 = vadd.f32 %v5727_v3, %v2991_v19  ;;  %v2990_v0 = vadd.f32 %v2919_v31, %v2716_v40  ;;  %v2719_v12 = vadd.f32 %v4423_v61, %v2445_v45  ;;  %v6031_v48 = vld [vmem:[#allocation62_spill] sm:$0xff] }
 0x255   : > { %v4503_v46 = vpop.f32.mrf.mxu0  ;;  %v2655_v60 = vpop.f32.mrf.mxu1  ;;  %v2450_v19 = vadd.f32 %v6031_v48, %v2140_v51 }
 0x256   : > { %3091 = vst [vmem:[%s4883_s19 + $0xa0] sm:$0xff] %v3059_v28  ;;  %v3062_v9 = vmax.f32 %v3030_v20, 0.0  ;;  %v3029_v43 = vadd.f32 %v5727_v3, %v2990_v0  ;;  %v2993_v37 = vadd.f32 %v4503_v46, %v2719_v12  ;;  %v2718_v24 = vadd.f32 %v2655_v60, %v2444_v32 }
 0x257   : > { %v2929_v14 = vpop.f32.mrf.mxu0  ;;  %v4426_v23 = vpop.f32.mrf.mxu1 }
 0x258   : > { %3094 = vst [vmem:[%s4883_s19 + $0xb8] sm:$0xff] %v3062_v9  ;;  %v3061_v49 = vmax.f32 %v3029_v43, 0.0  ;;  %v3032_v57 = vadd.f32 %v5727_v3, %v2993_v37  ;;  %v2992_v54 = vadd.f32 %v2929_v14, %v2718_v24  ;;  %v2721_v10 = vadd.f32 %v4426_v23, %v2447_v36 }
 0x259   : > { %v4506_v56 = vpop.f32.mrf.mxu0  ;;  %v2665_v53 = vpop.f32.mrf.mxu1 }
 0x25a   : > { %3093 = vst [vmem:[%s4883_s19 + $0xb0] sm:$0xff] %v3061_v49  ;;  %v3064_v2 = vmax.f32 %v3032_v57, 0.0  ;;  %v3031_v18 = vadd.f32 %v5727_v3, %v2992_v54  ;;  %v2995_v35 = vadd.f32 %v4506_v56, %v2721_v10  ;;  %v2720_v6 = vadd.f32 %v2665_v53, %v2446_v22 }
 0x25b   : > { %v2939_v8 = vpop.f32.mrf.mxu0  ;;  %v4429_v27 = vpop.f32.mrf.mxu1 }
 0x25c   : > { %3096 = vst [vmem:[%s4883_s19 + $0xc8] sm:$0xff] %v3064_v2  ;;  %v3063_v25 = vmax.f32 %v3031_v18, 0.0  ;;  %v3034_v7 = vadd.f32 %v5727_v3, %v2995_v35  ;;  %v2994_v38 = vadd.f32 %v2939_v8, %v2720_v6  ;;  %v2723_v45 = vadd.f32 %v4429_v27, %v2449_v63 }
 0x25d   : > { %v4509_v58 = vpop.f32.mrf.mxu0  ;;  %v2675_v17 = vpop.f32.mrf.mxu1 }
 0x25e   : > { %3095 = vst [vmem:[%s4883_s19 + $0xc0] sm:$0xff] %v3063_v25  ;;  %v3066_v21 = vmax.f32 %v3034_v7, 0.0  ;;  %v3033_v41 = vadd.f32 %v5727_v3, %v2994_v38  ;;  %v2997_v52 = vadd.f32 %v4509_v58, %v2723_v45  ;;  %v2722_v42 = vadd.f32 %v2675_v17, %v2448_v62 }
 0x25f   : > { %v2949_v40 = vpop.f32.mrf.mxu0  ;;  %v4432_v59 = vpop.f32.mrf.mxu1 }
 0x260   : > { %3098 = vst [vmem:[%s4883_s19 + $0xd8] sm:$0xff] %v3066_v21  ;;  %v3065_v32 = vmax.f32 %v3033_v41, 0.0  ;;  %v3036_v1 = vadd.f32 %v5727_v3, %v2997_v52  ;;  %v2996_v33 = vadd.f32 %v2949_v40, %v2722_v42  ;;  %v2725_v26 = vadd.f32 %v4432_v59, %v2451_v50 }
 0x261   : > { %v4512_v31 = vpop.f32.mrf.mxu0  ;;  %v2685_v61 = vpop.f32.mrf.mxu1 }
 0x262   : > { %3097 = vst [vmem:[%s4883_s19 + $0xd0] sm:$0xff] %v3065_v32  ;;  %v3068_v28 = vmax.f32 %v3036_v1, 0.0  ;;  %v3035_v20 = vadd.f32 %v5727_v3, %v2996_v33  ;;  %v2999_v0 = vadd.f32 %v4512_v31, %v2725_v26  ;;  %v2724_v12 = vadd.f32 %v2685_v61, %v2450_v19 }
 0x263   : > { %v2959_v15 = vpop.f32.mrf.mxu0 }
 0x264   : > { %3100 = vst [vmem:[%s4883_s19 + $0xe8] sm:$0xff] %v3068_v28  ;;  %v3067_v36 = vmax.f32 %v3035_v20, 0.0  ;;  %v3038_v30 = vadd.f32 %v5727_v3, %v2999_v0  ;;  %v2998_v44 = vadd.f32 %v2959_v15, %v2724_v12 }
 0x266   : > { %3099 = vst [vmem:[%s4883_s19 + $0xe0] sm:$0xff] %v3067_v36  ;;  %v3070_v4 = vmax.f32 %v3038_v30, 0.0  ;;  %v3037_v46 = vadd.f32 %v5727_v3, %v2998_v44 }
 0x268   : > { %3102 = vst [vmem:[%s4883_s19 + $0xf8] sm:$0xff] %v3070_v4  ;;  %v3069_v60 = vmax.f32 %v3037_v46, 0.0 }
 0x26a   : > { %3101 = vst [vmem:[%s4883_s19 + $0xf0] sm:$0xff] %v3069_v60 }
 0x26b   : > { %4681 = shalt.err (!%p4678_p0)
}
 0x26c   : > { %s4682_s8 = scalar_lea.hbm %s5881_s30, 4096  ;;  %s4686_s18 = scalar_lea.hbm %s5937_s3, 8192 }
 0x26d   : > { %p4683_p1 = scmp.ne.s32.totalorder %s5881_s30, %s4682_s8  ;;  %p4687_p5 = scmp.lt.s32.totalorder %s5881_s30, %s5937_s3 }
 0x26e   : > { %p4688_p6 = scmp.lt.s32.totalorder %s4686_s18, %s4682_s8 }
 0x26f   : > { %p4684_p2 = pnand %p4683_p1, %p4823_p4 }
 0x270   : > { %p4689_p7 = por %p4688_p6, %p4687_p5 }
 0x271   : > { %p4685_p3 = pneg %p4684_p2 }
 0x273   : > { %p4690_p9 = pnand %p4689_p7, %p4685_p3 }
 0x275   : > { %4693 = shalt.err (!%p4690_p9)
}
 0x276   : > { %s4761_s19 = smov 128   ;;  %s4762_s10 = smov 8  }
 0x277   : > { %4549 = dma.vmem_to_hbm [thread:$0]  (%p4823_p4), %s5884_s26, 4096, %s5881_s30, %s5889_s4, %s4761_s19, %s4761_s19, %s4762_s10  }
 0x278 PF: > { %p4561_p10 = scmp.ge.s32.totalorder %s4750_s17, 2  ;;  %s3135_s21 = sand.u32 1, %s4730_s12  }
 0x279   : > { %s3136_s27 = scalar_lea.sflag [#allocation6], %s3135_s21 }
 0x27a   : > { %p4556_p11 = pnand %p4561_p10, %p4830_p8 }
 0x27c   : > { %p4557_p12 = pneg %p4556_p11 }
 0x27e   : > { %4725 = dma.done.wait (%p4557_p12), %s3136_s27, 4096  }
 0x27f   : > { %4727 = vsyncadd (%p4557_p12), %s3136_s27, 4294963200  ;;  %s17_s17 = sadd.s32 1, %s4750_s17   ;;  %s6032_s12 = smov %s4734_s13 }
 0x280   : > { %p14_p13 = scmp.ge.s32.totalorder %s17_s17, 4   ;;  %s6033_s13 = smov %s4738_s14 }
 0x281   : > { %s6034_s14 = smov %s4836_s25  ;;  %s6035_s15 = smov %s4746_s16 }
 0x282   : > { %s6036_s16 = smov %s6038_s20  ;;  %16 = sbr.rel (!%p14_p13) target bundleno = 5 (0x5), region = 153 }
 0x287   :  { %3141 = vsyncpa [#allocation5], 1 }
 0x288   :  { %3143 = vsyncpa [#allocation5 + $0x1], 1 }
 0x289   :  { %3144 = vsyncpa [#allocation6], 1 }
 0x28a   :  { %3146 = vsyncpa [#allocation6 + $0x1], 1 }
 0x28b   :  { %3147 = vsyncmov [#allocation3] }
 0x28e   :  { %s3148_s22 = vpop.sfrf %3147 }
 0x28f   :  { %p3345_p4 = scmp.ne.s32.totalorder %s3148_s22, 0 }
 0x291   :  { %3152 = shalt.err (%p3345_p4)  }
 0x292   :  { %3154 = vsyncmov [#allocation3 + $0x1] }
 0x295   :  { %s3155_s24 = vpop.sfrf %3154 }
 0x296   :  { %p3346_p8 = scmp.ne.s32.totalorder %s3155_s24, 0 }
 0x298   :  { %3159 = shalt.err (%p3346_p8)  }
 0x299   :  { %3161 = vsyncmov [#allocation3 + $0x2] }
 0x29c   :  { %s3162_s25 = vpop.sfrf %3161 }
 0x29d   :  { %p3347_p0 = scmp.ne.s32.totalorder %s3162_s25, 0 }
 0x29f   :  { %3166 = shalt.err (%p3347_p0)  }
 0x2a0   :  { %3168 = vsyncmov [#allocation3 + $0x3] }
 0x2a3   :  { %s3169_s20 = vpop.sfrf %3168 }
 0x2a4   :  { %p3348_p1 = scmp.ne.s32.totalorder %s3169_s20, 0 }
 0x2a6   :  { %3173 = shalt.err (%p3348_p1)  }
 0x2a7   :  { %3175 = vsyncmov [#allocation3 + $0x4] }
 0x2aa   :  { %s3176_s0 = vpop.sfrf %3175 }
 0x2ab   :  { %p3349_p2 = scmp.ne.s32.totalorder %s3176_s0, 0 }
 0x2ad   :  { %3180 = shalt.err (%p3349_p2)  }
 0x2ae   :  { %3182 = vsyncmov [#allocation3 + $0x5] }
 0x2b1   :  { %s3183_s1 = vpop.sfrf %3182 }
 0x2b2   :  { %p3350_p3 = scmp.ne.s32.totalorder %s3183_s1, 0 }
 0x2b4   :  { %3187 = shalt.err (%p3350_p3)  }

</bundles_post_ra>
